<compile_context>
chip_gen: v7x
topology: tpu7x:2x2x1
jax: 0.10.0
libtpu: 0.0.40
codegen_flags: <defaults>
</compile_context>

<pallas_src>
import functools

import jax
import jax.numpy as jnp
import numpy as np
from jax import lax
from jax.experimental import pallas as pl
from jax.experimental.pallas import tpu as pltpu


def _pick_jblock(n_feats, target_lanes=128):
    """How many output features j per bilinear chunk (chunk width ~= target_lanes)."""
    target = max(1, target_lanes // n_feats)
    for jb in range(min(target, n_feats), 0, -1):
        if n_feats % jb == 0:
            return jb
    return 1


# ----------------------------- Pallas kernel ---------------------------------
def _bilinear_kernel(
    xm_ref,                                   # (tile_b, 2F) fused [pos | m | 0]
    wd_ref, bd_ref,                           # (3, 2F, 2F), (3, 1, 2F) block-diag branch MLPs
    wa_ref, s_ref, bbl_ref,                   # (C, F, JB*F), (C, JB*F, F), (1, F)
    wr_ref, br_ref,                           # (2, F, F), (2, 1, F) regressor hidden layers
    w9_ref, b9_ref,                           # (F, out_dim), (1, out_dim) regressor head
    out_ref,
    *, n_feats, j_block,
):
    f32 = jnp.float32
    F = n_feats
    JB = j_block
    n_chunks = F // JB
    tb = xm_ref.shape[0]

    def relu(x):
        return jnp.maximum(x, 0.0)

    # --- f_pos / f_m branches fused as block-diagonal linears ------------------
    h = xm_ref[...].astype(f32)                                             # (tb, 2F)
    h = relu(jnp.dot(h, wd_ref[0], preferred_element_type=f32) + bd_ref[0])
    h = relu(jnp.dot(h, wd_ref[1], preferred_element_type=f32) + bd_ref[1])
    h = jnp.dot(h, wd_ref[2], preferred_element_type=f32) + bd_ref[2]       # [f_pos | f_m]
    f_pos = h[:, :F]
    f_m = h[:, F:]

    # --- nn.Bilinear(F, F, F), 128-lane chunks over blocks of JB output features
    # fm_rep[b, jl*F + q] = f_m[b, q]; same for every chunk -> hoisted once.
    fm_rep = jnp.concatenate([f_m] * JB, axis=-1)                           # (tb, JB*F)

    def chunk_body(c, acc):
        a_c = jnp.dot(f_pos, wa_ref[c], preferred_element_type=f32)         # (tb, JB*F)
        p_c = a_c * fm_rep
        return acc + jnp.dot(p_c, s_ref[c], preferred_element_type=f32)     # (tb, F)

    pos_m = lax.fori_loop(0, n_chunks, chunk_body,
                          jnp.zeros((tb, F), f32), unroll=True)
    pos_m = pos_m + bbl_ref[...]

    # --- regressor --------------------------------------------------------------
    z = relu(jnp.dot(pos_m, wr_ref[0], preferred_element_type=f32) + br_ref[0])
    z = relu(jnp.dot(z, wr_ref[1], preferred_element_type=f32) + br_ref[1])
    out = jnp.dot(z, w9_ref[...], preferred_element_type=f32) + b9_ref[...]

    out_ref[...] = out.astype(out_ref.dtype)


# ------------------------------ wrapper ---------------------------------------
def bilinear_forward(pos, m, params, *, tile_b=128):
    """pos: (B, 2*k*k), m: (B, 4) -> (B, 2*k*k).

    tile_b: batch rows per grid step.  128 keeps the grid even (B=256 -> 2 steps) so
    both v7x TensorCores get work; use 256 on v6e/v7x when B allows to fill the
    256-row MXU and halve per-step overhead.
    """
    B, in_pos = pos.shape
    _, in_m = m.shape
    F = params["w3"].shape[1]
    out_dim = params["w9"].shape[1]
    F2 = 2 * F
    assert B % tile_b == 0  # TODO(synk): ragged batches need cdiv grid + masked store
    assert in_pos + in_m <= F2

    jb = _pick_jblock(F, target_lanes=128)     # JB*F == 128 lanes per chunk for F<=128
    n_chunks = F // jb
    jbf = jb * F
    f32 = jnp.float32

    # Fused [pos | m] input, zero padded to 2F lanes -> one input DMA per step (exact).
    xm = jnp.zeros((B, F2), f32)
    xm = xm.at[:, :in_pos].set(pos.astype(f32))
    xm = xm.at[:, in_pos:in_pos + in_m].set(m.astype(f32))

    # Block-diagonal branch weights: [[w_pos, 0], [0, w_m]] (exact: zero padding).
    wd1 = jnp.zeros((F2, F2), f32)
    wd1 = wd1.at[:in_pos, :F].set(params["w1"])
    wd1 = wd1.at[in_pos:in_pos + in_m, F:].set(params["w4"])

    def blockdiag(w_a, w_b):
        wd = jnp.zeros((F2, F2), f32)
        wd = wd.at[:F, :F].set(w_a)
        wd = wd.at[F:, F:].set(w_b)
        return wd

    wd_stack = jnp.stack([wd1,
                          blockdiag(params["w2"], params["w5"]),
                          blockdiag(params["w3"], params["w6"])])            # (3, 2F, 2F)
    bd_stack = jnp.stack([jnp.concatenate([params["b1"], params["b4"]], -1),
                          jnp.concatenate([params["b2"], params["b5"]], -1),
                          jnp.concatenate([params["b3"], params["b6"]], -1)])  # (3, 1, 2F)

    # Bilinear fold: wa[p, j*F+q] = W[j,p,q];  s_sum[j*F+q, j] = 1 (0/1 group-sum).
    wbl3 = params["wbl3"]
    wa = jnp.transpose(wbl3, (1, 0, 2)).reshape(F, F * F)
    wa_chunks = wa.reshape(F, n_chunks, jbf).transpose(1, 0, 2)              # (C, F, JB*F)
    row_groups = jnp.arange(F * F, dtype=jnp.int32) // F
    s_sum = (row_groups[:, None] ==
             jnp.arange(F, dtype=jnp.int32)[None, :]).astype(f32)
    s_chunks = s_sum.reshape(n_chunks, jbf, F)                               # (C, JB*F, F)

    # Regressor hidden layers stacked; head (w9/b9) kept separate (out_dim may != F).
    wr_stack = jnp.stack([params["w7"], params["w8"]])                       # (2, F, F)
    br_stack = jnp.stack([params["b7"], params["b8"]])                       # (2, 1, F)

    weights = [wd_stack, bd_stack, wa_chunks, s_chunks, params["bbl"],
               wr_stack, br_stack, params["w9"], params["b9"]]

    def batch_spec(dim):
        return pl.BlockSpec((tile_b, dim), lambda i: (i, 0))

    def full_spec(arr):
        return pl.BlockSpec(arr.shape, lambda i, _nd=arr.ndim: (0,) * _nd)

    in_specs = [batch_spec(F2)] + [full_spec(w) for w in weights]

    kernel = functools.partial(_bilinear_kernel, n_feats=F, j_block=jb)

    return pl.pallas_call(
        kernel,
        out_shape=jax.ShapeDtypeStruct((B, out_dim), pos.dtype),
        grid_spec=pltpu.PrefetchScalarGridSpec(
            num_scalar_prefetch=0,
            grid=(B // tile_b,),
            in_specs=in_specs,
            out_specs=batch_spec(out_dim),
        ),
        compiler_params=pltpu.CompilerParams(
            dimension_semantics=("parallel",),
        ),
    )(xm, *weights)


# -------------------------- parameter construction ----------------------------
def init_params(key, kernel_size, n_feats):
    F = n_feats
    in_pos = 2 * kernel_size * kernel_size
    out_dim = 2 * kernel_size * kernel_size

    def linear(key, fan_in, fan_out):
        kw, kb = jax.random.split(key)
        bound = 1.0 / np.sqrt(fan_in)
        # stored as (in, out) so the kernel computes x @ W
        w = jax.random.uniform(kw, (fan_in, fan_out), jnp.float32, -bound, bound)
        b = jax.random.uniform(kb, (1, fan_out), jnp.float32, -bound, bound)
        return w, b

    keys = jax.random.split(key, 10)
    p = {}
    p["w1"], p["b1"] = linear(keys[0], in_pos, F)
    p["w2"], p["b2"] = linear(keys[1], F, F)
    p["w3"], p["b3"] = linear(keys[2], F, F)
    p["w4"], p["b4"] = linear(keys[3], 4, F)
    p["w5"], p["b5"] = linear(keys[4], F, F)
    p["w6"], p["b6"] = linear(keys[5], F, F)
    p["w7"], p["b7"] = linear(keys[6], F, F)
    p["w8"], p["b8"] = linear(keys[7], F, F)
    p["w9"], p["b9"] = linear(keys[8], F, out_dim)

    # nn.Bilinear(F, F, F): weight (out=F, in1=F, in2=F), bias (F,)
    kw, kb = jax.random.split(keys[9])
    bound = 1.0 / np.sqrt(F)
    p["wbl3"] = jax.random.uniform(kw, (F, F, F), jnp.float32, -bound, bound)
    p["bbl"] = jax.random.uniform(kb, (1, F), jnp.float32, -bound, bound)
    return p


# ----------------------------- pure-JAX reference ------------------------------
def reference_forward(pos, m, p):
    def mlp3(x, w1, b1, w2, b2, w3, b3):
        h = jax.nn.relu(x @ w1 + b1)
        h = jax.nn.relu(h @ w2 + b2)
        return h @ w3 + b3

    f_pos = mlp3(pos, p["w1"], p["b1"], p["w2"], p["b2"], p["w3"], p["b3"])
    f_m = mlp3(m, p["w4"], p["b4"], p["w5"], p["b5"], p["w6"], p["b6"])
    pos_m = jnp.einsum("bp,jpq,bq->bj", f_pos, p["wbl3"], f_m) + p["bbl"]
    return mlp3(pos_m, p["w7"], p["b7"], p["w8"], p["b8"], p["w9"], p["b9"])


# ----------------------------------- main --------------------------------------
if __name__ == "__main__":
    kernel_size = 2          # -> pos / output feature dim = 2*k*k = 8
    n_feats = 32
    B = 256                  # batch of query points; grid = 2 parallel steps
    tile_b = 128

    key = jax.random.PRNGKey(0)
    k_par, k_pos, k_m = jax.random.split(key, 3)

    params = init_params(k_par, kernel_size, n_feats)
    pos = jax.random.normal(k_pos, (B, 2 * kernel_size * kernel_size), jnp.float32)
    m = jax.random.normal(k_m, (B, 4), jnp.float32)

    out = bilinear_forward(pos, m, params, tile_b=tile_b)
    out = jax.block_until_ready(out)

    ref = reference_forward(pos, m, params)
    assert out.shape == (B, 2 * kernel_size * kernel_size)
    np.testing.assert_allclose(np.asarray(out), np.asarray(ref), rtol=1e-4, atol=1e-4)

    print("KERNEL_OK")
</pallas_src>

<mosaic_0001>
module attributes {stable_mosaic.version = 11 : i64} {
  func.func @_bilinear_kernel(%arg0: i32, %arg1: memref<128x64xf32, #tpu.memory_space<vmem>>, %arg2: memref<3x64x64xf32, #tpu.memory_space<vmem>>, %arg3: memref<3x1x64xf32, #tpu.memory_space<vmem>>, %arg4: memref<8x32x128xf32, #tpu.memory_space<vmem>>, %arg5: memref<8x128x32xf32, #tpu.memory_space<vmem>>, %arg6: memref<1x32xf32, #tpu.memory_space<vmem>>, %arg7: memref<2x32x32xf32, #tpu.memory_space<vmem>>, %arg8: memref<2x1x32xf32, #tpu.memory_space<vmem>>, %arg9: memref<32x8xf32, #tpu.memory_space<vmem>>, %arg10: memref<1x8xf32, #tpu.memory_space<vmem>>, %arg11: memref<128x8xf32, #tpu.memory_space<vmem>>) attributes {dimension_semantics = [#tpu.dimension_semantics<parallel>], iteration_bounds = array<i64: 2>, scalar_prefetch = 0 : i64, scratch_operands = 0 : i64, tpu.core_type = #tpu.core_type<tc>, window_params = [{transform_indices = @transform_0, window_bounds = array<i64: 128, 64>}, {pipeline_mode = #tpu.pipeline_mode<synchronous>, transform_indices = @transform_1, window_bounds = array<i64: 3, 64, 64>}, {pipeline_mode = #tpu.pipeline_mode<synchronous>, transform_indices = @transform_2, window_bounds = array<i64: 3, 1, 64>}, {pipeline_mode = #tpu.pipeline_mode<synchronous>, transform_indices = @transform_3, window_bounds = array<i64: 8, 32, 128>}, {pipeline_mode = #tpu.pipeline_mode<synchronous>, transform_indices = @transform_4, window_bounds = array<i64: 8, 128, 32>}, {pipeline_mode = #tpu.pipeline_mode<synchronous>, transform_indices = @transform_5, window_bounds = array<i64: 1, 32>}, {pipeline_mode = #tpu.pipeline_mode<synchronous>, transform_indices = @transform_6, window_bounds = array<i64: 2, 32, 32>}, {pipeline_mode = #tpu.pipeline_mode<synchronous>, transform_indices = @transform_7, window_bounds = array<i64: 2, 1, 32>}, {pipeline_mode = #tpu.pipeline_mode<synchronous>, transform_indices = @transform_8, window_bounds = array<i64: 32, 8>}, {pipeline_mode = #tpu.pipeline_mode<synchronous>, transform_indices = @transform_9, window_bounds = array<i64: 1, 8>}, {transform_indices = @transform_10, window_bounds = array<i64: 128, 8>}]} {
    %c0 = arith.constant 0 : index
    %c0_0 = arith.constant 0 : index
    %0 = vector.load %arg1[%c0, %c0_0] : memref<128x64xf32, #tpu.memory_space<vmem>>, vector<128x64xf32>
    %c0_1 = arith.constant 0 : index
    %c0_2 = arith.constant 0 : index
    %c0_3 = arith.constant 0 : index
    %1 = vector.load %arg2[%c0_1, %c0_2, %c0_3] : memref<3x64x64xf32, #tpu.memory_space<vmem>>, vector<1x64x64xf32>
    %2 = vector.shape_cast %1 : vector<1x64x64xf32> to vector<64x64xf32>
    %cst = arith.constant dense<0.000000e+00> : vector<128x64xf32>
    %3 = tpu.matmul %0, %2, %cst {dimension_numbers = #tpu.dot_dimension_numbers<[1], [0], [0], [1], [0, 0, 1, 1], [], []>} : vector<128x64xf32>, vector<64x64xf32>, vector<128x64xf32> -> vector<128x64xf32>
    %c0_4 = arith.constant 0 : index
    %c0_5 = arith.constant 0 : index
    %c0_6 = arith.constant 0 : index
    %4 = vector.load %arg3[%c0_4, %c0_5, %c0_6] : memref<3x1x64xf32, #tpu.memory_space<vmem>>, vector<1x1x64xf32>
    %5 = vector.shape_cast %4 : vector<1x1x64xf32> to vector<1x64xf32>
    %6 = vector.broadcast %5 : vector<1x64xf32> to vector<128x64xf32>
    %7 = arith.addf %3, %6 : vector<128x64xf32>
    %cst_7 = arith.constant 0.000000e+00 : f32
    %8 = vector.broadcast %cst_7 : f32 to vector<128x64xf32>
    %9 = arith.maximumf %7, %8 : vector<128x64xf32>
    %c1 = arith.constant 1 : index
    %c0_8 = arith.constant 0 : index
    %c0_9 = arith.constant 0 : index
    %10 = vector.load %arg2[%c1, %c0_8, %c0_9] : memref<3x64x64xf32, #tpu.memory_space<vmem>>, vector<1x64x64xf32>
    %11 = vector.shape_cast %10 : vector<1x64x64xf32> to vector<64x64xf32>
    %cst_10 = arith.constant dense<0.000000e+00> : vector<128x64xf32>
    %12 = tpu.matmul %9, %11, %cst_10 {dimension_numbers = #tpu.dot_dimension_numbers<[1], [0], [0], [1], [0, 0, 1, 1], [], []>} : vector<128x64xf32>, vector<64x64xf32>, vector<128x64xf32> -> vector<128x64xf32>
    %c1_11 = arith.constant 1 : index
    %c0_12 = arith.constant 0 : index
    %c0_13 = arith.constant 0 : index
    %13 = vector.load %arg3[%c1_11, %c0_12, %c0_13] : memref<3x1x64xf32, #tpu.memory_space<vmem>>, vector<1x1x64xf32>
    %14 = vector.shape_cast %13 : vector<1x1x64xf32> to vector<1x64xf32>
    %15 = vector.broadcast %14 : vector<1x64xf32> to vector<128x64xf32>
    %16 = arith.addf %12, %15 : vector<128x64xf32>
    %cst_14 = arith.constant 0.000000e+00 : f32
    %17 = vector.broadcast %cst_14 : f32 to vector<128x64xf32>
    %18 = arith.maximumf %16, %17 : vector<128x64xf32>
    %c2 = arith.constant 2 : index
    %c0_15 = arith.constant 0 : index
    %c0_16 = arith.constant 0 : index
    %19 = vector.load %arg2[%c2, %c0_15, %c0_16] : memref<3x64x64xf32, #tpu.memory_space<vmem>>, vector<1x64x64xf32>
    %20 = vector.shape_cast %19 : vector<1x64x64xf32> to vector<64x64xf32>
    %cst_17 = arith.constant dense<0.000000e+00> : vector<128x64xf32>
    %21 = tpu.matmul %18, %20, %cst_17 {dimension_numbers = #tpu.dot_dimension_numbers<[1], [0], [0], [1], [0, 0, 1, 1], [], []>} : vector<128x64xf32>, vector<64x64xf32>, vector<128x64xf32> -> vector<128x64xf32>
    %c2_18 = arith.constant 2 : index
    %c0_19 = arith.constant 0 : index
    %c0_20 = arith.constant 0 : index
    %22 = vector.load %arg3[%c2_18, %c0_19, %c0_20] : memref<3x1x64xf32, #tpu.memory_space<vmem>>, vector<1x1x64xf32>
    %23 = vector.shape_cast %22 : vector<1x1x64xf32> to vector<1x64xf32>
    %24 = vector.broadcast %23 : vector<1x64xf32> to vector<128x64xf32>
    %25 = arith.addf %21, %24 : vector<128x64xf32>
    %26 = vector.extract_strided_slice %25 {offsets = [0, 0], sizes = [128, 32], strides = [1, 1]} : vector<128x64xf32> to vector<128x32xf32>
    %27 = vector.extract_strided_slice %25 {offsets = [0, 32], sizes = [128, 32], strides = [1, 1]} : vector<128x64xf32> to vector<128x32xf32>
    %28 = tpu.concatenate %27, %27, %27, %27 in 1 : vector<128x32xf32>, vector<128x32xf32>, vector<128x32xf32>, vector<128x32xf32> -> vector<128x128xf32>
    %cst_21 = arith.constant 0.000000e+00 : f32
    %29 = vector.broadcast %cst_21 : f32 to vector<128x32xf32>
    %c0_i32 = arith.constant 0 : i32
    %30 = arith.index_cast %c0_i32 : i32 to index
    %c0_22 = arith.constant 0 : index
    %c0_23 = arith.constant 0 : index
    %31 = vector.load %arg4[%30, %c0_22, %c0_23] : memref<8x32x128xf32, #tpu.memory_space<vmem>>, vector<1x32x128xf32>
    %32 = vector.shape_cast %31 : vector<1x32x128xf32> to vector<32x128xf32>
    %cst_24 = arith.constant dense<0.000000e+00> : vector<128x128xf32>
    %33 = tpu.matmul %26, %32, %cst_24 {dimension_numbers = #tpu.dot_dimension_numbers<[1], [0], [0], [1], [0, 0, 1, 1], [], []>} : vector<128x32xf32>, vector<32x128xf32>, vector<128x128xf32> -> vector<128x128xf32>
    %34 = arith.mulf %33, %28 : vector<128x128xf32>
    %35 = arith.index_cast %c0_i32 : i32 to index
    %c0_25 = arith.constant 0 : index
    %c0_26 = arith.constant 0 : index
    %36 = vector.load %arg5[%35, %c0_25, %c0_26] : memref<8x128x32xf32, #tpu.memory_space<vmem>>, vector<1x128x32xf32>
    %37 = vector.shape_cast %36 : vector<1x128x32xf32> to vector<128x32xf32>
    %cst_27 = arith.constant dense<0.000000e+00> : vector<128x32xf32>
    %38 = tpu.matmul %34, %37, %cst_27 {dimension_numbers = #tpu.dot_dimension_numbers<[1], [0], [0], [1], [0, 0, 1, 1], [], []>} : vector<128x128xf32>, vector<128x32xf32>, vector<128x32xf32> -> vector<128x32xf32>
    %39 = arith.addf %29, %38 : vector<128x32xf32>
    %c1_i32 = arith.constant 1 : i32
    %40 = arith.index_cast %c1_i32 : i32 to index
    %c0_28 = arith.constant 0 : index
    %c0_29 = arith.constant 0 : index
    %41 = vector.load %arg4[%40, %c0_28, %c0_29] : memref<8x32x128xf32, #tpu.memory_space<vmem>>, vector<1x32x128xf32>
    %42 = vector.shape_cast %41 : vector<1x32x128xf32> to vector<32x128xf32>
    %cst_30 = arith.constant dense<0.000000e+00> : vector<128x128xf32>
    %43 = tpu.matmul %26, %42, %cst_30 {dimension_numbers = #tpu.dot_dimension_numbers<[1], [0], [0], [1], [0, 0, 1, 1], [], []>} : vector<128x32xf32>, vector<32x128xf32>, vector<128x128xf32> -> vector<128x128xf32>
    %44 = arith.mulf %43, %28 : vector<128x128xf32>
    %45 = arith.index_cast %c1_i32 : i32 to index
    %c0_31 = arith.constant 0 : index
    %c0_32 = arith.constant 0 : index
    %46 = vector.load %arg5[%45, %c0_31, %c0_32] : memref<8x128x32xf32, #tpu.memory_space<vmem>>, vector<1x128x32xf32>
    %47 = vector.shape_cast %46 : vector<1x128x32xf32> to vector<128x32xf32>
    %cst_33 = arith.constant dense<0.000000e+00> : vector<128x32xf32>
    %48 = tpu.matmul %44, %47, %cst_33 {dimension_numbers = #tpu.dot_dimension_numbers<[1], [0], [0], [1], [0, 0, 1, 1], [], []>} : vector<128x128xf32>, vector<128x32xf32>, vector<128x32xf32> -> vector<128x32xf32>
    %49 = arith.addf %39, %48 : vector<128x32xf32>
    %c2_i32 = arith.constant 2 : i32
    %50 = arith.index_cast %c2_i32 : i32 to index
    %c0_34 = arith.constant 0 : index
    %c0_35 = arith.constant 0 : index
    %51 = vector.load %arg4[%50, %c0_34, %c0_35] : memref<8x32x128xf32, #tpu.memory_space<vmem>>, vector<1x32x128xf32>
    %52 = vector.shape_cast %51 : vector<1x32x128xf32> to vector<32x128xf32>
    %cst_36 = arith.constant dense<0.000000e+00> : vector<128x128xf32>
    %53 = tpu.matmul %26, %52, %cst_36 {dimension_numbers = #tpu.dot_dimension_numbers<[1], [0], [0], [1], [0, 0, 1, 1], [], []>} : vector<128x32xf32>, vector<32x128xf32>, vector<128x128xf32> -> vector<128x128xf32>
    %54 = arith.mulf %53, %28 : vector<128x128xf32>
    %55 = arith.index_cast %c2_i32 : i32 to index
    %c0_37 = arith.constant 0 : index
    %c0_38 = arith.constant 0 : index
    %56 = vector.load %arg5[%55, %c0_37, %c0_38] : memref<8x128x32xf32, #tpu.memory_space<vmem>>, vector<1x128x32xf32>
    %57 = vector.shape_cast %56 : vector<1x128x32xf32> to vector<128x32xf32>
    %cst_39 = arith.constant dense<0.000000e+00> : vector<128x32xf32>
    %58 = tpu.matmul %54, %57, %cst_39 {dimension_numbers = #tpu.dot_dimension_numbers<[1], [0], [0], [1], [0, 0, 1, 1], [], []>} : vector<128x128xf32>, vector<128x32xf32>, vector<128x32xf32> -> vector<128x32xf32>
    %59 = arith.addf %49, %58 : vector<128x32xf32>
    %c3_i32 = arith.constant 3 : i32
    %60 = arith.index_cast %c3_i32 : i32 to index
    %c0_40 = arith.constant 0 : index
    %c0_41 = arith.constant 0 : index
    %61 = vector.load %arg4[%60, %c0_40, %c0_41] : memref<8x32x128xf32, #tpu.memory_space<vmem>>, vector<1x32x128xf32>
    %62 = vector.shape_cast %61 : vector<1x32x128xf32> to vector<32x128xf32>
    %cst_42 = arith.constant dense<0.000000e+00> : vector<128x128xf32>
    %63 = tpu.matmul %26, %62, %cst_42 {dimension_numbers = #tpu.dot_dimension_numbers<[1], [0], [0], [1], [0, 0, 1, 1], [], []>} : vector<128x32xf32>, vector<32x128xf32>, vector<128x128xf32> -> vector<128x128xf32>
    %64 = arith.mulf %63, %28 : vector<128x128xf32>
    %65 = arith.index_cast %c3_i32 : i32 to index
    %c0_43 = arith.constant 0 : index
    %c0_44 = arith.constant 0 : index
    %66 = vector.load %arg5[%65, %c0_43, %c0_44] : memref<8x128x32xf32, #tpu.memory_space<vmem>>, vector<1x128x32xf32>
    %67 = vector.shape_cast %66 : vector<1x128x32xf32> to vector<128x32xf32>
    %cst_45 = arith.constant dense<0.000000e+00> : vector<128x32xf32>
    %68 = tpu.matmul %64, %67, %cst_45 {dimension_numbers = #tpu.dot_dimension_numbers<[1], [0], [0], [1], [0, 0, 1, 1], [], []>} : vector<128x128xf32>, vector<128x32xf32>, vector<128x32xf32> -> vector<128x32xf32>
    %69 = arith.addf %59, %68 : vector<128x32xf32>
    %c4_i32 = arith.constant 4 : i32
    %70 = arith.index_cast %c4_i32 : i32 to index
    %c0_46 = arith.constant 0 : index
    %c0_47 = arith.constant 0 : index
    %71 = vector.load %arg4[%70, %c0_46, %c0_47] : memref<8x32x128xf32, #tpu.memory_space<vmem>>, vector<1x32x128xf32>
    %72 = vector.shape_cast %71 : vector<1x32x128xf32> to vector<32x128xf32>
    %cst_48 = arith.constant dense<0.000000e+00> : vector<128x128xf32>
    %73 = tpu.matmul %26, %72, %cst_48 {dimension_numbers = #tpu.dot_dimension_numbers<[1], [0], [0], [1], [0, 0, 1, 1], [], []>} : vector<128x32xf32>, vector<32x128xf32>, vector<128x128xf32> -> vector<128x128xf32>
    %74 = arith.mulf %73, %28 : vector<128x128xf32>
    %75 = arith.index_cast %c4_i32 : i32 to index
    %c0_49 = arith.constant 0 : index
    %c0_50 = arith.constant 0 : index
    %76 = vector.load %arg5[%75, %c0_49, %c0_50] : memref<8x128x32xf32, #tpu.memory_space<vmem>>, vector<1x128x32xf32>
    %77 = vector.shape_cast %76 : vector<1x128x32xf32> to vector<128x32xf32>
    %cst_51 = arith.constant dense<0.000000e+00> : vector<128x32xf32>
    %78 = tpu.matmul %74, %77, %cst_51 {dimension_numbers = #tpu.dot_dimension_numbers<[1], [0], [0], [1], [0, 0, 1, 1], [], []>} : vector<128x128xf32>, vector<128x32xf32>, vector<128x32xf32> -> vector<128x32xf32>
    %79 = arith.addf %69, %78 : vector<128x32xf32>
    %c5_i32 = arith.constant 5 : i32
    %80 = arith.index_cast %c5_i32 : i32 to index
    %c0_52 = arith.constant 0 : index
    %c0_53 = arith.constant 0 : index
    %81 = vector.load %arg4[%80, %c0_52, %c0_53] : memref<8x32x128xf32, #tpu.memory_space<vmem>>, vector<1x32x128xf32>
    %82 = vector.shape_cast %81 : vector<1x32x128xf32> to vector<32x128xf32>
    %cst_54 = arith.constant dense<0.000000e+00> : vector<128x128xf32>
    %83 = tpu.matmul %26, %82, %cst_54 {dimension_numbers = #tpu.dot_dimension_numbers<[1], [0], [0], [1], [0, 0, 1, 1], [], []>} : vector<128x32xf32>, vector<32x128xf32>, vector<128x128xf32> -> vector<128x128xf32>
    %84 = arith.mulf %83, %28 : vector<128x128xf32>
    %85 = arith.index_cast %c5_i32 : i32 to index
    %c0_55 = arith.constant 0 : index
    %c0_56 = arith.constant 0 : index
    %86 = vector.load %arg5[%85, %c0_55, %c0_56] : memref<8x128x32xf32, #tpu.memory_space<vmem>>, vector<1x128x32xf32>
    %87 = vector.shape_cast %86 : vector<1x128x32xf32> to vector<128x32xf32>
    %cst_57 = arith.constant dense<0.000000e+00> : vector<128x32xf32>
    %88 = tpu.matmul %84, %87, %cst_57 {dimension_numbers = #tpu.dot_dimension_numbers<[1], [0], [0], [1], [0, 0, 1, 1], [], []>} : vector<128x128xf32>, vector<128x32xf32>, vector<128x32xf32> -> vector<128x32xf32>
    %89 = arith.addf %79, %88 : vector<128x32xf32>
    %c6_i32 = arith.constant 6 : i32
    %90 = arith.index_cast %c6_i32 : i32 to index
    %c0_58 = arith.constant 0 : index
    %c0_59 = arith.constant 0 : index
    %91 = vector.load %arg4[%90, %c0_58, %c0_59] : memref<8x32x128xf32, #tpu.memory_space<vmem>>, vector<1x32x128xf32>
    %92 = vector.shape_cast %91 : vector<1x32x128xf32> to vector<32x128xf32>
    %cst_60 = arith.constant dense<0.000000e+00> : vector<128x128xf32>
    %93 = tpu.matmul %26, %92, %cst_60 {dimension_numbers = #tpu.dot_dimension_numbers<[1], [0], [0], [1], [0, 0, 1, 1], [], []>} : vector<128x32xf32>, vector<32x128xf32>, vector<128x128xf32> -> vector<128x128xf32>
    %94 = arith.mulf %93, %28 : vector<128x128xf32>
    %95 = arith.index_cast %c6_i32 : i32 to index
    %c0_61 = arith.constant 0 : index
    %c0_62 = arith.constant 0 : index
    %96 = vector.load %arg5[%95, %c0_61, %c0_62] : memref<8x128x32xf32, #tpu.memory_space<vmem>>, vector<1x128x32xf32>
    %97 = vector.shape_cast %96 : vector<1x128x32xf32> to vector<128x32xf32>
    %cst_63 = arith.constant dense<0.000000e+00> : vector<128x32xf32>
    %98 = tpu.matmul %94, %97, %cst_63 {dimension_numbers = #tpu.dot_dimension_numbers<[1], [0], [0], [1], [0, 0, 1, 1], [], []>} : vector<128x128xf32>, vector<128x32xf32>, vector<128x32xf32> -> vector<128x32xf32>
    %99 = arith.addf %89, %98 : vector<128x32xf32>
    %c7_i32 = arith.constant 7 : i32
    %100 = arith.index_cast %c7_i32 : i32 to index
    %c0_64 = arith.constant 0 : index
    %c0_65 = arith.constant 0 : index
    %101 = vector.load %arg4[%100, %c0_64, %c0_65] : memref<8x32x128xf32, #tpu.memory_space<vmem>>, vector<1x32x128xf32>
    %102 = vector.shape_cast %101 : vector<1x32x128xf32> to vector<32x128xf32>
    %cst_66 = arith.constant dense<0.000000e+00> : vector<128x128xf32>
    %103 = tpu.matmul %26, %102, %cst_66 {dimension_numbers = #tpu.dot_dimension_numbers<[1], [0], [0], [1], [0, 0, 1, 1], [], []>} : vector<128x32xf32>, vector<32x128xf32>, vector<128x128xf32> -> vector<128x128xf32>
    %104 = arith.mulf %103, %28 : vector<128x128xf32>
    %105 = arith.index_cast %c7_i32 : i32 to index
    %c0_67 = arith.constant 0 : index
    %c0_68 = arith.constant 0 : index
    %106 = vector.load %arg5[%105, %c0_67, %c0_68] : memref<8x128x32xf32, #tpu.memory_space<vmem>>, vector<1x128x32xf32>
    %107 = vector.shape_cast %106 : vector<1x128x32xf32> to vector<128x32xf32>
    %cst_69 = arith.constant dense<0.000000e+00> : vector<128x32xf32>
    %108 = tpu.matmul %104, %107, %cst_69 {dimension_numbers = #tpu.dot_dimension_numbers<[1], [0], [0], [1], [0, 0, 1, 1], [], []>} : vector<128x128xf32>, vector<128x32xf32>, vector<128x32xf32> -> vector<128x32xf32>
    %109 = arith.addf %99, %108 : vector<128x32xf32>
    %c8_i32 = arith.constant 8 : i32
    %c0_70 = arith.constant 0 : index
    %c0_71 = arith.constant 0 : index
    %110 = vector.load %arg6[%c0_70, %c0_71] : memref<1x32xf32, #tpu.memory_space<vmem>>, vector<1x32xf32>
    %111 = vector.broadcast %110 : vector<1x32xf32> to vector<128x32xf32>
    %112 = arith.addf %109, %111 : vector<128x32xf32>
    %c0_72 = arith.constant 0 : index
    %c0_73 = arith.constant 0 : index
    %c0_74 = arith.constant 0 : index
    %113 = vector.load %arg7[%c0_72, %c0_73, %c0_74] : memref<2x32x32xf32, #tpu.memory_space<vmem>>, vector<1x32x32xf32>
    %114 = vector.shape_cast %113 : vector<1x32x32xf32> to vector<32x32xf32>
    %cst_75 = arith.constant dense<0.000000e+00> : vector<128x32xf32>
    %115 = tpu.matmul %112, %114, %cst_75 {dimension_numbers = #tpu.dot_dimension_numbers<[1], [0], [0], [1], [0, 0, 1, 1], [], []>} : vector<128x32xf32>, vector<32x32xf32>, vector<128x32xf32> -> vector<128x32xf32>
    %c0_76 = arith.constant 0 : index
    %c0_77 = arith.constant 0 : index
    %c0_78 = arith.constant 0 : index
    %116 = vector.load %arg8[%c0_76, %c0_77, %c0_78] : memref<2x1x32xf32, #tpu.memory_space<vmem>>, vector<1x1x32xf32>
    %117 = vector.shape_cast %116 : vector<1x1x32xf32> to vector<1x32xf32>
    %118 = vector.broadcast %117 : vector<1x32xf32> to vector<128x32xf32>
    %119 = arith.addf %115, %118 : vector<128x32xf32>
    %cst_79 = arith.constant 0.000000e+00 : f32
    %120 = vector.broadcast %cst_79 : f32 to vector<128x32xf32>
    %121 = arith.maximumf %119, %120 : vector<128x32xf32>
    %c1_80 = arith.constant 1 : index
    %c0_81 = arith.constant 0 : index
    %c0_82 = arith.constant 0 : index
    %122 = vector.load %arg7[%c1_80, %c0_81, %c0_82] : memref<2x32x32xf32, #tpu.memory_space<vmem>>, vector<1x32x32xf32>
    %123 = vector.shape_cast %122 : vector<1x32x32xf32> to vector<32x32xf32>
    %cst_83 = arith.constant dense<0.000000e+00> : vector<128x32xf32>
    %124 = tpu.matmul %121, %123, %cst_83 {dimension_numbers = #tpu.dot_dimension_numbers<[1], [0], [0], [1], [0, 0, 1, 1], [], []>} : vector<128x32xf32>, vector<32x32xf32>, vector<128x32xf32> -> vector<128x32xf32>
    %c1_84 = arith.constant 1 : index
    %c0_85 = arith.constant 0 : index
    %c0_86 = arith.constant 0 : index
    %125 = vector.load %arg8[%c1_84, %c0_85, %c0_86] : memref<2x1x32xf32, #tpu.memory_space<vmem>>, vector<1x1x32xf32>
    %126 = vector.shape_cast %125 : vector<1x1x32xf32> to vector<1x32xf32>
    %127 = vector.broadcast %126 : vector<1x32xf32> to vector<128x32xf32>
    %128 = arith.addf %124, %127 : vector<128x32xf32>
    %cst_87 = arith.constant 0.000000e+00 : f32
    %129 = vector.broadcast %cst_87 : f32 to vector<128x32xf32>
    %130 = arith.maximumf %128, %129 : vector<128x32xf32>
    %c0_88 = arith.constant 0 : index
    %c0_89 = arith.constant 0 : index
    %131 = vector.load %arg9[%c0_88, %c0_89] : memref<32x8xf32, #tpu.memory_space<vmem>>, vector<32x8xf32>
    %cst_90 = arith.constant dense<0.000000e+00> : vector<128x8xf32>
    %132 = tpu.matmul %130, %131, %cst_90 {dimension_numbers = #tpu.dot_dimension_numbers<[1], [0], [0], [1], [0, 0, 1, 1], [], []>} : vector<128x32xf32>, vector<32x8xf32>, vector<128x8xf32> -> vector<128x8xf32>
    %c0_91 = arith.constant 0 : index
    %c0_92 = arith.constant 0 : index
    %133 = vector.load %arg10[%c0_91, %c0_92] : memref<1x8xf32, #tpu.memory_space<vmem>>, vector<1x8xf32>
    %134 = vector.broadcast %133 : vector<1x8xf32> to vector<128x8xf32>
    %135 = arith.addf %132, %134 : vector<128x8xf32>
    %c0_93 = arith.constant 0 : index
    %c0_94 = arith.constant 0 : index
    %136 = vector.load %arg11[%c0_93, %c0_94] : memref<128x8xf32, #tpu.memory_space<vmem>>, vector<128x8xf32>
    tpu.vector_store %arg11[%c0_93, %c0_94], %135 {strides = array<i32>} : memref<128x8xf32, #tpu.memory_space<vmem>>, vector<128x8xf32>,
    return
  }
  func.func @transform_0(%arg0: i32) -> (i32, i32) {
    %c0_i32 = arith.constant 0 : i32
    %c0_i32_0 = arith.constant 0 : i32
    return %arg0, %c0_i32 : i32, i32
  }
  func.func @transform_1(%arg0: i32) -> (i32, i32, i32) {
    %c0_i32 = arith.constant 0 : i32
    %c0_i32_0 = arith.constant 0 : i32
    %c0_i32_1 = arith.constant 0 : i32
    %c0_i32_2 = arith.constant 0 : i32
    return %c0_i32, %c0_i32_0, %c0_i32_1 : i32, i32, i32
  }
  func.func @transform_2(%arg0: i32) -> (i32, i32, i32) {
    %c0_i32 = arith.constant 0 : i32
    %c0_i32_0 = arith.constant 0 : i32
    %c0_i32_1 = arith.constant 0 : i32
    %c0_i32_2 = arith.constant 0 : i32
    return %c0_i32, %c0_i32_0, %c0_i32_1 : i32, i32, i32
  }
  func.func @transform_3(%arg0: i32) -> (i32, i32, i32) {
    %c0_i32 = arith.constant 0 : i32
    %c0_i32_0 = arith.constant 0 : i32
    %c0_i32_1 = arith.constant 0 : i32
    %c0_i32_2 = arith.constant 0 : i32
    return %c0_i32, %c0_i32_0, %c0_i32_1 : i32, i32, i32
  }
  func.func @transform_4(%arg0: i32) -> (i32, i32, i32) {
    %c0_i32 = arith.constant 0 : i32
    %c0_i32_0 = arith.constant 0 : i32
    %c0_i32_1 = arith.constant 0 : i32
    %c0_i32_2 = arith.constant 0 : i32
    return %c0_i32, %c0_i32_0, %c0_i32_1 : i32, i32, i32
  }
  func.func @transform_5(%arg0: i32) -> (i32, i32) {
    %c0_i32 = arith.constant 0 : i32
    %c0_i32_0 = arith.constant 0 : i32
    %c0_i32_1 = arith.constant 0 : i32
    return %c0_i32, %c0_i32_0 : i32, i32
  }
  func.func @transform_6(%arg0: i32) -> (i32, i32, i32) {
    %c0_i32 = arith.constant 0 : i32
    %c0_i32_0 = arith.constant 0 : i32
    %c0_i32_1 = arith.constant 0 : i32
    %c0_i32_2 = arith.constant 0 : i32
    return %c0_i32, %c0_i32_0, %c0_i32_1 : i32, i32, i32
  }
  func.func @transform_7(%arg0: i32) -> (i32, i32, i32) {
    %c0_i32 = arith.constant 0 : i32
    %c0_i32_0 = arith.constant 0 : i32
    %c0_i32_1 = arith.constant 0 : i32
    %c0_i32_2 = arith.constant 0 : i32
    return %c0_i32, %c0_i32_0, %c0_i32_1 : i32, i32, i32
  }
  func.func @transform_8(%arg0: i32) -> (i32, i32) {
    %c0_i32 = arith.constant 0 : i32
    %c0_i32_0 = arith.constant 0 : i32
    %c0_i32_1 = arith.constant 0 : i32
    return %c0_i32, %c0_i32_0 : i32, i32
  }
  func.func @transform_9(%arg0: i32) -> (i32, i32) {
    %c0_i32 = arith.constant 0 : i32
    %c0_i32_0 = arith.constant 0 : i32
    %c0_i32_1 = arith.constant 0 : i32
    return %c0_i32, %c0_i32_0 : i32, i32
  }
  func.func @transform_10(%arg0: i32) -> (i32, i32) {
    %c0_i32 = arith.constant 0 : i32
    %c0_i32_0 = arith.constant 0 : i32
    return %arg0, %c0_i32 : i32, i32
  }
}

</mosaic_0001>

<bundles_post_ra>
// kernel: tpu_custom_call.1
= control target key start
LH: loop header
LB: loop body
LE: loop exit
PB: predicated region body
PF: predicated region fallthrough
CT: control target
= control target key end

     0   :  { %s7196_s13 = smov 0   ;;  %s9070_s0 = inlined_call_operand.vmem [shape: f32[256,64], index: 0, kind: input, shape index: {}]   ;;  %s9071_s1 = inlined_call_operand.vmem [shape: f32[3,64,64], index: 1, kind: input, shape index: {}]   ;;  %s9072_s2 = inlined_call_operand.vmem [shape: f32[3,1,64], index: 2, kind: input, shape index: {}]   ;;  %s9073_s3 = inlined_call_operand.vmem [shape: f32[8,32,128], index: 3, kind: input, shape index: {}]   ;;  %s9074_s4 = inlined_call_operand.vmem [shape: f32[8,128,32], index: 4, kind: input, shape index: {}]   ;;  %s9075_s5 = inlined_call_operand.vmem [shape: f32[1,32], index: 5, kind: input, shape index: {}]   ;;  %s9076_s6 = inlined_call_operand.vmem [shape: f32[2,32,32], index: 6, kind: input, shape index: {}]   ;;  %s9077_s7 = inlined_call_operand.vmem [shape: f32[2,1,32], index: 7, kind: input, shape index: {}]   ;;  %s9078_s8 = inlined_call_operand.vmem [shape: f32[32,8], index: 8, kind: input, shape index: {}]   ;;  %s9079_s9 = inlined_call_operand.vmem [shape: f32[1,8], index: 9, kind: input, shape index: {}]   ;;  %s9080_s10 = inlined_call_operand.vmem [shape: f32[256,8], index: 10, kind: output, shape index: {}]  }
   0x1 LB: > { %s4742_s14 = sadd.s32 4294967295, %s7136_s13   ;;  %p4746_p0 = scmp.ge.s32.totalorder %s7136_s13, 1  ;;  %s7136_s13 = sphi %s7196_s13, %s20_s13  }
   0x2   : > { %p313_p1 = scmp.lt.s32.totalorder %s7136_s13, 3 }
   0x4   : > { %p314_p2 = pnand %p4746_p0, %p313_p1 }
   0x6   : > { %317 = sbr.rel (%p314_p2) target bundleno = 2020 (0x7e4), region = 60 }
   0xd   : > { %v379_v0 = vld [vmem:[%s9071_s1] sm:$0xff]  ;;  %v380_v1 = vld [vmem:[%s9071_s1 + $0x8] sm:$0xff]  ;;  %v381_v2 = vld [vmem:[%s9071_s1 + $0x10] sm:$0xff]  ;;  %s4747_s21 = sshll.u32 %s4742_s14, 4  ;;  %vm394_vm0 = vcmask 523264   ;;  %vm1200_vm1 = vcmask 261120  }
   0xe   : > { %v6615_v3 = vpack.c.bf16 %v380_v1, %v379_v0  ;;  %v382_v4 = vld [vmem:[%s9071_s1 + $0x18] sm:$0xff]  ;;  %p352_p3 = scmp.lt.s32.totalorder %s4747_s21, 31  ;;  %v383_v6 = vld [vmem:[%s9071_s1 + $0x20] sm:$0xff]  ;;  %v384_v7 = vld [vmem:[%s9071_s1 + $0x28] sm:$0xff]  ;;  %s7138_s25 = smov 32   ;;  %vm1233_vm2 = vcmask 785408  }
   0xf   : > { %v6619_v5 = vpack.c.bf16 %v382_v4, %v381_v2  ;;  %v4768_v8 = vld [vmem:[%s9071_s1 + $0x40] sm:$0xff]  ;;  %v4769_v9 = vld [vmem:[%s9071_s1 + $0x48] sm:$0xff]  ;;  %v4770_v10 = vld [vmem:[%s9071_s1 + $0x50] sm:$0xff]  ;;  %v6623_v13 = vpack.c.bf16 %v384_v7, %v383_v6  ;;  %s7139_s26 = smov 96   ;;  %s7140_s11 = smov 64   ;;  %vm4669_vm3 = vcmask 64512  }
  0x10   : > { %6616 = vmatprep.subr.bf16.mxu0 %v6615_v3  ;;  %s9086_s21 = smov (!%p352_p3, %s4747_s21), 31  ;;  %v4771_v11 = vld [vmem:[%s9071_s1 + $0x58] sm:$0xff]  ;;  %v6631_v12 = vpack.c.bf16 %v4769_v9, %v4768_v8  ;;  %v4772_v15 = vld [vmem:[%s9071_s1 + $0x60] sm:$0xff]  ;;  %v4773_v16 = vld [vmem:[%s9071_s1 + $0x68] sm:$0xff] }
  0x11   : > { %6618 = vmatpush3.bf16.msra.mxu0 %v6615_v3  ;;  %s4748_s17 = sshll.u32 %s9086_s21, 3  ;;  %v6635_v14 = vpack.c.bf16 %v4771_v11, %v4770_v10  ;;  %v385_v17 = vld [vmem:[%s9071_s1 + $0x30] sm:$0xff]  ;;  %v386_v18 = vld [vmem:[%s9071_s1 + $0x38] sm:$0xff]  ;;  %v6639_v20 = vpack.c.bf16 %v4773_v16, %v4772_v15  ;;  %v4794_v40 = vld [vmem:[%s9071_s1 + $0x80] sm:$0xff] }
  0x12   : > { %6620 = vmatprep.subr.bf16.mxu0 %v6619_v5  ;;  %s7254_s29 = scalar_lea.vmem %s9070_s0, %s4748_s17  ;;  %6632 = vmatprep.subr.bf16.mxu1 %v6631_v12  ;;  %v6627_v21 = vpack.c.bf16 %v386_v18, %v385_v17  ;;  %v4774_v37 = vld [vmem:[%s9071_s1 + $0x70] sm:$0xff]  ;;  %v4775_v38 = vld [vmem:[%s9071_s1 + $0x78] sm:$0xff]  ;;  %v4795_v41 = vld [vmem:[%s9071_s1 + $0x88] sm:$0xff] }
  0x13   : > { %v363_v19 = vld [vmem:[%s7254_s29] sm:$0xff]  ;;  %6634 = vmatpush3.bf16.msra.mxu1 %v6631_v12  ;;  %v364_v22 = vld [vmem:[%s7254_s29 + $0x8] sm:$0xff]  ;;  %v365_v23 = vld [vmem:[%s7254_s29 + $0x10] sm:$0xff]  ;;  %v6643_v39 = vpack.c.bf16 %v4775_v38, %v4774_v37  ;;  %v6647_v43 = vpack.c.bf16 %v4795_v41, %v4794_v40 }
  0x14   : > { %5711 = vmatprep.mubr.msk.f32.mxu0 %vm394_vm0, %v363_v19  ;;  %6636 = vmatprep.subr.bf16.mxu1 %v6635_v14  ;;  %v366_v24 = vld [vmem:[%s7254_s29 + $0x18] sm:$0xff]  ;;  %v367_v25 = vld [vmem:[%s7254_s29 + $0x20] sm:$0xff]  ;;  %v368_v26 = vld [vmem:[%s7254_s29 + $0x28] sm:$0xff] }
  0x15   : > { %6622 = vmatpush3.bf16.msra.mxu0 %v6619_v5  ;;  %v369_v27 = vld [vmem:[%s7254_s29 + $0x30] sm:$0xff]  ;;  %v370_v28 = vld [vmem:[%s7254_s29 + $0x38] sm:$0xff]  ;;  %v371_v29 = vld [vmem:[%s7254_s29 + $0x40] sm:$0xff] }
  0x16   : > { %6624 = vmatprep.subr.bf16.mxu0 %v6623_v13  ;;  %v372_v30 = vld [vmem:[%s7254_s29 + $0x48] sm:$0xff]  ;;  %v373_v31 = vld [vmem:[%s7254_s29 + $0x50] sm:$0xff]  ;;  %v374_v32 = vld [vmem:[%s7254_s29 + $0x58] sm:$0xff] }
  0x17   : > { %6638 = vmatpush3.bf16.msra.mxu1 %v6635_v14  ;;  %v375_v33 = vld [vmem:[%s7254_s29 + $0x60] sm:$0xff]  ;;  %v376_v34 = vld [vmem:[%s7254_s29 + $0x68] sm:$0xff]  ;;  %v377_v35 = vld [vmem:[%s7254_s29 + $0x70] sm:$0xff] }
  0x18   : > { %6640 = vmatprep.subr.bf16.mxu1 %v6639_v20  ;;  %v378_v36 = vld [vmem:[%s7254_s29 + $0x78] sm:$0xff]  ;;  %v4796_v42 = vld [vmem:[%s9071_s1 + $0x90] sm:$0xff]  ;;  %v4798_v46 = vld [vmem:[%s9071_s1 + $0xa0] sm:$0xff] }
  0x19   : > { %6626 = vmatpush3.bf16.msra.mxu0 %v6623_v13  ;;  %v4797_v44 = vld [vmem:[%s9071_s1 + $0x98] sm:$0xff]  ;;  %v4799_v47 = vld [vmem:[%s9071_s1 + $0xa8] sm:$0xff]  ;;  %v4800_v49 = vld [vmem:[%s9071_s1 + $0xb0] sm:$0xff] }
  0x1a   : > { %6628 = vmatprep.subr.bf16.mxu0 %v6627_v21  ;;  %v6651_v45 = vpack.c.bf16 %v4797_v44, %v4796_v42  ;;  %v6655_v48 = vpack.c.bf16 %v4799_v47, %v4798_v46  ;;  %v4801_v50 = vld [vmem:[%s9071_s1 + $0xb8] sm:$0xff]  ;;  %v4751_v52 = vld [vmem:[%s9072_s2] ss:$0 sm:$0xff]  ;;  %v4837_v38 = vld [vmem:[%s9073_s3 + $0x28] sm:$0xff] }
  0x1b   : > { %6642 = vmatpush3.bf16.msra.mxu1 %v6639_v20  ;;  %v6659_v51 = vpack.c.bf16 %v4801_v50, %v4800_v49  ;;  %v4836_v37 = vld [vmem:[%s9073_s3 + $0x20] sm:$0xff]  ;;  %v1251_v41 = vld [vmem:[%s9073_s3 + $0x8] sm:$0xff]  ;;  %v4839_v49 = vld [vmem:[%s9073_s3 + $0x38] sm:$0xff] }
  0x1c   : > { %6644 = vmatprep.subr.bf16.mxu1 %v6643_v39  ;;  %v1250_v40 = vld [vmem:[%s9073_s3] sm:$0xff] }
  0x1d   : > { %6630 = vmatpush3.bf16.msra.mxu0 %v6627_v21  ;;  %v6663_v42 = vpack.c.bf16 %v1251_v41, %v1250_v40 }
  0x1e   : > { %6648 = vmatprep.subr.bf16.mxu0 %v6647_v43 }
  0x1f   : > { %6646 = vmatpush3.bf16.msra.mxu1 %v6643_v39  ;;  %v6671_v39 = vpack.c.bf16 %v4837_v38, %v4836_v37  ;;  %v7407_v37 = vld [vmem:[%s9072_s2 + $0x2] ss:$0 sm:$0xff] }
  0x20   : > { %5712 = vmatmul.mubr.msk.f32.vlgmr.msra.gmra.mrb[0].mxu0 %vm394_vm0, %v364_v22  ;;  %6664 = vmatprep.subr.bf16.mxu1 %v6663_v42 }
  0x21   : > { %5714 = vmatprep.mubr.msk.f32.mxu0 %vm394_vm0, %v365_v23  ;;  %6650 = vmatpush3.bf16.msra.mxu0 %v6647_v43  ;;  %v7352_v43 = vld [vmem:[%s9072_s2 + $0x1] ss:$0 sm:$0xff] }
  0x22   : > { %6652 = vmatprep.subr.bf16.mxu0 %v6651_v45 }
  0x24   : > { %5715 = vmatmul.mubr.msk.f32.gmra.mrb[2].mxu0 %vm394_vm0, %v366_v24 }
  0x25   : > { %5717 = vmatprep.mubr.msk.f32.mxu0 %vm394_vm0, %v367_v25  ;;  %6654 = vmatpush3.bf16.msra.mxu0 %v6651_v45 }
  0x26   : > { %6656 = vmatprep.subr.bf16.mxu0 %v6655_v48 }
  0x28   : > { %5718 = vmatmul.mubr.msk.f32.gmra.mrb[4].mxu0 %vm394_vm0, %v368_v26 }
  0x29   : > { %5720 = vmatprep.mubr.msk.f32.mxu0 %vm394_vm0, %v369_v27  ;;  %6658 = vmatpush3.bf16.msra.mxu0 %v6655_v48  ;;  %v4838_v48 = vld [vmem:[%s9073_s3 + $0x30] sm:$0xff] }
  0x2a   : > { %6660 = vmatprep.subr.bf16.mxu0 %v6659_v51 }
  0x2c   : > { %5721 = vmatmul.mubr.msk.f32.gmra.mrb[6].mxu0 %vm394_vm0, %v370_v28 }
  0x2d   : > { %5723 = vmatprep.mubr.msk.f32.mxu0 %vm394_vm0, %v371_v29  ;;  %6662 = vmatpush3.bf16.msra.mxu0 %v6659_v51 }
  0x2e   : > { %6672 = vmatprep.subr.bf16.mxu0 %v6671_v39 }
  0x30   : > { %5724 = vmatmul.mubr.msk.f32.gmra.mrb[8].mxu0 %vm394_vm0, %v372_v30 }
  0x31   : > { %5726 = vmatprep.mubr.msk.f32.mxu0 %vm394_vm0, %v373_v31 }
  0x34   : > { %5727 = vmatmul.mubr.msk.f32.gmra.mrb[10].mxu0 %vm394_vm0, %v374_v32 }
  0x35   : > { %5729 = vmatprep.mubr.msk.f32.mxu0 %vm394_vm0, %v375_v33 }
  0x38   : > { %5730 = vmatmul.mubr.msk.f32.gmra.mrb[12].mxu0 %vm394_vm0, %v376_v34 }
  0x39   : > { %5732 = vmatprep.mubr.msk.f32.mxu0 %vm394_vm0, %v377_v35 }
  0x3c   : > { %5733 = vmatmul.mubr.msk.f32.gmra.mrb[14].mxu0 %vm394_vm0, %v378_v36 }
  0xf3   : > { %v5713_v53 = vpop.f32.mrb[0].mxu0 }
  0xf4   : > { %v515_v54 = vadd.f32 %v5713_v53, %v4751_v52  ;;  %v509_v55 = vpop.f32.mrb[1].mxu0 }
  0xf5   : > { %v510_v56 = vadd.f32 %v4751_v52, %v509_v55  ;;  %v6675_v55 = vpack.c.bf16 %v4839_v49, %v4838_v48 }
  0xf6   : > { %v589_v59 = vmax.f32 %v515_v54, 0.0 }
  0xf7   : > { %v588_v57 = vmax.f32 %v510_v56, 0.0  ;;  %v5716_v58 = vpop.f32.mrb[2].mxu0 }
  0xf8   : > { %v525_v60 = vadd.f32 %v5716_v58, %v4751_v52  ;;  %v519_v61 = vpop.f32.mrb[3].mxu0 }
  0xf9   : > { %v520_v62 = vadd.f32 %v4751_v52, %v519_v61  ;;  %5751 = vmatprep.mubr.msk.f32.mxu1 %vm394_vm0, %v588_v57 }
  0xfa   : > { %5752 = vmatmul.mubr.msk.f32.vlgmr.msra.gmra.mrb[0].mxu1 %vm394_vm0, %v589_v59  ;;  %v591_v1 = vmax.f32 %v525_v60, 0.0 }
  0xfb   : > { %v590_v63 = vmax.f32 %v520_v62, 0.0  ;;  %v5719_v0 = vpop.f32.mrb[4].mxu0  ;;  %6666 = vmatpush3.bf16.msra.mxu1 %v6663_v42  ;;  %v4874_v42 = vld [vmem:[%s9073_s3 + $0x50] sm:$0xff] }
  0xfc   : > { %v535_v2 = vadd.f32 %v5719_v0, %v4751_v52  ;;  %v529_v3 = vpop.f32.mrb[5].mxu0 }
  0xfd   : > { %v530_v4 = vadd.f32 %v4751_v52, %v529_v3  ;;  %5754 = vmatprep.mubr.msk.f32.mxu1 %vm394_vm0, %v590_v63 }
  0xfe   : > { %5755 = vmatmul.mubr.msk.f32.gmra.mrb[2].mxu1 %vm394_vm0, %v591_v1  ;;  %v593_v7 = vmax.f32 %v535_v2, 0.0 }
  0xff   : > { %v592_v5 = vmax.f32 %v530_v4, 0.0  ;;  %v5722_v6 = vpop.f32.mrb[6].mxu0 }
 0x100   : > { %v545_v8 = vadd.f32 %v5722_v6, %v4751_v52  ;;  %v539_v9 = vpop.f32.mrb[7].mxu0 }
 0x101   : > { %v540_v10 = vadd.f32 %v4751_v52, %v539_v9  ;;  %5757 = vmatprep.mubr.msk.f32.mxu1 %vm394_vm0, %v592_v5 }
 0x102   : > { %5758 = vmatmul.mubr.msk.f32.gmra.mrb[4].mxu1 %vm394_vm0, %v593_v7  ;;  %v595_v13 = vmax.f32 %v545_v8, 0.0 }
 0x103   : > { %v594_v11 = vmax.f32 %v540_v10, 0.0  ;;  %v5725_v12 = vpop.f32.mrb[8].mxu0 }
 0x104   : > { %v555_v14 = vadd.f32 %v5725_v12, %v4751_v52  ;;  %v549_v15 = vpop.f32.mrb[9].mxu0 }
 0x105   : > { %v550_v16 = vadd.f32 %v4751_v52, %v549_v15  ;;  %5760 = vmatprep.mubr.msk.f32.mxu1 %vm394_vm0, %v594_v11 }
 0x106   : > { %5761 = vmatmul.mubr.msk.f32.gmra.mrb[6].mxu1 %vm394_vm0, %v595_v13  ;;  %v597_v19 = vmax.f32 %v555_v14, 0.0 }
 0x107   : > { %v596_v17 = vmax.f32 %v550_v16, 0.0  ;;  %v5728_v18 = vpop.f32.mrb[10].mxu0 }
 0x108   : > { %v565_v20 = vadd.f32 %v5728_v18, %v4751_v52  ;;  %v559_v21 = vpop.f32.mrb[11].mxu0 }
 0x109   : > { %v560_v22 = vadd.f32 %v4751_v52, %v559_v21  ;;  %5763 = vmatprep.mubr.msk.f32.mxu1 %vm394_vm0, %v596_v17 }
 0x10a   : > { %5764 = vmatmul.mubr.msk.f32.gmra.mrb[8].mxu1 %vm394_vm0, %v597_v19  ;;  %v599_v25 = vmax.f32 %v565_v20, 0.0 }
 0x10b   : > { %v598_v23 = vmax.f32 %v560_v22, 0.0  ;;  %v5731_v24 = vpop.f32.mrb[12].mxu0 }
 0x10c   : > { %v575_v26 = vadd.f32 %v5731_v24, %v4751_v52  ;;  %v569_v27 = vpop.f32.mrb[13].mxu0 }
 0x10d   : > { %v570_v28 = vadd.f32 %v4751_v52, %v569_v27  ;;  %5766 = vmatprep.mubr.msk.f32.mxu1 %vm394_vm0, %v598_v23 }
 0x10e   : > { %5767 = vmatmul.mubr.msk.f32.gmra.mrb[10].mxu1 %vm394_vm0, %v599_v25  ;;  %v601_v31 = vmax.f32 %v575_v26, 0.0 }
 0x10f   : > { %v600_v29 = vmax.f32 %v570_v28, 0.0  ;;  %v5734_v30 = vpop.f32.mrb[14].mxu0 }
 0x110   : > { %v585_v32 = vadd.f32 %v5734_v30, %v4751_v52  ;;  %v579_v33 = vpop.f32.mrb[15].mxu0 }
 0x111   : > { %v580_v34 = vadd.f32 %v4751_v52, %v579_v33  ;;  %5769 = vmatprep.mubr.msk.f32.mxu1 %vm394_vm0, %v600_v29 }
 0x112   : > { %5770 = vmatmul.mubr.msk.f32.gmra.mrb[12].mxu1 %vm394_vm0, %v601_v31  ;;  %v603_v36 = vmax.f32 %v585_v32, 0.0  ;;  %v1252_v31 = vld [vmem:[%s9073_s3 + $0x10] sm:$0xff]  ;;  %v1253_v32 = vld [vmem:[%s9073_s3 + $0x18] sm:$0xff] }
 0x113   : > { %v602_v35 = vmax.f32 %v580_v34, 0.0  ;;  %v6667_v33 = vpack.c.bf16 %v1253_v32, %v1252_v31  ;;  %v4872_v34 = vld [vmem:[%s9073_s3 + $0x40] sm:$0xff]  ;;  %v4981_v31 = vld [vmem:[%s9073_s3 + $0xa8] sm:$0xff]  ;;  %v4862_v32 = vld [vmem:[%s9074_s4 + $0xb0] sm:$0xff] }
 0x115   : > { %5772 = vmatprep.mubr.msk.f32.mxu1 %vm394_vm0, %v602_v35  ;;  %6668 = vmatprep.subr.bf16.mxu1 %v6667_v33  ;;  %v4873_v35 = vld [vmem:[%s9073_s3 + $0x48] sm:$0xff] }
 0x116   : > { %5773 = vmatmul.mubr.msk.f32.gmra.mrb[14].mxu1 %vm394_vm0, %v603_v36  ;;  %v6743_v36 = vpack.c.bf16 %v4873_v35, %v4872_v34 }
 0x117   : > { %6670 = vmatpush3.bf16.msra.mxu1 %v6667_v33  ;;  %v4863_v33 = vld [vmem:[%s9074_s4 + $0xb8] sm:$0xff] }
 0x118   : > { %v6691_v34 = vpack.c.bf16 %v4863_v33, %v4862_v32 }
 0x1cd   : > { %v5753_v44 = vpop.f32.mrb[0].mxu1 }
 0x1ce   : > { %v741_v45 = vadd.f32 %v5753_v44, %v7352_v43  ;;  %v735_v46 = vpop.f32.mrb[1].mxu1 }
 0x1cf   : > { %v736_v47 = vadd.f32 %v7352_v43, %v735_v46 }
 0x1d0   : > { %v815_v52 = vmax.f32 %v741_v45, 0.0 }
 0x1d1   : > { %v814_v50 = vmax.f32 %v736_v47, 0.0  ;;  %v5756_v51 = vpop.f32.mrb[2].mxu1 }
 0x1d2   : > { %v751_v53 = vadd.f32 %v5756_v51, %v7352_v43  ;;  %v745_v54 = vpop.f32.mrb[3].mxu1 }
 0x1d3   : > { %v746_v56 = vadd.f32 %v7352_v43, %v745_v54  ;;  %5791 = vmatprep.mubr.msk.f32.mxu0 %vm394_vm0, %v814_v50  ;;  %v4909_v54 = vld [vmem:[%s9073_s3 + $0x68] sm:$0xff] }
 0x1d4   : > { %5792 = vmatmul.mubr.msk.f32.vlgmr.msra.gmra.mrb[16].mxu0 %vm394_vm0, %v815_v52  ;;  %v817_v59 = vmax.f32 %v751_v53, 0.0  ;;  %v4908_v53 = vld [vmem:[%s9073_s3 + $0x60] sm:$0xff] }
 0x1d5   : > { %v816_v57 = vmax.f32 %v746_v56, 0.0  ;;  %v5759_v58 = vpop.f32.mrb[4].mxu1  ;;  %6674 = vmatpush3.bf16.msra.mxu0 %v6671_v39 }
 0x1d6   : > { %v761_v60 = vadd.f32 %v5759_v58, %v7352_v43  ;;  %v755_v61 = vpop.f32.mrb[5].mxu1  ;;  %6676 = vmatprep.subr.bf16.mxu0 %v6675_v55  ;;  %v6783_v58 = vpack.c.bf16 %v4909_v54, %v4908_v53  ;;  %v1447_v54 = vld [vmem:[%s9074_s4] sm:$0xff] }
 0x1d7   : > { %v756_v62 = vadd.f32 %v7352_v43, %v755_v61  ;;  %5794 = vmatprep.mubr.msk.f32.mxu0 %vm394_vm0, %v816_v57 }
 0x1d8   : > { %5795 = vmatmul.mubr.msk.f32.gmra.mrb[18].mxu0 %vm394_vm0, %v817_v59  ;;  %v819_v1 = vmax.f32 %v761_v60, 0.0 }
 0x1d9   : > { %v818_v63 = vmax.f32 %v756_v62, 0.0  ;;  %v5762_v0 = vpop.f32.mrb[6].mxu1  ;;  %6678 = vmatpush3.bf16.msra.mxu0 %v6675_v55 }
 0x1da   : > { %v771_v2 = vadd.f32 %v5762_v0, %v7352_v43  ;;  %v765_v3 = vpop.f32.mrb[7].mxu1  ;;  %6744 = vmatprep.subr.bf16.mxu0 %v6743_v36 }
 0x1db   : > { %v766_v4 = vadd.f32 %v7352_v43, %v765_v3  ;;  %5797 = vmatprep.mubr.msk.f32.mxu0 %vm394_vm0, %v818_v63 }
 0x1dc   : > { %5798 = vmatmul.mubr.msk.f32.gmra.mrb[20].mxu0 %vm394_vm0, %v819_v1  ;;  %v821_v7 = vmax.f32 %v771_v2, 0.0 }
 0x1dd   : > { %v820_v5 = vmax.f32 %v766_v4, 0.0  ;;  %v5765_v6 = vpop.f32.mrb[8].mxu1 }
 0x1de   : > { %v781_v8 = vadd.f32 %v5765_v6, %v7352_v43  ;;  %v775_v9 = vpop.f32.mrb[9].mxu1 }
 0x1df   : > { %v776_v10 = vadd.f32 %v7352_v43, %v775_v9  ;;  %5800 = vmatprep.mubr.msk.f32.mxu0 %vm394_vm0, %v820_v5 }
 0x1e0   : > { %5801 = vmatmul.mubr.msk.f32.gmra.mrb[22].mxu0 %vm394_vm0, %v821_v7  ;;  %v823_v13 = vmax.f32 %v781_v8, 0.0 }
 0x1e1   : > { %v822_v11 = vmax.f32 %v776_v10, 0.0  ;;  %v5768_v12 = vpop.f32.mrb[10].mxu1 }
 0x1e2   : > { %v791_v14 = vadd.f32 %v5768_v12, %v7352_v43  ;;  %v785_v15 = vpop.f32.mrb[11].mxu1  ;;  %v4910_v12 = vld [vmem:[%s9073_s3 + $0x70] sm:$0xff] }
 0x1e3   : > { %v786_v16 = vadd.f32 %v7352_v43, %v785_v15  ;;  %5803 = vmatprep.mubr.msk.f32.mxu0 %vm394_vm0, %v822_v11  ;;  %v4944_v15 = vld [vmem:[%s9073_s3 + $0x80] sm:$0xff] }
 0x1e4   : > { %5804 = vmatmul.mubr.msk.f32.gmra.mrb[24].mxu0 %vm394_vm0, %v823_v13  ;;  %v825_v19 = vmax.f32 %v791_v14, 0.0  ;;  %v4911_v13 = vld [vmem:[%s9073_s3 + $0x78] sm:$0xff] }
 0x1e5   : > { %v824_v17 = vmax.f32 %v786_v16, 0.0  ;;  %v5771_v18 = vpop.f32.mrb[12].mxu1  ;;  %v6787_v14 = vpack.c.bf16 %v4911_v13, %v4910_v12  ;;  %v4945_v16 = vld [vmem:[%s9073_s3 + $0x88] sm:$0xff] }
 0x1e6   : > { %v801_v20 = vadd.f32 %v5771_v18, %v7352_v43  ;;  %v795_v21 = vpop.f32.mrb[13].mxu1  ;;  %v4856_v18 = vld [vmem:[%s9074_s4 + $0x80] sm:$0xff] }
 0x1e7   : > { %v796_v22 = vadd.f32 %v7352_v43, %v795_v21  ;;  %5806 = vmatprep.mubr.msk.f32.mxu0 %vm394_vm0, %v824_v17  ;;  %v6823_v17 = vpack.c.bf16 %v4945_v16, %v4944_v15  ;;  %v4858_v21 = vld [vmem:[%s9074_s4 + $0x90] sm:$0xff]  ;;  %v5019_v16 = vld [vmem:[%s9073_s3 + $0xd8] sm:$0xff] }
 0x1e8   : > { %5807 = vmatmul.mubr.msk.f32.gmra.mrb[26].mxu0 %vm394_vm0, %v825_v19  ;;  %v827_v25 = vmax.f32 %v801_v20, 0.0  ;;  %v4857_v19 = vld [vmem:[%s9074_s4 + $0x88] sm:$0xff]  ;;  %v5018_v15 = vld [vmem:[%s9073_s3 + $0xd0] sm:$0xff] }
 0x1e9   : > { %v826_v23 = vmax.f32 %v796_v22, 0.0  ;;  %v5774_v24 = vpop.f32.mrb[14].mxu1  ;;  %v6679_v20 = vpack.c.bf16 %v4857_v19, %v4856_v18  ;;  %v4859_v22 = vld [vmem:[%s9074_s4 + $0x98] sm:$0xff]  ;;  %v6907_v19 = vpack.c.bf16 %v5019_v16, %v5018_v15 }
 0x1ea   : > { %v811_v26 = vadd.f32 %v5774_v24, %v7352_v43  ;;  %v805_v27 = vpop.f32.mrb[15].mxu1  ;;  %v4946_v24 = vld [vmem:[%s9073_s3 + $0x90] sm:$0xff] }
 0x1eb   : > { %v806_v28 = vadd.f32 %v7352_v43, %v805_v27  ;;  %5809 = vmatprep.mubr.msk.f32.mxu0 %vm394_vm0, %v826_v23  ;;  %v4875_v43 = vld [vmem:[%s9073_s3 + $0x58] sm:$0xff]  ;;  %6680 = vmatprep.subr.bf16.mxu1 %v6679_v20  ;;  %v6683_v23 = vpack.c.bf16 %v4859_v22, %v4858_v21  ;;  %v4861_v27 = vld [vmem:[%s9074_s4 + $0xa8] sm:$0xff] }
 0x1ec   : > { %5810 = vmatmul.mubr.msk.f32.gmra.mrb[28].mxu0 %vm394_vm0, %v827_v25  ;;  %v829_v30 = vmax.f32 %v811_v26, 0.0  ;;  %v6747_v47 = vpack.c.bf16 %v4875_v43, %v4874_v42  ;;  %v4947_v25 = vld [vmem:[%s9073_s3 + $0x98] sm:$0xff]  ;;  %v4860_v26 = vld [vmem:[%s9074_s4 + $0xa0] sm:$0xff]  ;;  %v5053_v21 = vld [vmem:[%s9073_s3 + $0xe8] sm:$0xff] }
 0x1ed   : > { %v828_v29 = vmax.f32 %v806_v28, 0.0  ;;  %v6687_v28 = vpack.c.bf16 %v4861_v27, %v4860_v26  ;;  %v4867_v42 = vld [vmem:[%s9074_s4 + $0xd8] sm:$0xff] }
 0x1ef   : > { %5812 = vmatprep.mubr.msk.f32.mxu0 %vm394_vm0, %v828_v29  ;;  %v6827_v29 = vpack.c.bf16 %v4947_v25, %v4946_v24 }
 0x1f0   : > { %5813 = vmatmul.mubr.msk.f32.gmra.mrb[30].mxu0 %vm394_vm0, %v829_v30  ;;  %v4980_v30 = vld [vmem:[%s9073_s3 + $0xa0] sm:$0xff] }
 0x1f1   : > { %v7691_v35 = vpack.c.bf16 %v4981_v31, %v4980_v30 }
 0x2a7   : > { %v5793_v38 = vpop.f32.mrb[16].mxu0 }
 0x2a8   : > { %v7410_v39 = vadd.f32 %v5793_v38, %v7407_v37  ;;  %v961_v40 = vpop.f32.mrb[17].mxu0 }
 0x2a9   : > { %v7413_v41 = vadd.f32 %v7407_v37, %v961_v40  ;;  %v4866_v40 = vld [vmem:[%s9074_s4 + $0xd0] sm:$0xff] }
 0x2aa   : > { %1106 = vrot.lane.b32.xlu1 %v7410_v39, %s7138_s25  ;;  %1058 = vrot.lane.b32.xlu0 %v7410_v39, %s7139_s26  ;;  %v6699_v43 = vpack.c.bf16 %v4867_v42, %v4866_v40 }
 0x2ab   : > { %v5796_v44 = vpop.f32.mrb[18].mxu0  ;;  %5823 = vmatprep.mubr.msk.f32.mxu1 %vm1200_vm1, %v7413_v41  ;;  %5855 = vmatprep.mubr.msk.f32.mxu0 %vm1200_vm1, %v7413_v41 }
 0x2ac   : > { %v971_v45 = vpop.f32.mrb[19].mxu0  ;;  %5824 = vmatmul.mubr.msk.f32.vlgmr.msra.gmra.mrb[16].mxu1 %vm1200_vm1, %v7410_v39  ;;  %5856 = vmatmul.mubr.msk.f32.vlgmr.msra.gmra.mrb[32].mxu0 %vm1200_vm1, %v7410_v39  ;;  %v7437_v48 = vadd.f32 %v5796_v44, %v7407_v37  ;;  %v4868_v44 = vld [vmem:[%s9074_s4 + $0xe0] sm:$0xff] }
 0x2ad   : > { %v7434_v46 = vadd.f32 %v7407_v37, %v971_v45  ;;  %6746 = vmatpush3.bf16.msra.mxu0 %v6743_v36  ;;  %6682 = vmatpush3.bf16.msra.mxu1 %v6679_v20  ;;  %v4864_v36 = vld [vmem:[%s9074_s4 + $0xc0] sm:$0xff]  ;;  %v4869_v45 = vld [vmem:[%s9074_s4 + $0xe8] sm:$0xff] }
 0x2ae   : > { %1154 = vrot.lane.b32.xlu1 %v7410_v39, %s7140_s11  ;;  %1056 = vrot.lane.b32.xlu0 %v7413_v41, %s7139_s26  ;;  %v5052_v20 = vld [vmem:[%s9073_s3 + $0xe0] sm:$0xff] }
 0x2af   : > { %v5799_v49 = vpop.f32.mrb[20].mxu0  ;;  %5826 = vmatprep.mubr.msk.f32.mxu1 %vm1200_vm1, %v7434_v46  ;;  %5858 = vmatprep.mubr.msk.f32.mxu0 %vm1200_vm1, %v7434_v46  ;;  %v6943_v24 = vpack.c.bf16 %v5053_v21, %v5052_v20 }
 0x2b0   : > { %v981_v50 = vpop.f32.mrb[21].mxu0  ;;  %5827 = vmatmul.mubr.msk.f32.gmra.mrb[18].mxu1 %vm1200_vm1, %v7437_v48  ;;  %5859 = vmatmul.mubr.msk.f32.gmra.mrb[34].mxu0 %vm1200_vm1, %v7437_v48  ;;  %v7455_v52 = vadd.f32 %v5799_v49, %v7407_v37  ;;  %v4870_v49 = vld [vmem:[%s9074_s4 + $0xf0] sm:$0xff] }
 0x2b1   : > { %v7452_v51 = vadd.f32 %v7407_v37, %v981_v50  ;;  %6748 = vmatprep.subr.bf16.mxu0 %v6747_v47  ;;  %6684 = vmatprep.subr.bf16.mxu1 %v6683_v23  ;;  %v4871_v50 = vld [vmem:[%s9074_s4 + $0xf8] sm:$0xff] }
 0x2b2   : > { %1104 = vrot.lane.b32.xlu1 %v7413_v41, %s7138_s25  ;;  %1152 = vrot.lane.b32.xlu0 %v7413_v41, %s7140_s11  ;;  %v6707_v53 = vpack.c.bf16 %v4871_v50, %v4870_v49 }
 0x2b3   : > { %v5802_v55 = vpop.f32.mrb[22].mxu0  ;;  %5829 = vmatprep.mubr.msk.f32.mxu1 %vm1200_vm1, %v7452_v51  ;;  %5861 = vmatprep.mubr.msk.f32.mxu0 %vm1200_vm1, %v7452_v51 }
 0x2b4   : > { %v991_v56 = vpop.f32.mrb[23].mxu0  ;;  %5830 = vmatmul.mubr.msk.f32.gmra.mrb[20].mxu1 %vm1200_vm1, %v7455_v52  ;;  %5862 = vmatmul.mubr.msk.f32.gmra.mrb[36].mxu0 %vm1200_vm1, %v7455_v52  ;;  %v7479_v59 = vadd.f32 %v5802_v55, %v7407_v37  ;;  %v1448_v55 = vld [vmem:[%s9074_s4 + $0x8] sm:$0xff] }
 0x2b5   : > { %v7476_v57 = vadd.f32 %v7407_v37, %v991_v56  ;;  %6750 = vmatpush3.bf16.msra.mxu0 %v6747_v47  ;;  %6686 = vmatpush3.bf16.msra.mxu1 %v6683_v23  ;;  %v6703_v47 = vpack.c.bf16 %v4869_v45, %v4868_v44  ;;  %v7764_v56 = vpack.c.bf16 %v1448_v55, %v1447_v54 }
 0x2b6   : > { %1062 = vrot.lane.b32.xlu1 %v7437_v48, %s7139_s26  ;;  %1060 = vrot.lane.b32.xlu0 %v7434_v46, %s7139_s26 }
 0x2b7   : > { %v5805_v60 = vpop.f32.mrb[24].mxu0  ;;  %5832 = vmatprep.mubr.msk.f32.mxu1 %vm1200_vm1, %v7476_v57  ;;  %5864 = vmatprep.mubr.msk.f32.mxu0 %vm1200_vm1, %v7476_v57 }
 0x2b8   : > { %v1001_v61 = vpop.f32.mrb[25].mxu0  ;;  %5833 = vmatmul.mubr.msk.f32.gmra.mrb[22].mxu1 %vm1200_vm1, %v7479_v59  ;;  %5865 = vmatmul.mubr.msk.f32.gmra.mrb[38].mxu0 %vm1200_vm1, %v7479_v59  ;;  %v7497_v63 = vadd.f32 %v5805_v60, %v7407_v37  ;;  %v4983_v60 = vld [vmem:[%s9073_s3 + $0xb8] sm:$0xff] }
 0x2b9   : > { %v7494_v62 = vadd.f32 %v7407_v37, %v1001_v61  ;;  %6784 = vmatprep.subr.bf16.mxu0 %v6783_v58  ;;  %6688 = vmatprep.subr.bf16.mxu1 %v6687_v28 }
 0x2ba   : > { %1110 = vrot.lane.b32.xlu1 %v7437_v48, %s7138_s25  ;;  %1108 = vrot.lane.b32.xlu0 %v7434_v46, %s7138_s25 }
 0x2bb   : > { %v5808_v0 = vpop.f32.mrb[26].mxu0  ;;  %5835 = vmatprep.mubr.msk.f32.mxu1 %vm1200_vm1, %v7494_v62  ;;  %5867 = vmatprep.mubr.msk.f32.mxu0 %vm1200_vm1, %v7494_v62 }
 0x2bc   : > { %v1011_v1 = vpop.f32.mrb[27].mxu0  ;;  %5836 = vmatmul.mubr.msk.f32.gmra.mrb[24].mxu1 %vm1200_vm1, %v7497_v63  ;;  %5868 = vmatmul.mubr.msk.f32.gmra.mrb[40].mxu0 %vm1200_vm1, %v7497_v63  ;;  %v7515_v3 = vadd.f32 %v5808_v0, %v7407_v37  ;;  %v5016_v0 = vld [vmem:[%s9073_s3 + $0xc0] sm:$0xff] }
 0x2bd   : > { %v7512_v2 = vadd.f32 %v7407_v37, %v1011_v1  ;;  %6690 = vmatpush3.bf16.msra.mxu1 %v6687_v28  ;;  %v5017_v1 = vld [vmem:[%s9073_s3 + $0xc8] sm:$0xff] }
 0x2be   : > { %1158 = vrot.lane.b32.xlu1 %v7437_v48, %s7140_s11  ;;  %1156 = vrot.lane.b32.xlu0 %v7434_v46, %s7140_s11 }
 0x2bf   : > { %v5811_v4 = vpop.f32.mrb[28].mxu0  ;;  %5838 = vmatprep.mubr.msk.f32.mxu1 %vm1200_vm1, %v7512_v2  ;;  %5870 = vmatprep.mubr.msk.f32.mxu0 %vm1200_vm1, %v7512_v2 }
 0x2c0   : > { %v1021_v5 = vpop.f32.mrb[29].mxu0  ;;  %5839 = vmatmul.mubr.msk.f32.gmra.mrb[26].mxu1 %vm1200_vm1, %v7515_v3  ;;  %5871 = vmatmul.mubr.msk.f32.gmra.mrb[42].mxu0 %vm1200_vm1, %v7515_v3  ;;  %v7533_v7 = vadd.f32 %v5811_v4, %v7407_v37  ;;  %v6903_v4 = vpack.c.bf16 %v5017_v1, %v5016_v0 }
 0x2c1   : > { %v7530_v6 = vadd.f32 %v7407_v37, %v1021_v5  ;;  %6692 = vmatprep.subr.bf16.mxu1 %v6691_v34 }
 0x2c2   : > { %1066 = vrot.lane.b32.xlu1 %v7455_v52, %s7139_s26  ;;  %1064 = vrot.lane.b32.xlu0 %v7452_v51, %s7139_s26 }
 0x2c3   : > { %v5814_v8 = vpop.f32.mrb[30].mxu0  ;;  %5841 = vmatprep.mubr.msk.f32.mxu1 %vm1200_vm1, %v7530_v6  ;;  %5873 = vmatprep.mubr.msk.f32.mxu0 %vm1200_vm1, %v7530_v6 }
 0x2c4   : > { %v1031_v9 = vpop.f32.mrb[31].mxu0  ;;  %5842 = vmatmul.mubr.msk.f32.gmra.mrb[28].mxu1 %vm1200_vm1, %v7533_v7  ;;  %5874 = vmatmul.mubr.msk.f32.gmra.mrb[44].mxu0 %vm1200_vm1, %v7533_v7  ;;  %v7551_v11 = vadd.f32 %v5814_v8, %v7407_v37 }
 0x2c5   : > { %v7548_v10 = vadd.f32 %v7407_v37, %v1031_v9  ;;  %v4865_v37 = vld [vmem:[%s9074_s4 + $0xc8] sm:$0xff]  ;;  %6694 = vmatpush3.bf16.msra.mxu1 %v6691_v34 }
 0x2c6   : > { %1114 = vrot.lane.b32.xlu1 %v7455_v52, %s7138_s25  ;;  %1112 = vrot.lane.b32.xlu0 %v7452_v51, %s7138_s25  ;;  %v6695_v38 = vpack.c.bf16 %v4865_v37, %v4864_v36  ;;  %v5054_v37 = vld [vmem:[%s9073_s3 + $0xf0] sm:$0xff] }
 0x2c7   : > { %5844 = vmatprep.mubr.msk.f32.mxu1 %vm1200_vm1, %v7548_v10  ;;  %5876 = vmatprep.mubr.msk.f32.mxu0 %vm1200_vm1, %v7548_v10 }
 0x2c8   : > { %5845 = vmatmul.mubr.msk.f32.gmra.mrb[30].mxu1 %vm1200_vm1, %v7551_v11  ;;  %5877 = vmatmul.mubr.msk.f32.gmra.mrb[46].mxu0 %vm1200_vm1, %v7551_v11 }
 0x2c9   : > { %5999 = vmatprep.mubr.msk.f32.mxu0 %vm1200_vm1, %v7413_v41  ;;  %6696 = vmatprep.subr.bf16.mxu1 %v6695_v38 }
 0x2ca   : > { %1162 = vrot.lane.b32.xlu1 %v7455_v52, %s7140_s11  ;;  %1160 = vrot.lane.b32.xlu0 %v7452_v51, %s7140_s11 }
 0x2cb   : > { %6698 = vmatpush3.bf16.msra.mxu1 %v6695_v38  ;;  %v5055_v38 = vld [vmem:[%s9073_s3 + $0xf8] sm:$0xff] }
 0x2cc   : > { %6000 = vmatmul.mubr.msk.f32.vlgmr.msra.gmra.mrb[48].mxu0 %vm1200_vm1, %v7410_v39  ;;  %6700 = vmatprep.subr.bf16.mxu1 %v6699_v43  ;;  %v6947_v40 = vpack.c.bf16 %v5055_v38, %v5054_v37  ;;  %v1450_v37 = vld [vmem:[%s9074_s4 + $0x18] sm:$0xff] }
 0x2cd   : > { %6002 = vmatprep.mubr.msk.f32.mxu0 %vm1200_vm1, %v7434_v46  ;;  %6786 = vmatpush3.bf16.msra.mxu0 %v6783_v58  ;;  %v4982_v58 = vld [vmem:[%s9073_s3 + $0xb0] sm:$0xff] }
 0x2ce   : > { %1070 = vrot.lane.b32.xlu1 %v7479_v59, %s7139_s26  ;;  %1068 = vrot.lane.b32.xlu0 %v7476_v57, %s7139_s26  ;;  %v6867_v61 = vpack.c.bf16 %v4983_v60, %v4982_v58 }
 0x2cf   : > { %6788 = vmatprep.subr.bf16.mxu0 %v6787_v14  ;;  %6702 = vmatpush3.bf16.msra.mxu1 %v6699_v43 }
 0x2d0   : > { %6003 = vmatmul.mubr.msk.f32.gmra.mrb[50].mxu0 %vm1200_vm1, %v7437_v48  ;;  %6704 = vmatprep.subr.bf16.mxu1 %v6703_v47 }
 0x2d1   : > { %6005 = vmatprep.mubr.msk.f32.mxu0 %vm1200_vm1, %v7452_v51  ;;  %6790 = vmatpush3.bf16.msra.mxu0 %v6787_v14 }
 0x2d2   : > { %1118 = vrot.lane.b32.xlu1 %v7479_v59, %s7138_s25  ;;  %1116 = vrot.lane.b32.xlu0 %v7476_v57, %s7138_s25 }
 0x2d3   : > { %6824 = vmatprep.subr.bf16.mxu0 %v6823_v17  ;;  %6706 = vmatpush3.bf16.msra.mxu1 %v6703_v47 }
 0x2d4   : > { %6006 = vmatmul.mubr.msk.f32.gmra.mrb[52].mxu0 %vm1200_vm1, %v7455_v52  ;;  %6708 = vmatprep.subr.bf16.mxu1 %v6707_v53 }
 0x2d5   : > { %6008 = vmatprep.mubr.msk.f32.mxu0 %vm1200_vm1, %v7476_v57 }
 0x2d6   : > { %1166 = vrot.lane.b32.xlu1 %v7479_v59, %s7140_s11  ;;  %1164 = vrot.lane.b32.xlu0 %v7476_v57, %s7140_s11 }
 0x2d7   : > { %6710 = vmatpush3.bf16.msra.mxu1 %v6707_v53 }
 0x2d8   : > { %6009 = vmatmul.mubr.msk.f32.gmra.mrb[54].mxu0 %vm1200_vm1, %v7479_v59  ;;  %6712 = vmatprep.subr.bf16.mxu1 %v7764_v56 }
 0x2d9   : > { %6011 = vmatprep.mubr.msk.f32.mxu0 %vm1200_vm1, %v7494_v62 }
 0x2da   : > { %1074 = vrot.lane.b32.xlu1 %v7497_v63, %s7139_s26  ;;  %1072 = vrot.lane.b32.xlu0 %v7494_v62, %s7139_s26 }
 0x2dc   : > { %6012 = vmatmul.mubr.msk.f32.gmra.mrb[56].mxu0 %vm1200_vm1, %v7497_v63 }
 0x2dd   : > { %6014 = vmatprep.mubr.msk.f32.mxu0 %vm1200_vm1, %v7512_v2 }
 0x2de   : > { %1122 = vrot.lane.b32.xlu1 %v7497_v63, %s7138_s25  ;;  %1120 = vrot.lane.b32.xlu0 %v7494_v62, %s7138_s25 }
 0x2e0   : > { %6015 = vmatmul.mubr.msk.f32.gmra.mrb[58].mxu0 %vm1200_vm1, %v7515_v3 }
 0x2e1   : > { %6017 = vmatprep.mubr.msk.f32.mxu0 %vm1200_vm1, %v7530_v6 }
 0x2e2   : > { %1170 = vrot.lane.b32.xlu1 %v7497_v63, %s7140_s11  ;;  %1168 = vrot.lane.b32.xlu0 %v7494_v62, %s7140_s11 }
 0x2e4   : > { %6018 = vmatmul.mubr.msk.f32.gmra.mrb[60].mxu0 %vm1200_vm1, %v7533_v7 }
 0x2e5   : > { %6020 = vmatprep.mubr.msk.f32.mxu0 %vm1200_vm1, %v7548_v10 }
 0x2e6   : > { %1078 = vrot.lane.b32.xlu1 %v7515_v3, %s7139_s26  ;;  %1076 = vrot.lane.b32.xlu0 %v7512_v2, %s7139_s26 }
 0x2e8   : > { %6021 = vmatmul.mubr.msk.f32.gmra.mrb[62].mxu0 %vm1200_vm1, %v7551_v11 }
 0x2e9   : > { %6087 = vmatprep.mubr.msk.f32.mxu0 %vm1200_vm1, %v7413_v41 }
 0x2ea   : > { %1126 = vrot.lane.b32.xlu1 %v7515_v3, %s7138_s25  ;;  %1124 = vrot.lane.b32.xlu0 %v7512_v2, %s7138_s25 }
 0x2ec   : > { %6088 = vmatmul.mubr.msk.f32.vlgmr.msra.gmra.mrb[64].mxu0 %vm1200_vm1, %v7410_v39 }
 0x2ed   : > { %6090 = vmatprep.mubr.msk.f32.mxu0 %vm1200_vm1, %v7434_v46  ;;  %6826 = vmatpush3.bf16.msra.mxu0 %v6823_v17 }
 0x2ee   : > { %1174 = vrot.lane.b32.xlu1 %v7515_v3, %s7140_s11  ;;  %1172 = vrot.lane.b32.xlu0 %v7512_v2, %s7140_s11 }
 0x2ef   : > { %6828 = vmatprep.subr.bf16.mxu0 %v6827_v29 }
 0x2f0   : > { %6091 = vmatmul.mubr.msk.f32.gmra.mrb[66].mxu0 %vm1200_vm1, %v7437_v48 }
 0x2f1   : > { %6093 = vmatprep.mubr.msk.f32.mxu0 %vm1200_vm1, %v7452_v51  ;;  %6830 = vmatpush3.bf16.msra.mxu0 %v6827_v29 }
 0x2f2   : > { %1082 = vrot.lane.b32.xlu1 %v7533_v7, %s7139_s26  ;;  %1080 = vrot.lane.b32.xlu0 %v7530_v6, %s7139_s26 }
 0x2f3   : > { %6864 = vmatprep.subr.bf16.mxu0 %v7691_v35 }
 0x2f4   : > { %6094 = vmatmul.mubr.msk.f32.gmra.mrb[68].mxu0 %vm1200_vm1, %v7455_v52 }
 0x2f5   : > { %6096 = vmatprep.mubr.msk.f32.mxu0 %vm1200_vm1, %v7476_v57 }
 0x2f6   : > { %1130 = vrot.lane.b32.xlu1 %v7533_v7, %s7138_s25  ;;  %1128 = vrot.lane.b32.xlu0 %v7530_v6, %s7138_s25 }
 0x2f8   : > { %6097 = vmatmul.mubr.msk.f32.gmra.mrb[70].mxu0 %vm1200_vm1, %v7479_v59 }
 0x2f9   : > { %6099 = vmatprep.mubr.msk.f32.mxu0 %vm1200_vm1, %v7494_v62 }
 0x2fa   : > { %1178 = vrot.lane.b32.xlu1 %v7533_v7, %s7140_s11  ;;  %1176 = vrot.lane.b32.xlu0 %v7530_v6, %s7140_s11 }
 0x2fc   : > { %6100 = vmatmul.mubr.msk.f32.gmra.mrb[72].mxu0 %vm1200_vm1, %v7497_v63 }
 0x2fd   : > { %6102 = vmatprep.mubr.msk.f32.mxu0 %vm1200_vm1, %v7512_v2 }
 0x2fe   : > { %1086 = vrot.lane.b32.xlu1 %v7551_v11, %s7139_s26  ;;  %1084 = vrot.lane.b32.xlu0 %v7548_v10, %s7139_s26 }
 0x300   : > { %6103 = vmatmul.mubr.msk.f32.gmra.mrb[74].mxu0 %vm1200_vm1, %v7515_v3 }
 0x301   : > { %6105 = vmatprep.mubr.msk.f32.mxu0 %vm1200_vm1, %v7530_v6 }
 0x302   : > { %1134 = vrot.lane.b32.xlu1 %v7551_v11, %s7138_s25  ;;  %1132 = vrot.lane.b32.xlu0 %v7548_v10, %s7138_s25  ;;  %s9033_s25 = scalar_lea.vmem %s9080_s10, %s4748_s17 }
 0x304   : > { %6106 = vmatmul.mubr.msk.f32.gmra.mrb[76].mxu0 %vm1200_vm1, %v7533_v7 }
 0x305   : > { %6108 = vmatprep.mubr.msk.f32.mxu0 %vm1200_vm1, %v7548_v10 }
 0x306   : > { %1182 = vrot.lane.b32.xlu1 %v7551_v11, %s7140_s11  ;;  %1180 = vrot.lane.b32.xlu0 %v7548_v10, %s7140_s11 }
 0x308   : > { %6109 = vmatmul.mubr.msk.f32.gmra.mrb[78].mxu0 %vm1200_vm1, %v7551_v11 }
 0x309   : > { %6175 = vmatprep.mubr.msk.f32.mxu0 %vm1200_vm1, %v7413_v41 }
 0x30c   : > { %6176 = vmatmul.mubr.msk.f32.vlgmr.msra.gmra.mrb[80].mxu0 %vm1200_vm1, %v7410_v39 }
 0x30d   : > { %6178 = vmatprep.mubr.msk.f32.mxu0 %vm1200_vm1, %v7434_v46  ;;  %6866 = vmatpush3.bf16.msra.mxu0 %v7691_v35 }
 0x30e   : > { %6868 = vmatprep.subr.bf16.mxu0 %v6867_v61 }
 0x310   : > { %6179 = vmatmul.mubr.msk.f32.gmra.mrb[82].mxu0 %vm1200_vm1, %v7437_v48 }
 0x311   : > { %6181 = vmatprep.mubr.msk.f32.mxu0 %vm1200_vm1, %v7452_v51  ;;  %6870 = vmatpush3.bf16.msra.mxu0 %v6867_v61 }
 0x312   : > { %6904 = vmatprep.subr.bf16.mxu0 %v6903_v4 }
 0x314   : > { %6182 = vmatmul.mubr.msk.f32.gmra.mrb[84].mxu0 %vm1200_vm1, %v7455_v52 }
 0x315   : > { %6184 = vmatprep.mubr.msk.f32.mxu0 %vm1200_vm1, %v7476_v57 }
 0x318   : > { %6185 = vmatmul.mubr.msk.f32.gmra.mrb[86].mxu0 %vm1200_vm1, %v7479_v59 }
 0x319   : > { %6187 = vmatprep.mubr.msk.f32.mxu0 %vm1200_vm1, %v7494_v62 }
 0x31c   : > { %v7808_v5 = vpop.permute.xlu1 %1106  ;;  %v7810_v8 = vpop.permute.xlu0 %1058  ;;  %6188 = vmatmul.mubr.msk.f32.gmra.mrb[88].mxu0 %vm1200_vm1, %v7497_v63 }
 0x31d   : > { %6190 = vmatprep.mubr.msk.f32.mxu0 %vm1200_vm1, %v7512_v2  ;;  %v1202_v20 = vsel %vm1200_vm1, %v7810_v8, %v7410_v39 }
 0x320   : > { %v7816_v9 = vpop.permute.xlu1 %1154  ;;  %v7818_v12 = vpop.permute.xlu0 %1056  ;;  %6191 = vmatmul.mubr.msk.f32.gmra.mrb[90].mxu0 %vm1200_vm1, %v7515_v3 }
 0x321   : > { %6193 = vmatprep.mubr.msk.f32.mxu0 %vm1200_vm1, %v7530_v6  ;;  %v1201_v15 = vsel %vm1200_vm1, %v7818_v12, %v7413_v41  ;;  %v1449_v12 = vld [vmem:[%s9074_s4 + $0x10] sm:$0xff] }
 0x324   : > { %v7824_v13 = vpop.permute.xlu1 %1104  ;;  %v7826_v14 = vpop.permute.xlu0 %1152  ;;  %6194 = vmatmul.mubr.msk.f32.gmra.mrb[92].mxu0 %vm1200_vm1, %v7533_v7 }
 0x325   : > { %6196 = vmatprep.mubr.msk.f32.mxu0 %vm1200_vm1, %v7548_v10  ;;  %v1217_v21 = vsel %vm394_vm0, %v1201_v15, %v7824_v13 }
 0x326   : > { %v8026_v8 = vsel %vm1233_vm2, %v1217_v21, %v7826_v14 }
 0x328   : > { %v7838_v17 = vpop.permute.xlu1 %1062  ;;  %v7840_v18 = vpop.permute.xlu0 %1060  ;;  %6197 = vmatmul.mubr.msk.f32.gmra.mrb[94].mxu0 %vm1200_vm1, %v7551_v11 }
 0x329   : > { %6263 = vmatprep.mubr.msk.f32.mxu0 %vm1200_vm1, %v7413_v41 }
 0x32c   : > { %v7852_v22 = vpop.permute.xlu1 %1110  ;;  %v7854_v23 = vpop.permute.xlu0 %1108  ;;  %6264 = vmatmul.mubr.msk.f32.vlgmr.msra.gmra.mrb[96].mxu0 %vm1200_vm1, %v7410_v39 }
 0x32d   : > { %6266 = vmatprep.mubr.msk.f32.mxu0 %vm1200_vm1, %v7434_v46  ;;  %6906 = vmatpush3.bf16.msra.mxu0 %v6903_v4 }
 0x32e   : > { %6908 = vmatprep.subr.bf16.mxu0 %v6907_v19 }
 0x330   : > { %v7860_v25 = vpop.permute.xlu1 %1158  ;;  %v7862_v26 = vpop.permute.xlu0 %1156  ;;  %6267 = vmatmul.mubr.msk.f32.gmra.mrb[98].mxu0 %vm1200_vm1, %v7437_v48 }
 0x331   : > { %6269 = vmatprep.mubr.msk.f32.mxu0 %vm1200_vm1, %v7452_v51  ;;  %6910 = vmatpush3.bf16.msra.mxu0 %v6907_v19 }
 0x332   : > { %6944 = vmatprep.subr.bf16.mxu0 %v6943_v24 }
 0x334   : > { %v7868_v27 = vpop.permute.xlu1 %1066  ;;  %v7870_v28 = vpop.permute.xlu0 %1064  ;;  %6270 = vmatmul.mubr.msk.f32.gmra.mrb[100].mxu0 %vm1200_vm1, %v7455_v52 }
 0x335   : > { %6272 = vmatprep.mubr.msk.f32.mxu0 %vm1200_vm1, %v7476_v57 }
 0x338   : > { %v7876_v29 = vpop.permute.xlu1 %1114  ;;  %v7878_v30 = vpop.permute.xlu0 %1112  ;;  %6273 = vmatmul.mubr.msk.f32.gmra.mrb[102].mxu0 %vm1200_vm1, %v7479_v59 }
 0x339   : > { %6275 = vmatprep.mubr.msk.f32.mxu0 %vm1200_vm1, %v7494_v62 }
 0x33c   : > { %v7884_v31 = vpop.permute.xlu1 %1162  ;;  %v7886_v32 = vpop.permute.xlu0 %1160  ;;  %6276 = vmatmul.mubr.msk.f32.gmra.mrb[104].mxu0 %vm1200_vm1, %v7497_v63 }
 0x33d   : > { %6278 = vmatprep.mubr.msk.f32.mxu0 %vm1200_vm1, %v7512_v2 }
 0x340   : > { %v7892_v33 = vpop.permute.xlu1 %1070  ;;  %v7894_v34 = vpop.permute.xlu0 %1068  ;;  %6279 = vmatmul.mubr.msk.f32.gmra.mrb[106].mxu0 %vm1200_vm1, %v7515_v3 }
 0x341   : > { %6281 = vmatprep.mubr.msk.f32.mxu0 %vm1200_vm1, %v7530_v6 }
 0x344   : > { %6282 = vmatmul.mubr.msk.f32.gmra.mrb[108].mxu0 %vm1200_vm1, %v7533_v7  ;;  %v7904_v35 = vpop.permute.xlu1 %1118  ;;  %v7906_v36 = vpop.permute.xlu0 %1116 }
 0x345   : > { %6284 = vmatprep.mubr.msk.f32.mxu0 %vm1200_vm1, %v7548_v10 }
 0x348   : > { %6285 = vmatmul.mubr.msk.f32.gmra.mrb[110].mxu0 %vm1200_vm1, %v7551_v11  ;;  %v7918_v42 = vpop.permute.xlu1 %1166  ;;  %v7920_v43 = vpop.permute.xlu0 %1164 }
 0x349   : > { %6351 = vmatprep.mubr.msk.f32.mxu0 %vm1200_vm1, %v7413_v41 }
 0x34c   : > { %6352 = vmatmul.mubr.msk.f32.vlgmr.msra.gmra.mrb[112].mxu0 %vm1200_vm1, %v7410_v39  ;;  %v7930_v44 = vpop.permute.xlu1 %1074  ;;  %v7932_v45 = vpop.permute.xlu0 %1072 }
 0x34d   : > { %6354 = vmatprep.mubr.msk.f32.mxu0 %vm1200_vm1, %v7434_v46  ;;  %6946 = vmatpush3.bf16.msra.mxu0 %v6943_v24 }
 0x34e   : > { %6948 = vmatprep.subr.bf16.mxu0 %v6947_v40 }
 0x350   : > { %6355 = vmatmul.mubr.msk.f32.gmra.mrb[114].mxu0 %vm1200_vm1, %v7437_v48  ;;  %v7938_v47 = vpop.permute.xlu1 %1122  ;;  %v7940_v49 = vpop.permute.xlu0 %1120 }
 0x351   : > { %6357 = vmatprep.mubr.msk.f32.mxu0 %vm1200_vm1, %v7452_v51  ;;  %6950 = vmatpush3.bf16.msra.mxu0 %v6947_v40 }
 0x354   : > { %6358 = vmatmul.mubr.msk.f32.gmra.mrb[116].mxu0 %vm1200_vm1, %v7455_v52  ;;  %v7950_v50 = vpop.permute.xlu1 %1170  ;;  %v7952_v53 = vpop.permute.xlu0 %1168 }
 0x355   : > { %6360 = vmatprep.mubr.msk.f32.mxu0 %vm1200_vm1, %v7476_v57 }
 0x358   : > { %6361 = vmatmul.mubr.msk.f32.gmra.mrb[118].mxu0 %vm1200_vm1, %v7479_v59  ;;  %v7958_v54 = vpop.permute.xlu1 %1078  ;;  %v7960_v55 = vpop.permute.xlu0 %1076 }
 0x359   : > { %6363 = vmatprep.mubr.msk.f32.mxu0 %vm1200_vm1, %v7494_v62 }
 0x35c   : > { %6364 = vmatmul.mubr.msk.f32.gmra.mrb[120].mxu0 %vm1200_vm1, %v7497_v63  ;;  %v7970_v58 = vpop.permute.xlu1 %1126  ;;  %v7972_v60 = vpop.permute.xlu0 %1124 }
 0x35d   : > { %6366 = vmatprep.mubr.msk.f32.mxu0 %vm1200_vm1, %v7512_v2 }
 0x360   : > { %6367 = vmatmul.mubr.msk.f32.gmra.mrb[122].mxu0 %vm1200_vm1, %v7515_v3  ;;  %v7978_v61 = vpop.permute.xlu1 %1174  ;;  %v7980_v0 = vpop.permute.xlu0 %1172 }
 0x361   : > { %6369 = vmatprep.mubr.msk.f32.mxu0 %vm1200_vm1, %v7530_v6 }
 0x364   : > { %6370 = vmatmul.mubr.msk.f32.gmra.mrb[124].mxu0 %vm1200_vm1, %v7533_v7  ;;  %v7990_v1 = vpop.permute.xlu1 %1082  ;;  %v7992_v4 = vpop.permute.xlu0 %1080 }
 0x365   : > { %6372 = vmatprep.mubr.msk.f32.mxu0 %vm1200_vm1, %v7548_v10 }
 0x368   : > { %6373 = vmatmul.mubr.msk.f32.gmra.mrb[126].mxu0 %vm1200_vm1, %v7551_v11  ;;  %v8001_v16 = vpop.permute.xlu1 %1130  ;;  %v8003_v19 = vpop.permute.xlu0 %1128 }
 0x369   : > { %6439 = vmatprep.mubr.msk.f32.mxu0 %vm1200_vm1, %v7413_v41 }
 0x36c   : > { %6440 = vmatmul.mubr.msk.f32.vlgmr.msra.gmra.mrb[128].mxu0 %vm1200_vm1, %v7410_v39  ;;  %v1218_v39 = vsel %vm394_vm0, %v1202_v20, %v7808_v5  ;;  %v1203_v5 = vsel %vm1200_vm1, %v7840_v18, %v7434_v46  ;;  %v8042_v14 = vpop.permute.xlu1 %1178  ;;  %v8044_v20 = vpop.permute.xlu0 %1176  ;;  %v1452_v18 = vld [vmem:[%s9074_s4 + $0x28] sm:$0xff] }
 0x36d   : > { %6442 = vmatprep.mubr.msk.f32.mxu0 %vm1200_vm1, %v7434_v46  ;;  %v8034_v40 = vsel %vm1233_vm2, %v1218_v39, %v7816_v9  ;;  %v1204_v9 = vsel %vm1200_vm1, %v7838_v17, %v7437_v48  ;;  %v1219_v39 = vsel %vm394_vm0, %v1203_v5, %v7854_v23  ;;  %v1451_v46 = vld [vmem:[%s9074_s4 + $0x20] sm:$0xff] }
 0x370   : > { %6443 = vmatmul.mubr.msk.f32.gmra.mrb[130].mxu0 %vm1200_vm1, %v7437_v48  ;;  %v8064_v48 = vsel %vm1233_vm2, %v1219_v39, %v7862_v26 }
 0x371   : > { %6445 = vmatprep.mubr.msk.f32.mxu0 %vm1200_vm1, %v7452_v51 }
 0x374   : > { %6446 = vmatmul.mubr.msk.f32.gmra.mrb[132].mxu0 %vm1200_vm1, %v7455_v52 }
 0x375   : > { %6448 = vmatprep.mubr.msk.f32.mxu0 %vm1200_vm1, %v7476_v57 }
 0x378   : > { %6449 = vmatmul.mubr.msk.f32.gmra.mrb[134].mxu0 %vm1200_vm1, %v7479_v59 }
 0x379   : > { %6451 = vmatprep.mubr.msk.f32.mxu0 %vm1200_vm1, %v7494_v62 }
 0x37c   : > { %6452 = vmatmul.mubr.msk.f32.gmra.mrb[136].mxu0 %vm1200_vm1, %v7497_v63 }
 0x37d   : > { %6454 = vmatprep.mubr.msk.f32.mxu0 %vm1200_vm1, %v7512_v2 }
 0x37f   : > { %v8014_v24 = vpop.f32.mrb[16].mxu1  ;;  %v5857_v41 = vpop.f32.mrb[32].mxu0 }
 0x380   : > { %9081 = vst [vmem:[#allocation2_spill] sm:$0xff] %v8014_v24  ;;  %v8028_v13 = vpop.f32.mrb[17].mxu1  ;;  %v1534_v38 = vpop.f32.mrb[33].mxu0  ;;  %6455 = vmatmul.mubr.msk.f32.gmra.mrb[138].mxu0 %vm1200_vm1, %v7515_v3  ;;  %v1614_v21 = vmul.f32 %v5857_v41, %v8034_v40  ;;  %v6715_v24 = vpack.c.bf16 %v1450_v37, %v1449_v12  ;;  %v1220_v41 = vsel %vm394_vm0, %v1204_v9, %v7852_v22  ;;  %v1453_v9 = vld [vmem:[%s9074_s4 + $0x30] sm:$0xff] }
 0x381   : > { %9082 = vst [vmem:[#allocation3_spill] sm:$0xff] %v8028_v13  ;;  %v1613_v15 = vmul.f32 %v1534_v38, %v8026_v8  ;;  %6457 = vmatprep.mubr.msk.f32.mxu0 %vm1200_vm1, %v7530_v6  ;;  %v8072_v12 = vsel %vm1233_vm2, %v1220_v41, %v7860_v25  ;;  %v1205_v22 = vsel %vm1200_vm1, %v7870_v28, %v7452_v51  ;;  %v1454_v51 = vld [vmem:[%s9074_s4 + $0x38] sm:$0xff] }
 0x382   : > { %v1206_v25 = vsel %vm1200_vm1, %v7868_v27, %v7455_v52  ;;  %v1221_v5 = vsel %vm394_vm0, %v1205_v22, %v7878_v30  ;;  %v6723_v41 = vpack.c.bf16 %v1454_v51, %v1453_v9 }
 0x383   : > { %v8052_v38 = vpop.f32.mrb[18].mxu1  ;;  %v5860_v13 = vpop.f32.mrb[34].mxu0  ;;  %5911 = vmatprep.mubr.f32.mxu1 %v1613_v15  ;;  %v6719_v15 = vpack.c.bf16 %v1452_v18, %v1451_v46  ;;  %v1222_v28 = vsel %vm394_vm0, %v1206_v25, %v7876_v29  ;;  %v8099_v52 = vsel %vm1233_vm2, %v1221_v5, %v7886_v32  ;;  %v1207_v29 = vsel %vm1200_vm1, %v7894_v34, %v7476_v57  ;;  %v1455_v57 = vld [vmem:[%s9074_s4 + $0x40] sm:$0xff]  ;;  %v1456_v34 = vld [vmem:[%s9074_s4 + $0x48] sm:$0xff] }
 0x384   : > { %v8066_v17 = vpop.f32.mrb[19].mxu1  ;;  %v1544_v23 = vpop.f32.mrb[35].mxu0  ;;  %5912 = vmatmul.mubr.f32.vlgmr.msra.gmra.mrb[32].mxu1 %v1614_v21  ;;  %6458 = vmatmul.mubr.msk.f32.gmra.mrb[140].mxu0 %vm1200_vm1, %v7533_v7  ;;  %v1616_v26 = vmul.f32 %v5860_v13, %v8072_v12  ;;  %v8107_v13 = vsel %vm1233_vm2, %v1222_v28, %v7884_v31  ;;  %v1208_v31 = vsel %vm1200_vm1, %v7892_v33, %v7479_v59 }
 0x385   : > { %v1615_v37 = vmul.f32 %v1544_v23, %v8064_v48  ;;  %6714 = vmatpush3.bf16.msra.mxu1 %v7764_v56  ;;  %6460 = vmatprep.mubr.msk.f32.mxu0 %vm1200_vm1, %v7548_v10  ;;  %v8113_v32 = vpop.permute.xlu1 %1086  ;;  %v8115_v46 = vpop.permute.xlu0 %1084  ;;  %v1223_v23 = vsel %vm394_vm0, %v1207_v29, %v7906_v36  ;;  %v1224_v22 = vsel %vm394_vm0, %v1208_v31, %v7904_v35 }
 0x386   : > { %6716 = vmatprep.subr.bf16.mxu1 %v6715_v24  ;;  %v8135_v59 = vsel %vm1233_vm2, %v1223_v23, %v7920_v43  ;;  %v1209_v5 = vsel %vm1200_vm1, %v7932_v45, %v7494_v62  ;;  %v6727_v43 = vpack.c.bf16 %v1456_v34, %v1455_v57  ;;  %v1458_v62 = vld [vmem:[%s9074_s4 + $0x58] sm:$0xff]  ;;  %v1212_v31 = vsel %vm1200_vm1, %v7958_v54, %v7515_v3 }
 0x387   : > { %v8087_v21 = vpop.f32.mrb[20].mxu1  ;;  %v5863_v56 = vpop.f32.mrb[36].mxu0  ;;  %5914 = vmatprep.mubr.f32.mxu1 %v1615_v37  ;;  %v1225_v9 = vsel %vm394_vm0, %v1209_v5, %v7940_v49 }
 0x388   : > { %v8101_v27 = vpop.f32.mrb[21].mxu1  ;;  %v1554_v30 = vpop.f32.mrb[37].mxu0  ;;  %5915 = vmatmul.mubr.f32.gmra.mrb[34].mxu1 %v1616_v26  ;;  %6461 = vmatmul.mubr.msk.f32.gmra.mrb[142].mxu0 %vm1200_vm1, %v7551_v11  ;;  %v1618_v18 = vmul.f32 %v5863_v56, %v8107_v13  ;;  %v8141_v26 = vsel %vm1233_vm2, %v1224_v22, %v7918_v42  ;;  %v1210_v56 = vsel %vm1200_vm1, %v7930_v44, %v7497_v63 }
 0x389   : > { %v1617_v39 = vmul.f32 %v1554_v30, %v8099_v52  ;;  %6718 = vmatpush3.bf16.msra.mxu1 %v6715_v24  ;;  %v1226_v45 = vsel %vm394_vm0, %v1210_v56, %v7938_v47  ;;  %v8165_v63 = vsel %vm1233_vm2, %v1225_v9, %v7952_v53  ;;  %v1135_v47 = vpop.permute.xlu1 %1134  ;;  %v1133_v29 = vpop.permute.xlu0 %1132  ;;  %v1213_v22 = vsel %vm1200_vm1, %v7992_v4, %v7530_v6  ;;  %v1462_v6 = vld [vmem:[%s9074_s4 + $0x78] sm:$0xff] }
 0x38a   : > { %6720 = vmatprep.subr.bf16.mxu1 %v6719_v15  ;;  %v8171_v28 = vsel %vm1233_vm2, %v1226_v45, %v7950_v50 }
 0x38b   : > { %v8123_v24 = vpop.f32.mrb[22].mxu1  ;;  %v5866_v37 = vpop.f32.mrb[38].mxu0  ;;  %5917 = vmatprep.mubr.f32.mxu1 %v1617_v39  ;;  %v1211_v39 = vsel %vm1200_vm1, %v7960_v55, %v7512_v2  ;;  %v1459_v2 = vld [vmem:[%s9074_s4 + $0x60] sm:$0xff]  ;;  %v1460_v55 = vld [vmem:[%s9074_s4 + $0x68] sm:$0xff] }
 0x38c   : > { %v8137_v33 = vpop.f32.mrb[23].mxu1  ;;  %v1564_v36 = vpop.f32.mrb[39].mxu0  ;;  %5918 = vmatmul.mubr.f32.gmra.mrb[36].mxu1 %v1618_v18  ;;  %v1620_v35 = vmul.f32 %v5866_v37, %v8141_v26  ;;  %v1227_v50 = vsel %vm394_vm0, %v1211_v39, %v7972_v60  ;;  %v1228_v37 = vsel %vm394_vm0, %v1212_v31, %v7970_v58 }
 0x38d   : > { %v1619_v25 = vmul.f32 %v1564_v36, %v8135_v59  ;;  %6722 = vmatpush3.bf16.msra.mxu1 %v6719_v15  ;;  %v1457_v15 = vld [vmem:[%s9074_s4 + $0x50] sm:$0xff]  ;;  %v8195_v3 = vsel %vm1233_vm2, %v1227_v50, %v7980_v0  ;;  %v8201_v57 = vsel %vm1233_vm2, %v1228_v37, %v7978_v61  ;;  %v6735_v0 = vpack.c.bf16 %v1460_v55, %v1459_v2  ;;  %v1181_v56 = vpop.permute.xlu0 %1180  ;;  %v9083_v50 = vld [vmem:[#allocation3_spill] sm:$0xff]  ;;  %v4895_v55 = vld [vmem:[%s9074_s4 + $0x118] sm:$0xff] }
 0x38e   : > { %6724 = vmatprep.subr.bf16.mxu1 %v6723_v41  ;;  %v6731_v18 = vpack.c.bf16 %v1458_v62, %v1457_v15  ;;  %v1214_v36 = vsel %vm1200_vm1, %v7990_v1, %v7533_v7  ;;  %v1216_v62 = vsel %vm1200_vm1, %v8113_v32, %v7551_v11  ;;  %v4894_v2 = vld [vmem:[%s9074_s4 + $0x110] sm:$0xff] }
 0x38f   : > { %v8153_v42 = vpop.f32.mrb[24].mxu1  ;;  %v5869_v51 = vpop.f32.mrb[40].mxu0  ;;  %5920 = vmatprep.mubr.f32.mxu1 %v1619_v25  ;;  %v1229_v25 = vsel %vm394_vm0, %v1213_v22, %v8003_v19  ;;  %v1230_v4 = vsel %vm394_vm0, %v1214_v36, %v8001_v16  ;;  %v1215_v16 = vsel %vm1200_vm1, %v8115_v46, %v7548_v10  ;;  %v4893_v10 = vld [vmem:[%s9074_s4 + $0x108] sm:$0xff]  ;;  %v1232_v46 = vsel %vm394_vm0, %v1216_v62, %v1135_v47  ;;  %v4896_v36 = vld [vmem:[%s9074_s4 + $0x120] sm:$0xff] }
 0x390   : > { %v8167_v44 = vpop.f32.mrb[25].mxu1  ;;  %v1574_v49 = vpop.f32.mrb[41].mxu0  ;;  %5921 = vmatmul.mubr.f32.gmra.mrb[38].mxu1 %v1620_v35  ;;  %v1622_v53 = vmul.f32 %v5869_v51, %v8171_v28  ;;  %v1461_v35 = vld [vmem:[%s9074_s4 + $0x70] sm:$0xff]  ;;  %v8225_v7 = vsel %vm1233_vm2, %v1229_v25, %v8044_v20  ;;  %v1431_v47 = vmul.f32 %v9083_v50, %v8026_v8  ;;  %v6755_v22 = vpack.c.bf16 %v4895_v55, %v4894_v2  ;;  %v4897_v25 = vld [vmem:[%s9074_s4 + $0x128] sm:$0xff] }
 0x391   : > { %v1621_v30 = vmul.f32 %v1574_v49, %v8165_v63  ;;  %6726 = vmatpush3.bf16.msra.mxu1 %v6723_v41  ;;  %v1183_v51 = vpop.permute.xlu1 %1182  ;;  %v6739_v15 = vpack.c.bf16 %v1462_v6, %v1461_v35  ;;  %v1434_v35 = vmul.f32 %v8052_v38, %v8072_v12  ;;  %v1435_v6 = vmul.f32 %v8101_v27, %v8099_v52  ;;  %v4906_v55 = vld [vmem:[%s9074_s4 + $0x170] sm:$0xff] }
 0x392   : > { %6728 = vmatprep.subr.bf16.mxu1 %v6727_v43  ;;  %v1436_v38 = vmul.f32 %v8087_v21, %v8107_v13  ;;  %v1438_v21 = vmul.f32 %v8123_v24, %v8141_v26  ;;  %v1440_v24 = vmul.f32 %v8153_v42, %v8171_v28 }
 0x393   : > { %v8183_v23 = vpop.f32.mrb[26].mxu1  ;;  %v5872_v41 = vpop.f32.mrb[42].mxu0  ;;  %5923 = vmatprep.mubr.f32.mxu1 %v1621_v30  ;;  %v4892_v30 = vld [vmem:[%s9074_s4 + $0x100] sm:$0xff] }
 0x394   : > { %v8197_v54 = vpop.f32.mrb[27].mxu1  ;;  %v1584_v60 = vpop.f32.mrb[43].mxu0  ;;  %5924 = vmatmul.mubr.f32.gmra.mrb[40].mxu1 %v1622_v53  ;;  %v1624_v58 = vmul.f32 %v5872_v41, %v8201_v57  ;;  %v6751_v31 = vpack.c.bf16 %v4893_v10, %v4892_v30  ;;  %v4902_v30 = vld [vmem:[%s9074_s4 + $0x150] sm:$0xff]  ;;  %v4903_v10 = vld [vmem:[%s9074_s4 + $0x158] sm:$0xff]  ;;  %v1442_v42 = vmul.f32 %v8183_v23, %v8201_v57 }
 0x395   : > { %v1623_v34 = vmul.f32 %v1584_v60, %v8195_v3  ;;  %6730 = vmatpush3.bf16.msra.mxu1 %v6727_v43  ;;  %v8231_v43 = vsel %vm1233_vm2, %v1230_v4, %v8042_v14  ;;  %v1231_v14 = vsel %vm394_vm0, %v1215_v16, %v1133_v29  ;;  %v8257_v29 = vsel %vm1233_vm2, %v1232_v46, %v1183_v51  ;;  %v9084_v60 = vld [vmem:[#allocation2_spill] sm:$0xff] }
 0x396   : > { %6732 = vmatprep.subr.bf16.mxu1 %v6731_v18  ;;  %v8252_v39 = vsel %vm1233_vm2, %v1231_v14, %v1181_v56  ;;  %v4899_v56 = vld [vmem:[%s9074_s4 + $0x138] sm:$0xff]  ;;  %v1437_v16 = vmul.f32 %v8137_v33, %v8135_v59  ;;  %v1439_v14 = vmul.f32 %v8167_v44, %v8165_v63  ;;  %v6771_v44 = vpack.c.bf16 %v4903_v10, %v4902_v30  ;;  %v4934_v30 = vld [vmem:[%s9074_s4 + $0x1b0] sm:$0xff] }
 0x397   : > { %v8213_v61 = vpop.f32.mrb[28].mxu1  ;;  %v5875_v5 = vpop.f32.mrb[44].mxu0  ;;  %5926 = vmatprep.mubr.f32.mxu1 %v1623_v34  ;;  %v1432_v34 = vmul.f32 %v9084_v60, %v8034_v40  ;;  %v4907_v60 = vld [vmem:[%s9074_s4 + $0x178] sm:$0xff] }
 0x398   : > { %v8227_v1 = vpop.f32.mrb[29].mxu1  ;;  %v1594_v19 = vpop.f32.mrb[45].mxu0  ;;  %5927 = vmatmul.mubr.f32.gmra.mrb[42].mxu1 %v1624_v58  ;;  %v1626_v20 = vmul.f32 %v5875_v5, %v8231_v43  ;;  %v1433_v58 = vmul.f32 %v8066_v17, %v8064_v48  ;;  %v6759_v17 = vpack.c.bf16 %v4897_v25, %v4896_v36  ;;  %v1444_v23 = vmul.f32 %v8213_v61, %v8231_v43  ;;  %v4928_v36 = vld [vmem:[%s9074_s4 + $0x180] sm:$0xff]  ;;  %v4929_v25 = vld [vmem:[%s9074_s4 + $0x188] sm:$0xff]  ;;  %v4935_v10 = vld [vmem:[%s9074_s4 + $0x1b8] sm:$0xff] }
 0x399   : > { %v1625_v9 = vmul.f32 %v1594_v19, %v8225_v7  ;;  %6734 = vmatpush3.bf16.msra.mxu1 %v6731_v18  ;;  %v4898_v19 = vld [vmem:[%s9074_s4 + $0x130] sm:$0xff] }
 0x39a   : > { %6736 = vmatprep.subr.bf16.mxu1 %v6735_v0  ;;  %v6763_v27 = vpack.c.bf16 %v4899_v56, %v4898_v19  ;;  %v4930_v19 = vld [vmem:[%s9074_s4 + $0x190] sm:$0xff]  ;;  %v4931_v56 = vld [vmem:[%s9074_s4 + $0x198] sm:$0xff] }
 0x39b   : > { %v8242_v45 = vpop.f32.mrb[30].mxu1  ;;  %v5878_v49 = vpop.f32.mrb[46].mxu0  ;;  %5929 = vmatprep.mubr.f32.mxu1 %v1625_v9 }
 0x39c   : > { %v8254_v11 = vpop.f32.mrb[31].mxu1  ;;  %v1604_v32 = vpop.f32.mrb[47].mxu0  ;;  %5930 = vmatmul.mubr.f32.gmra.mrb[44].mxu1 %v1626_v20  ;;  %v1628_v18 = vmul.f32 %v5878_v49, %v8257_v29  ;;  %v4900_v20 = vld [vmem:[%s9074_s4 + $0x140] sm:$0xff]  ;;  %v1446_v61 = vmul.f32 %v8242_v45, %v8257_v29 }
 0x39d   : > { %v1627_v53 = vmul.f32 %v1604_v32, %v8252_v39  ;;  %6738 = vmatpush3.bf16.msra.mxu1 %v6735_v0  ;;  %v1441_v32 = vmul.f32 %v8197_v54, %v8195_v3 }
 0x39e   : > { %6740 = vmatprep.subr.bf16.mxu1 %v6739_v15 }
 0x39f   : > { %5932 = vmatprep.mubr.f32.mxu1 %v1627_v53  ;;  %v8263_v41 = vpop.f32.mrb[48].mxu0 }
 0x3a0   : > { %5933 = vmatmul.mubr.f32.gmra.mrb[46].mxu1 %v1628_v18  ;;  %v8271_v37 = vpop.f32.mrb[49].mxu0  ;;  %v4904_v18 = vld [vmem:[%s9074_s4 + $0x160] sm:$0xff]  ;;  %v2087_v45 = vmul.f32 %v8263_v41, %v8034_v40 }
 0x3a1   : > { %6742 = vmatpush3.bf16.msra.mxu1 %v6739_v15  ;;  %5967 = vmatprep.mubr.f32.mxu1 %v1431_v47  ;;  %v4901_v15 = vld [vmem:[%s9074_s4 + $0x148] sm:$0xff]  ;;  %v1443_v47 = vmul.f32 %v8227_v1, %v8225_v7  ;;  %v6779_v1 = vpack.c.bf16 %v4907_v60, %v4906_v55  ;;  %v4938_v55 = vld [vmem:[%s9074_s4 + $0x1d0] sm:$0xff]  ;;  %v4939_v60 = vld [vmem:[%s9074_s4 + $0x1d8] sm:$0xff] }
 0x3a2   : > { %6752 = vmatprep.subr.bf16.mxu1 %v6751_v31  ;;  %v6767_v33 = vpack.c.bf16 %v4901_v15, %v4900_v20  ;;  %v4932_v20 = vld [vmem:[%s9074_s4 + $0x1a0] sm:$0xff]  ;;  %v4933_v15 = vld [vmem:[%s9074_s4 + $0x1a8] sm:$0xff] }
 0x3a3   : > { %v8277_v0 = vpop.f32.mrb[50].mxu0 }
 0x3a4   : > { %5968 = vmatmul.mubr.f32.vlgmr.msra.gmra.mrb[32].mxu1 %v1432_v34  ;;  %v8285_v5 = vpop.f32.mrb[51].mxu0  ;;  %v2089_v41 = vmul.f32 %v8277_v0, %v8072_v12 }
 0x3a5   : > { %6754 = vmatpush3.bf16.msra.mxu1 %v6751_v31  ;;  %5970 = vmatprep.mubr.f32.mxu1 %v1433_v58  ;;  %v4905_v31 = vld [vmem:[%s9074_s4 + $0x168] sm:$0xff] }
 0x3a6   : > { %6756 = vmatprep.subr.bf16.mxu1 %v6755_v22  ;;  %v6775_v54 = vpack.c.bf16 %v4905_v31, %v4904_v18  ;;  %v4936_v18 = vld [vmem:[%s9074_s4 + $0x1c0] sm:$0xff]  ;;  %v4937_v31 = vld [vmem:[%s9074_s4 + $0x1c8] sm:$0xff] }
 0x3a7   : > { %v8291_v4 = vpop.f32.mrb[52].mxu0 }
 0x3a8   : > { %5971 = vmatmul.mubr.f32.gmra.mrb[34].mxu1 %v1434_v35  ;;  %v8299_v9 = vpop.f32.mrb[53].mxu0  ;;  %v2091_v0 = vmul.f32 %v8291_v4, %v8107_v13 }
 0x3a9   : > { %6758 = vmatpush3.bf16.msra.mxu1 %v6755_v22  ;;  %5973 = vmatprep.mubr.f32.mxu1 %v1435_v6  ;;  %v1445_v22 = vmul.f32 %v8254_v11, %v8252_v39  ;;  %v6791_v11 = vpack.c.bf16 %v4929_v25, %v4928_v36  ;;  %v4940_v36 = vld [vmem:[%s9074_s4 + $0x1e0] sm:$0xff]  ;;  %v4941_v25 = vld [vmem:[%s9074_s4 + $0x1e8] sm:$0xff] }
 0x3aa   : > { %6760 = vmatprep.subr.bf16.mxu1 %v6759_v17 }
 0x3ab   : > { %v8305_v51 = vpop.f32.mrb[54].mxu0 }
 0x3ac   : > { %5974 = vmatmul.mubr.f32.gmra.mrb[36].mxu1 %v1436_v38  ;;  %v8313_v62 = vpop.f32.mrb[55].mxu0  ;;  %v2093_v4 = vmul.f32 %v8305_v51, %v8141_v26 }
 0x3ad   : > { %6762 = vmatpush3.bf16.msra.mxu1 %v6759_v17  ;;  %5976 = vmatprep.mubr.f32.mxu1 %v1437_v16  ;;  %v2086_v17 = vmul.f32 %v8271_v37, %v8026_v8  ;;  %v6795_v37 = vpack.c.bf16 %v4931_v56, %v4930_v19  ;;  %v4942_v19 = vld [vmem:[%s9074_s4 + $0x1f0] sm:$0xff]  ;;  %v4943_v56 = vld [vmem:[%s9074_s4 + $0x1f8] sm:$0xff] }
 0x3ae   : > { %6764 = vmatprep.subr.bf16.mxu1 %v6763_v27 }
 0x3af   : > { %v8319_v49 = vpop.f32.mrb[56].mxu0 }
 0x3b0   : > { %5977 = vmatmul.mubr.f32.gmra.mrb[38].mxu1 %v1438_v21  ;;  %v8327_v46 = vpop.f32.mrb[57].mxu0  ;;  %v2095_v51 = vmul.f32 %v8319_v49, %v8171_v28 }
 0x3b1   : > { %6766 = vmatpush3.bf16.msra.mxu1 %v6763_v27  ;;  %5979 = vmatprep.mubr.f32.mxu1 %v1439_v14  ;;  %v2088_v27 = vmul.f32 %v8285_v5, %v8064_v48  ;;  %v6799_v5 = vpack.c.bf16 %v4933_v15, %v4932_v20  ;;  %v4964_v20 = vld [vmem:[%s9074_s4 + $0x200] sm:$0xff]  ;;  %v4965_v15 = vld [vmem:[%s9074_s4 + $0x208] sm:$0xff] }
 0x3b2   : > { %6768 = vmatprep.subr.bf16.mxu1 %v6767_v33 }
 0x3b3   : > { %v8333_v53 = vpop.f32.mrb[58].mxu0 }
 0x3b4   : > { %5980 = vmatmul.mubr.f32.gmra.mrb[40].mxu1 %v1440_v24  ;;  %v8341_v50 = vpop.f32.mrb[59].mxu0  ;;  %v2097_v49 = vmul.f32 %v8333_v53, %v8201_v57 }
 0x3b5   : > { %6770 = vmatpush3.bf16.msra.mxu1 %v6767_v33  ;;  %5982 = vmatprep.mubr.f32.mxu1 %v1441_v32  ;;  %v2090_v33 = vmul.f32 %v8299_v9, %v8099_v52  ;;  %v6803_v9 = vpack.c.bf16 %v4935_v10, %v4934_v30  ;;  %v4966_v30 = vld [vmem:[%s9074_s4 + $0x210] sm:$0xff]  ;;  %v4967_v10 = vld [vmem:[%s9074_s4 + $0x218] sm:$0xff] }
 0x3b6   : > { %6772 = vmatprep.subr.bf16.mxu1 %v6771_v44 }
 0x3b7   : > { %v8347_v2 = vpop.f32.mrb[60].mxu0 }
 0x3b8   : > { %5983 = vmatmul.mubr.f32.gmra.mrb[42].mxu1 %v1442_v42  ;;  %v8355_v34 = vpop.f32.mrb[61].mxu0  ;;  %v2099_v53 = vmul.f32 %v8347_v2, %v8231_v43 }
 0x3b9   : > { %6774 = vmatpush3.bf16.msra.mxu1 %v6771_v44  ;;  %5985 = vmatprep.mubr.f32.mxu1 %v1443_v47  ;;  %v2092_v44 = vmul.f32 %v8313_v62, %v8135_v59  ;;  %v6807_v62 = vpack.c.bf16 %v4937_v31, %v4936_v18  ;;  %v4968_v18 = vld [vmem:[%s9074_s4 + $0x220] sm:$0xff]  ;;  %v4969_v31 = vld [vmem:[%s9074_s4 + $0x228] sm:$0xff] }
 0x3ba   : > { %6776 = vmatprep.subr.bf16.mxu1 %v6775_v54 }
 0x3bb   : > { %v8361_v58 = vpop.f32.mrb[62].mxu0 }
 0x3bc   : > { %5986 = vmatmul.mubr.f32.gmra.mrb[44].mxu1 %v1444_v23  ;;  %v8369_v35 = vpop.f32.mrb[63].mxu0  ;;  %v2101_v2 = vmul.f32 %v8361_v58, %v8257_v29 }
 0x3bd   : > { %6778 = vmatpush3.bf16.msra.mxu1 %v6775_v54  ;;  %5988 = vmatprep.mubr.f32.mxu1 %v1445_v22  ;;  %v2094_v54 = vmul.f32 %v8327_v46, %v8165_v63  ;;  %v6811_v46 = vpack.c.bf16 %v4939_v60, %v4938_v55  ;;  %v4970_v55 = vld [vmem:[%s9074_s4 + $0x230] sm:$0xff]  ;;  %v4971_v60 = vld [vmem:[%s9074_s4 + $0x238] sm:$0xff] }
 0x3be   : > { %6780 = vmatprep.subr.bf16.mxu1 %v6779_v1 }
 0x3bf   : > { %v8375_v6 = vpop.f32.mrb[64].mxu0 }
 0x3c0   : > { %5989 = vmatmul.mubr.f32.gmra.mrb[46].mxu1 %v1446_v61  ;;  %v8383_v38 = vpop.f32.mrb[65].mxu0  ;;  %v2431_v58 = vmul.f32 %v8375_v6, %v8034_v40 }
 0x3c1   : > { %6782 = vmatpush3.bf16.msra.mxu1 %v6779_v1  ;;  %6055 = vmatprep.mubr.f32.mxu1 %v2086_v17  ;;  %v2096_v1 = vmul.f32 %v8341_v50, %v8195_v3  ;;  %v6815_v50 = vpack.c.bf16 %v4941_v25, %v4940_v36  ;;  %v4972_v36 = vld [vmem:[%s9074_s4 + $0x240] sm:$0xff]  ;;  %v4973_v25 = vld [vmem:[%s9074_s4 + $0x248] sm:$0xff] }
 0x3c2   : > { %6792 = vmatprep.subr.bf16.mxu1 %v6791_v11 }
 0x3c3   : > { %v8389_v16 = vpop.f32.mrb[66].mxu0 }
 0x3c4   : > { %6056 = vmatmul.mubr.f32.vlgmr.msra.gmra.mrb[32].mxu1 %v2087_v45  ;;  %v8397_v21 = vpop.f32.mrb[67].mxu0  ;;  %v2433_v6 = vmul.f32 %v8389_v16, %v8072_v12 }
 0x3c5   : > { %6794 = vmatpush3.bf16.msra.mxu1 %v6791_v11  ;;  %6058 = vmatprep.mubr.f32.mxu1 %v2088_v27  ;;  %v2098_v11 = vmul.f32 %v8355_v34, %v8225_v7  ;;  %v6819_v34 = vpack.c.bf16 %v4943_v56, %v4942_v19  ;;  %v4974_v19 = vld [vmem:[%s9074_s4 + $0x250] sm:$0xff]  ;;  %v4975_v56 = vld [vmem:[%s9074_s4 + $0x258] sm:$0xff] }
 0x3c6   : > { %6796 = vmatprep.subr.bf16.mxu1 %v6795_v37 }
 0x3c7   : > { %v8403_v14 = vpop.f32.mrb[68].mxu0 }
 0x3c8   : > { %6059 = vmatmul.mubr.f32.gmra.mrb[34].mxu1 %v2089_v41  ;;  %v8411_v24 = vpop.f32.mrb[69].mxu0  ;;  %v2435_v16 = vmul.f32 %v8403_v14, %v8107_v13 }
 0x3c9   : > { %6798 = vmatpush3.bf16.msra.mxu1 %v6795_v37  ;;  %6061 = vmatprep.mubr.f32.mxu1 %v2090_v33  ;;  %v2100_v37 = vmul.f32 %v8369_v35, %v8252_v39  ;;  %v6831_v35 = vpack.c.bf16 %v4965_v15, %v4964_v20  ;;  %v4976_v20 = vld [vmem:[%s9074_s4 + $0x260] sm:$0xff]  ;;  %v4977_v15 = vld [vmem:[%s9074_s4 + $0x268] sm:$0xff] }
 0x3ca   : > { %6800 = vmatprep.subr.bf16.mxu1 %v6799_v5 }
 0x3cb   : > { %v8417_v32 = vpop.f32.mrb[70].mxu0 }
 0x3cc   : > { %6062 = vmatmul.mubr.f32.gmra.mrb[36].mxu1 %v2091_v0  ;;  %v8425_v42 = vpop.f32.mrb[71].mxu0  ;;  %v2437_v14 = vmul.f32 %v8417_v32, %v8141_v26 }
 0x3cd   : > { %6802 = vmatpush3.bf16.msra.mxu1 %v6799_v5  ;;  %6064 = vmatprep.mubr.f32.mxu1 %v2092_v44  ;;  %v2430_v5 = vmul.f32 %v8383_v38, %v8026_v8  ;;  %v6835_v38 = vpack.c.bf16 %v4967_v10, %v4966_v30  ;;  %v4978_v30 = vld [vmem:[%s9074_s4 + $0x270] sm:$0xff]  ;;  %v4979_v10 = vld [vmem:[%s9074_s4 + $0x278] sm:$0xff] }
 0x3ce   : > { %6804 = vmatprep.subr.bf16.mxu1 %v6803_v9 }
 0x3cf   : > { %v8431_v47 = vpop.f32.mrb[72].mxu0 }
 0x3d0   : > { %6065 = vmatmul.mubr.f32.gmra.mrb[38].mxu1 %v2093_v4  ;;  %v8439_v23 = vpop.f32.mrb[73].mxu0  ;;  %v2439_v32 = vmul.f32 %v8431_v47, %v8171_v28 }
 0x3d1   : > { %6806 = vmatpush3.bf16.msra.mxu1 %v6803_v9  ;;  %6067 = vmatprep.mubr.f32.mxu1 %v2094_v54  ;;  %v2432_v9 = vmul.f32 %v8397_v21, %v8064_v48  ;;  %v6839_v21 = vpack.c.bf16 %v4969_v31, %v4968_v18  ;;  %v5000_v18 = vld [vmem:[%s9074_s4 + $0x280] sm:$0xff]  ;;  %v5001_v31 = vld [vmem:[%s9074_s4 + $0x288] sm:$0xff] }
 0x3d2   : > { %6808 = vmatprep.subr.bf16.mxu1 %v6807_v62 }
 0x3d3   : > { %v8445_v22 = vpop.f32.mrb[74].mxu0 }
 0x3d4   : > { %6068 = vmatmul.mubr.f32.gmra.mrb[40].mxu1 %v2095_v51  ;;  %v8453_v61 = vpop.f32.mrb[75].mxu0  ;;  %v2441_v47 = vmul.f32 %v8445_v22, %v8201_v57 }
 0x3d5   : > { %6810 = vmatpush3.bf16.msra.mxu1 %v6807_v62  ;;  %6070 = vmatprep.mubr.f32.mxu1 %v2096_v1  ;;  %v2434_v62 = vmul.f32 %v8411_v24, %v8099_v52  ;;  %v6843_v24 = vpack.c.bf16 %v4971_v60, %v4970_v55  ;;  %v5002_v55 = vld [vmem:[%s9074_s4 + $0x290] sm:$0xff]  ;;  %v5003_v60 = vld [vmem:[%s9074_s4 + $0x298] sm:$0xff] }
 0x3d6   : > { %6812 = vmatprep.subr.bf16.mxu1 %v6811_v46 }
 0x3d7   : > { %v8459_v17 = vpop.f32.mrb[76].mxu0 }
 0x3d8   : > { %6071 = vmatmul.mubr.f32.gmra.mrb[42].mxu1 %v2097_v49  ;;  %v8467_v45 = vpop.f32.mrb[77].mxu0  ;;  %v2443_v22 = vmul.f32 %v8459_v17, %v8231_v43 }
 0x3d9   : > { %6814 = vmatpush3.bf16.msra.mxu1 %v6811_v46  ;;  %6073 = vmatprep.mubr.f32.mxu1 %v2098_v11  ;;  %v2436_v46 = vmul.f32 %v8425_v42, %v8135_v59  ;;  %v6847_v42 = vpack.c.bf16 %v4973_v25, %v4972_v36  ;;  %v4026_v36 = vld [vmem:[%s9076_s6 + $0x18] sm:$0xff] }
 0x3da   : > { %6816 = vmatprep.subr.bf16.mxu1 %v6815_v50 }
 0x3db   : > { %v8473_v27 = vpop.f32.mrb[78].mxu0 }
 0x3dc   : > { %6074 = vmatmul.mubr.f32.gmra.mrb[44].mxu1 %v2099_v53  ;;  %v8481_v41 = vpop.f32.mrb[79].mxu0  ;;  %v2445_v17 = vmul.f32 %v8473_v27, %v8257_v29  ;;  %v4023_v27 = vld [vmem:[%s9076_s6] sm:$0xff] }
 0x3dd   : > { %6818 = vmatpush3.bf16.msra.mxu1 %v6815_v50  ;;  %6076 = vmatprep.mubr.f32.mxu1 %v2100_v37  ;;  %v2438_v50 = vmul.f32 %v8439_v23, %v8165_v63  ;;  %v6851_v23 = vpack.c.bf16 %v4975_v56, %v4974_v19  ;;  %v5004_v56 = vld [vmem:[%s9074_s4 + $0x2a0] sm:$0xff] }
 0x3de   : > { %6820 = vmatprep.subr.bf16.mxu1 %v6819_v34 }
 0x3df   : > { %v8487_v33 = vpop.f32.mrb[80].mxu0 }
 0x3e0   : > { %6077 = vmatmul.mubr.f32.gmra.mrb[46].mxu1 %v2101_v2  ;;  %v8495_v0 = vpop.f32.mrb[81].mxu0  ;;  %v2775_v25 = vmul.f32 %v8487_v33, %v8034_v40 }
 0x3e1   : > { %6822 = vmatpush3.bf16.msra.mxu1 %v6819_v34  ;;  %6143 = vmatprep.mubr.f32.mxu1 %v2430_v5  ;;  %v2440_v34 = vmul.f32 %v8453_v61, %v8195_v3  ;;  %v6855_v61 = vpack.c.bf16 %v4977_v15, %v4976_v20  ;;  %v5006_v15 = vld [vmem:[%s9074_s4 + $0x2b0] sm:$0xff] }
 0x3e2   : > { %6832 = vmatprep.subr.bf16.mxu1 %v6831_v35 }
 0x3e3   : > { %v8501_v44 = vpop.f32.mrb[82].mxu0 }
 0x3e4   : > { %6144 = vmatmul.mubr.f32.vlgmr.msra.gmra.mrb[32].mxu1 %v2431_v58  ;;  %v8509_v4 = vpop.f32.mrb[83].mxu0  ;;  %v2777_v33 = vmul.f32 %v8501_v44, %v8072_v12 }
 0x3e5   : > { %6834 = vmatpush3.bf16.msra.mxu1 %v6831_v35  ;;  %6146 = vmatprep.mubr.f32.mxu1 %v2432_v9  ;;  %v2442_v35 = vmul.f32 %v8467_v45, %v8225_v7  ;;  %v6859_v45 = vpack.c.bf16 %v4979_v10, %v4978_v30  ;;  %v5008_v10 = vld [vmem:[%s9074_s4 + $0x2c0] sm:$0xff] }
 0x3e6   : > { %6836 = vmatprep.subr.bf16.mxu1 %v6835_v38 }
 0x3e7   : > { %v8515_v54 = vpop.f32.mrb[84].mxu0 }
 0x3e8   : > { %6147 = vmatmul.mubr.f32.gmra.mrb[34].mxu1 %v2433_v6  ;;  %v8523_v51 = vpop.f32.mrb[85].mxu0  ;;  %v2779_v44 = vmul.f32 %v8515_v54, %v8107_v13 }
 0x3e9   : > { %6838 = vmatpush3.bf16.msra.mxu1 %v6835_v38  ;;  %6149 = vmatprep.mubr.f32.mxu1 %v2434_v62  ;;  %v2444_v38 = vmul.f32 %v8481_v41, %v8252_v39  ;;  %v6871_v41 = vpack.c.bf16 %v5001_v31, %v5000_v18  ;;  %v5010_v31 = vld [vmem:[%s9074_s4 + $0x2d0] sm:$0xff] }
 0x3ea   : > { %6840 = vmatprep.subr.bf16.mxu1 %v6839_v21 }
 0x3eb   : > { %v8529_v1 = vpop.f32.mrb[86].mxu0 }
 0x3ec   : > { %6150 = vmatmul.mubr.f32.gmra.mrb[36].mxu1 %v2435_v16  ;;  %v8537_v49 = vpop.f32.mrb[87].mxu0  ;;  %v2781_v54 = vmul.f32 %v8529_v1, %v8141_v26 }
 0x3ed   : > { %6842 = vmatpush3.bf16.msra.mxu1 %v6839_v21  ;;  %6152 = vmatprep.mubr.f32.mxu1 %v2436_v46  ;;  %v2774_v21 = vmul.f32 %v8495_v0, %v8026_v8  ;;  %v4024_v0 = vld [vmem:[%s9076_s6 + $0x8] sm:$0xff] }
 0x3ee   : > { %6844 = vmatprep.subr.bf16.mxu1 %v6843_v24  ;;  %v6983_v46 = vpack.c.bf16 %v4024_v0, %v4023_v27  ;;  %v5013_v27 = vld [vmem:[%s9074_s4 + $0x2e8] sm:$0xff] }
 0x3ef   : > { %v8543_v11 = vpop.f32.mrb[88].mxu0 }
 0x3f0   : > { %6153 = vmatmul.mubr.f32.gmra.mrb[38].mxu1 %v2437_v14  ;;  %v8551_v53 = vpop.f32.mrb[89].mxu0  ;;  %v6875_v14 = vpack.c.bf16 %v5003_v60, %v5002_v55  ;;  %6984 = vmatprep.subr.bf16.mxu0 %v6983_v46  ;;  %v2783_v1 = vmul.f32 %v8543_v11, %v8171_v28  ;;  %v5012_v60 = vld [vmem:[%s9074_s4 + $0x2e0] sm:$0xff] }
 0x3f1   : > { %6846 = vmatpush3.bf16.msra.mxu1 %v6843_v24  ;;  %6155 = vmatprep.mubr.f32.mxu1 %v2438_v50  ;;  %v4025_v24 = vld [vmem:[%s9076_s6 + $0x10] sm:$0xff]  ;;  %v2776_v50 = vmul.f32 %v8509_v4, %v8064_v48 }
 0x3f2   : > { %6848 = vmatprep.subr.bf16.mxu1 %v6847_v42  ;;  %6986 = vmatpush3.bf16.msra.mxu0 %v6983_v46 }
 0x3f3   : > { %v8557_v37 = vpop.f32.mrb[90].mxu0 }
 0x3f4   : > { %6156 = vmatmul.mubr.f32.gmra.mrb[40].mxu1 %v2439_v32  ;;  %v8565_v2 = vpop.f32.mrb[91].mxu0  ;;  %v5005_v32 = vld [vmem:[%s9074_s4 + $0x2a8] sm:$0xff]  ;;  %v2785_v11 = vmul.f32 %v8557_v37, %v8201_v57 }
 0x3f5   : > { %6850 = vmatpush3.bf16.msra.mxu1 %v6847_v42  ;;  %6158 = vmatprep.mubr.f32.mxu1 %v2440_v34  ;;  %v6987_v42 = vpack.c.bf16 %v4026_v36, %v4025_v24  ;;  %v6879_v4 = vpack.c.bf16 %v5005_v32, %v5004_v56  ;;  %v2778_v34 = vmul.f32 %v8523_v51, %v8099_v52  ;;  %v5014_v36 = vld [vmem:[%s9074_s4 + $0x2f0] sm:$0xff]  ;;  %v5036_v56 = vld [vmem:[%s9074_s4 + $0x300] sm:$0xff]  ;;  %v5037_v32 = vld [vmem:[%s9074_s4 + $0x308] sm:$0xff] }
 0x3f6   : > { %6852 = vmatprep.subr.bf16.mxu1 %v6851_v23 }
 0x3f7   : > { %v8571_v5 = vpop.f32.mrb[92].mxu0  ;;  %6988 = vmatprep.subr.bf16.mxu0 %v6987_v42 }
 0x3f8   : > { %6159 = vmatmul.mubr.f32.gmra.mrb[42].mxu1 %v2441_v47  ;;  %v8579_v58 = vpop.f32.mrb[93].mxu0  ;;  %v5007_v47 = vld [vmem:[%s9074_s4 + $0x2b8] sm:$0xff]  ;;  %6990 = vmatpush3.bf16.msra.mxu0 %v6987_v42  ;;  %v2787_v37 = vmul.f32 %v8571_v5, %v8231_v43 }
 0x3f9   : > { %6854 = vmatpush3.bf16.msra.mxu1 %v6851_v23  ;;  %6161 = vmatprep.mubr.f32.mxu1 %v2442_v35  ;;  %v6883_v51 = vpack.c.bf16 %v5007_v47, %v5006_v15  ;;  %v2780_v35 = vmul.f32 %v8537_v49, %v8135_v59  ;;  %v2786_v24 = vmul.f32 %v8579_v58, %v8225_v7  ;;  %v5038_v15 = vld [vmem:[%s9074_s4 + $0x310] sm:$0xff]  ;;  %v5039_v47 = vld [vmem:[%s9074_s4 + $0x318] sm:$0xff] }
 0x3fa   : > { %6856 = vmatprep.subr.bf16.mxu1 %v6855_v61 }
 0x3fb   : > { %v8585_v9 = vpop.f32.mrb[94].mxu0 }
 0x3fc   : > { %6162 = vmatmul.mubr.f32.gmra.mrb[44].mxu1 %v2443_v22  ;;  %v8593_v6 = vpop.f32.mrb[95].mxu0  ;;  %v5009_v22 = vld [vmem:[%s9074_s4 + $0x2c8] sm:$0xff]  ;;  %v2789_v5 = vmul.f32 %v8585_v9, %v8257_v29 }
 0x3fd   : > { %6858 = vmatpush3.bf16.msra.mxu1 %v6855_v61  ;;  %6164 = vmatprep.mubr.f32.mxu1 %v2444_v38  ;;  %v6887_v49 = vpack.c.bf16 %v5009_v22, %v5008_v10  ;;  %v2782_v38 = vmul.f32 %v8551_v53, %v8165_v63  ;;  %v2788_v42 = vmul.f32 %v8593_v6, %v8252_v39  ;;  %v5040_v10 = vld [vmem:[%s9074_s4 + $0x320] sm:$0xff]  ;;  %v5041_v22 = vld [vmem:[%s9074_s4 + $0x328] sm:$0xff] }
 0x3fe   : > { %6860 = vmatprep.subr.bf16.mxu1 %v6859_v45  ;;  %v6911_v6 = vpack.c.bf16 %v5037_v32, %v5036_v56  ;;  %v5048_v56 = vld [vmem:[%s9074_s4 + $0x360] sm:$0xff]  ;;  %v5049_v32 = vld [vmem:[%s9074_s4 + $0x368] sm:$0xff] }
 0x3ff   : > { %v8599_v62 = vpop.f32.mrb[96].mxu0 }
 0x400   : > { %6165 = vmatmul.mubr.f32.gmra.mrb[46].mxu1 %v2445_v17  ;;  %v8607_v16 = vpop.f32.mrb[97].mxu0  ;;  %v5011_v17 = vld [vmem:[%s9074_s4 + $0x2d8] sm:$0xff]  ;;  %v3119_v9 = vmul.f32 %v8599_v62, %v8034_v40 }
 0x401   : > { %6862 = vmatpush3.bf16.msra.mxu1 %v6859_v45  ;;  %6231 = vmatprep.mubr.f32.mxu1 %v2774_v21  ;;  %v6891_v53 = vpack.c.bf16 %v5011_v17, %v5010_v31  ;;  %v2784_v21 = vmul.f32 %v8565_v2, %v8195_v3  ;;  %v6895_v2 = vpack.c.bf16 %v5013_v27, %v5012_v60  ;;  %v5042_v31 = vld [vmem:[%s9074_s4 + $0x330] sm:$0xff]  ;;  %v5043_v17 = vld [vmem:[%s9074_s4 + $0x338] sm:$0xff]  ;;  %v5044_v60 = vld [vmem:[%s9074_s4 + $0x340] sm:$0xff] }
 0x402   : > { %6872 = vmatprep.subr.bf16.mxu1 %v6871_v41  ;;  %v5045_v27 = vld [vmem:[%s9074_s4 + $0x348] sm:$0xff] }
 0x403   : > { %v8625_v19 = vpop.f32.mrb[98].mxu0 }
 0x404   : > { %6232 = vmatmul.mubr.f32.vlgmr.msra.gmra.mrb[32].mxu1 %v2775_v25  ;;  %v8633_v23 = vpop.f32.mrb[99].mxu0  ;;  %v5015_v25 = vld [vmem:[%s9074_s4 + $0x2f8] sm:$0xff]  ;;  %v3121_v62 = vmul.f32 %v8625_v19, %v8072_v12 }
 0x405   : > { %6874 = vmatpush3.bf16.msra.mxu1 %v6871_v41  ;;  %6234 = vmatprep.mubr.f32.mxu1 %v2776_v50  ;;  %v6899_v58 = vpack.c.bf16 %v5015_v25, %v5014_v36  ;;  %v5046_v36 = vld [vmem:[%s9074_s4 + $0x350] sm:$0xff]  ;;  %v5047_v25 = vld [vmem:[%s9074_s4 + $0x358] sm:$0xff] }
 0x406   : > { %6876 = vmatprep.subr.bf16.mxu1 %v6875_v14 }
 0x407   : > { %v8639_v20 = vpop.f32.mrb[100].mxu0 }
 0x408   : > { %6235 = vmatmul.mubr.f32.gmra.mrb[34].mxu1 %v2777_v33  ;;  %v8647_v61 = vpop.f32.mrb[101].mxu0  ;;  %v3123_v19 = vmul.f32 %v8639_v20, %v8107_v13 }
 0x409   : > { %6878 = vmatpush3.bf16.msra.mxu1 %v6875_v14  ;;  %6237 = vmatprep.mubr.f32.mxu1 %v2778_v34 }
 0x40a   : > { %6880 = vmatprep.subr.bf16.mxu1 %v6879_v4 }
 0x40b   : > { %v8653_v30 = vpop.f32.mrb[102].mxu0 }
 0x40c   : > { %6238 = vmatmul.mubr.f32.gmra.mrb[36].mxu1 %v2779_v44  ;;  %v8661_v45 = vpop.f32.mrb[103].mxu0  ;;  %v3125_v20 = vmul.f32 %v8653_v30, %v8141_v26 }
 0x40d   : > { %6882 = vmatpush3.bf16.msra.mxu1 %v6879_v4  ;;  %6240 = vmatprep.mubr.f32.mxu1 %v2780_v35  ;;  %v3118_v4 = vmul.f32 %v8607_v16, %v8026_v8  ;;  %v6915_v16 = vpack.c.bf16 %v5039_v47, %v5038_v15  ;;  %v5050_v15 = vld [vmem:[%s9074_s4 + $0x370] sm:$0xff]  ;;  %v5051_v47 = vld [vmem:[%s9074_s4 + $0x378] sm:$0xff] }
 0x40e   : > { %6884 = vmatprep.subr.bf16.mxu1 %v6883_v51 }
 0x40f   : > { %v8667_v18 = vpop.f32.mrb[104].mxu0 }
 0x410   : > { %6241 = vmatmul.mubr.f32.gmra.mrb[38].mxu1 %v2781_v54  ;;  %v8675_v41 = vpop.f32.mrb[105].mxu0  ;;  %v3127_v30 = vmul.f32 %v8667_v18, %v8171_v28 }
 0x411   : > { %6886 = vmatpush3.bf16.msra.mxu1 %v6883_v51  ;;  %6243 = vmatprep.mubr.f32.mxu1 %v2782_v38  ;;  %v3120_v51 = vmul.f32 %v8633_v23, %v8064_v48  ;;  %v6919_v23 = vpack.c.bf16 %v5041_v22, %v5040_v10  ;;  %v5072_v10 = vld [vmem:[%s9074_s4 + $0x380] sm:$0xff]  ;;  %v5073_v22 = vld [vmem:[%s9074_s4 + $0x388] sm:$0xff] }
 0x412   : > { %6888 = vmatprep.subr.bf16.mxu1 %v6887_v49 }
 0x413   : > { %v8681_v55 = vpop.f32.mrb[106].mxu0 }
 0x414   : > { %6244 = vmatmul.mubr.f32.gmra.mrb[40].mxu1 %v2783_v1  ;;  %v8689_v0 = vpop.f32.mrb[107].mxu0  ;;  %v3129_v18 = vmul.f32 %v8681_v55, %v8201_v57 }
 0x415   : > { %6890 = vmatpush3.bf16.msra.mxu1 %v6887_v49  ;;  %6246 = vmatprep.mubr.f32.mxu1 %v2784_v21  ;;  %v3122_v49 = vmul.f32 %v8647_v61, %v8099_v52  ;;  %v6923_v61 = vpack.c.bf16 %v5043_v17, %v5042_v31  ;;  %v5074_v31 = vld [vmem:[%s9074_s4 + $0x390] sm:$0xff]  ;;  %v5075_v17 = vld [vmem:[%s9074_s4 + $0x398] sm:$0xff] }
 0x416   : > { %6892 = vmatprep.subr.bf16.mxu1 %v6891_v53 }
 0x417   : > { %v8695_v46 = vpop.f32.mrb[108].mxu0 }
 0x418   : > { %6247 = vmatmul.mubr.f32.gmra.mrb[42].mxu1 %v2785_v11  ;;  %v8703_v14 = vpop.f32.mrb[109].mxu0  ;;  %v3131_v55 = vmul.f32 %v8695_v46, %v8231_v43 }
 0x419   : > { %6894 = vmatpush3.bf16.msra.mxu1 %v6891_v53  ;;  %6249 = vmatprep.mubr.f32.mxu1 %v2786_v24  ;;  %v3124_v53 = vmul.f32 %v8661_v45, %v8135_v59  ;;  %v6927_v45 = vpack.c.bf16 %v5045_v27, %v5044_v60  ;;  %v5076_v60 = vld [vmem:[%s9074_s4 + $0x3a0] sm:$0xff]  ;;  %v5077_v27 = vld [vmem:[%s9074_s4 + $0x3a8] sm:$0xff] }
 0x41a   : > { %6896 = vmatprep.subr.bf16.mxu1 %v6895_v2 }
 0x41b   : > { %v8709_v50 = vpop.f32.mrb[110].mxu0 }
 0x41c   : > { %6250 = vmatmul.mubr.f32.gmra.mrb[44].mxu1 %v2787_v37  ;;  %v8717_v33 = vpop.f32.mrb[111].mxu0  ;;  %v3133_v46 = vmul.f32 %v8709_v50, %v8257_v29 }
 0x41d   : > { %6898 = vmatpush3.bf16.msra.mxu1 %v6895_v2  ;;  %6252 = vmatprep.mubr.f32.mxu1 %v2788_v42  ;;  %v3126_v2 = vmul.f32 %v8675_v41, %v8165_v63  ;;  %v6931_v41 = vpack.c.bf16 %v5047_v25, %v5046_v36  ;;  %v5078_v36 = vld [vmem:[%s9074_s4 + $0x3b0] sm:$0xff]  ;;  %v5079_v25 = vld [vmem:[%s9074_s4 + $0x3b8] sm:$0xff] }
 0x41e   : > { %6900 = vmatprep.subr.bf16.mxu1 %v6899_v58 }
 0x41f   : > { %v8723_v34 = vpop.f32.mrb[112].mxu0 }
 0x420   : > { %6253 = vmatmul.mubr.f32.gmra.mrb[46].mxu1 %v2789_v5  ;;  %v8731_v44 = vpop.f32.mrb[113].mxu0  ;;  %v3463_v50 = vmul.f32 %v8723_v34, %v8034_v40 }
 0x421   : > { %6902 = vmatpush3.bf16.msra.mxu1 %v6899_v58  ;;  %6319 = vmatprep.mubr.f32.mxu1 %v3118_v4  ;;  %v3128_v58 = vmul.f32 %v8689_v0, %v8195_v3  ;;  %v6935_v0 = vpack.c.bf16 %v5049_v32, %v5048_v56  ;;  %v5080_v56 = vld [vmem:[%s9074_s4 + $0x3c0] sm:$0xff]  ;;  %v5081_v32 = vld [vmem:[%s9074_s4 + $0x3c8] sm:$0xff] }
 0x422   : > { %6912 = vmatprep.subr.bf16.mxu1 %v6911_v6 }
 0x423   : > { %v8737_v35 = vpop.f32.mrb[114].mxu0 }
 0x424   : > { %6320 = vmatmul.mubr.f32.vlgmr.msra.gmra.mrb[32].mxu1 %v3119_v9  ;;  %v8745_v54 = vpop.f32.mrb[115].mxu0  ;;  %v3465_v34 = vmul.f32 %v8737_v35, %v8072_v12 }
 0x425   : > { %6914 = vmatpush3.bf16.msra.mxu1 %v6911_v6  ;;  %6322 = vmatprep.mubr.f32.mxu1 %v3120_v51  ;;  %v3130_v6 = vmul.f32 %v8703_v14, %v8225_v7  ;;  %v6939_v14 = vpack.c.bf16 %v5051_v47, %v5050_v15  ;;  %v5082_v15 = vld [vmem:[%s9074_s4 + $0x3d0] sm:$0xff]  ;;  %v5083_v47 = vld [vmem:[%s9074_s4 + $0x3d8] sm:$0xff] }
 0x426   : > { %6916 = vmatprep.subr.bf16.mxu1 %v6915_v16 }
 0x427   : > { %v8751_v38 = vpop.f32.mrb[116].mxu0 }
 0x428   : > { %6323 = vmatmul.mubr.f32.gmra.mrb[34].mxu1 %v3121_v62  ;;  %v8759_v1 = vpop.f32.mrb[117].mxu0  ;;  %v3467_v35 = vmul.f32 %v8751_v38, %v8107_v13 }
 0x429   : > { %6918 = vmatpush3.bf16.msra.mxu1 %v6915_v16  ;;  %6325 = vmatprep.mubr.f32.mxu1 %v3122_v49  ;;  %v3132_v16 = vmul.f32 %v8717_v33, %v8252_v39  ;;  %v6951_v33 = vpack.c.bf16 %v5073_v22, %v5072_v10  ;;  %v5084_v10 = vld [vmem:[%s9074_s4 + $0x3e0] sm:$0xff]  ;;  %v5085_v22 = vld [vmem:[%s9074_s4 + $0x3e8] sm:$0xff] }
 0x42a   : > { %6920 = vmatprep.subr.bf16.mxu1 %v6919_v23 }
 0x42b   : > { %v8765_v21 = vpop.f32.mrb[118].mxu0 }
 0x42c   : > { %6326 = vmatmul.mubr.f32.gmra.mrb[36].mxu1 %v3123_v19  ;;  %v8773_v11 = vpop.f32.mrb[119].mxu0  ;;  %v3469_v38 = vmul.f32 %v8765_v21, %v8141_v26 }
 0x42d   : > { %6922 = vmatpush3.bf16.msra.mxu1 %v6919_v23  ;;  %6328 = vmatprep.mubr.f32.mxu1 %v3124_v53  ;;  %v3462_v23 = vmul.f32 %v8731_v44, %v8026_v8  ;;  %v6955_v44 = vpack.c.bf16 %v5075_v17, %v5074_v31  ;;  %v5086_v31 = vld [vmem:[%s9074_s4 + $0x3f0] sm:$0xff]  ;;  %v5087_v17 = vld [vmem:[%s9074_s4 + $0x3f8] sm:$0xff] }
 0x42e   : > { %6924 = vmatprep.subr.bf16.mxu1 %v6923_v61 }
 0x42f   : > { %v8779_v24 = vpop.f32.mrb[120].mxu0 }
 0x430   : > { %6329 = vmatmul.mubr.f32.gmra.mrb[38].mxu1 %v3125_v20  ;;  %v8787_v37 = vpop.f32.mrb[121].mxu0  ;;  %v3471_v21 = vmul.f32 %v8779_v24, %v8171_v28 }
 0x431   : > { %6926 = vmatpush3.bf16.msra.mxu1 %v6923_v61  ;;  %6331 = vmatprep.mubr.f32.mxu1 %v3126_v2  ;;  %v3464_v61 = vmul.f32 %v8745_v54, %v8064_v48  ;;  %v6959_v54 = vpack.c.bf16 %v5077_v27, %v5076_v60 }
 0x432   : > { %6928 = vmatprep.subr.bf16.mxu1 %v6927_v45 }
 0x433   : > { %v8793_v42 = vpop.f32.mrb[122].mxu0 }
 0x434   : > { %6332 = vmatmul.mubr.f32.gmra.mrb[40].mxu1 %v3127_v30  ;;  %v8801_v5 = vpop.f32.mrb[123].mxu0  ;;  %v3473_v24 = vmul.f32 %v8793_v42, %v8201_v57 }
 0x435   : > { %6930 = vmatpush3.bf16.msra.mxu1 %v6927_v45  ;;  %6334 = vmatprep.mubr.f32.mxu1 %v3128_v58  ;;  %v3466_v45 = vmul.f32 %v8759_v1, %v8099_v52  ;;  %v6963_v1 = vpack.c.bf16 %v5079_v25, %v5078_v36 }
 0x436   : > { %6932 = vmatprep.subr.bf16.mxu1 %v6931_v41 }
 0x437   : > { %v8807_v4 = vpop.f32.mrb[124].mxu0 }
 0x438   : > { %6335 = vmatmul.mubr.f32.gmra.mrb[42].mxu1 %v3129_v18  ;;  %v8815_v9 = vpop.f32.mrb[125].mxu0  ;;  %v3475_v42 = vmul.f32 %v8807_v4, %v8231_v43 }
 0x439   : > { %6934 = vmatpush3.bf16.msra.mxu1 %v6931_v41  ;;  %6337 = vmatprep.mubr.f32.mxu1 %v3130_v6  ;;  %v3468_v41 = vmul.f32 %v8773_v11, %v8135_v59  ;;  %v3470_v11 = vmul.f32 %v8787_v37, %v8165_v63  ;;  %v3472_v37 = vmul.f32 %v8801_v5, %v8195_v3 }
 0x43a   : > { %6936 = vmatprep.subr.bf16.mxu1 %v6935_v0  ;;  %v3474_v5 = vmul.f32 %v8815_v9, %v8225_v7 }
 0x43b   : > { %v8821_v51 = vpop.f32.mrb[126].mxu0 }
 0x43c   : > { %6338 = vmatmul.mubr.f32.gmra.mrb[44].mxu1 %v3131_v55  ;;  %v8829_v62 = vpop.f32.mrb[127].mxu0  ;;  %v3477_v27 = vmul.f32 %v8821_v51, %v8257_v29 }
 0x43d   : > { %6938 = vmatpush3.bf16.msra.mxu1 %v6935_v0  ;;  %6340 = vmatprep.mubr.f32.mxu1 %v3132_v16  ;;  %v6967_v0 = vpack.c.bf16 %v5081_v32, %v5080_v56  ;;  %v3476_v9 = vmul.f32 %v8829_v62, %v8252_v39 }
 0x43e   : > { %6940 = vmatprep.subr.bf16.mxu1 %v6939_v14 }
 0x43f   : > { %v8835_v49 = vpop.f32.mrb[128].mxu0 }
 0x440   : > { %6341 = vmatmul.mubr.f32.gmra.mrb[46].mxu1 %v3133_v46  ;;  %v8843_v19 = vpop.f32.mrb[129].mxu0  ;;  %v3807_v4 = vmul.f32 %v8835_v49, %v8034_v40 }
 0x441   : > { %6942 = vmatpush3.bf16.msra.mxu1 %v6939_v14  ;;  %6407 = vmatprep.mubr.f32.mxu1 %v3462_v23  ;;  %v6971_v14 = vpack.c.bf16 %v5083_v47, %v5082_v15 }
 0x442   : > { %6952 = vmatprep.subr.bf16.mxu1 %v6951_v33 }
 0x443   : > { %v8849_v53 = vpop.f32.mrb[130].mxu0 }
 0x444   : > { %6408 = vmatmul.mubr.f32.vlgmr.msra.gmra.mrb[32].mxu1 %v3463_v50  ;;  %v8857_v20 = vpop.f32.mrb[131].mxu0 }
 0x445   : > { %6954 = vmatpush3.bf16.msra.mxu1 %v6951_v33  ;;  %6410 = vmatprep.mubr.f32.mxu1 %v3464_v61  ;;  %v6975_v33 = vpack.c.bf16 %v5085_v22, %v5084_v10  ;;  %v3808_v62 = vmul.f32 %v8857_v20, %v8064_v48 }
 0x446   : > { %6956 = vmatprep.subr.bf16.mxu1 %v6955_v44 }
 0x447   : > { %v8863_v2 = vpop.f32.mrb[132].mxu0 }
 0x448   : > { %6411 = vmatmul.mubr.f32.gmra.mrb[34].mxu1 %v3465_v34  ;;  %v8871_v30 = vpop.f32.mrb[133].mxu0  ;;  %v3806_v34 = vmul.f32 %v8843_v19, %v8026_v8  ;;  %v3811_v8 = vmul.f32 %v8863_v2, %v8107_v13 }
 0x449   : > { %6958 = vmatpush3.bf16.msra.mxu1 %v6955_v44  ;;  %6413 = vmatprep.mubr.f32.mxu1 %v3466_v45  ;;  %v6979_v44 = vpack.c.bf16 %v5087_v17, %v5086_v31  ;;  %v3810_v51 = vmul.f32 %v8871_v30, %v8099_v52  ;;  %v4465_v31 = vld [vmem:[%s9078_s8] sm:$0xff]  ;;  %v4466_v17 = vld [vmem:[%s9078_s8 + $0x8] sm:$0xff] }
 0x44a   : > { %6960 = vmatprep.subr.bf16.mxu1 %v6959_v54 }
 0x44b   : > { %v8877_v58 = vpop.f32.mrb[134].mxu0 }
 0x44c   : > { %6414 = vmatmul.mubr.f32.gmra.mrb[36].mxu1 %v3467_v35  ;;  %v3757_v18 = vpop.f32.mrb[135].mxu0  ;;  %v3813_v40 = vmul.f32 %v8877_v58, %v8141_v26 }
 0x44d   : > { %6962 = vmatpush3.bf16.msra.mxu1 %v6959_v54  ;;  %6416 = vmatprep.mubr.f32.mxu1 %v3468_v41  ;;  %v3809_v54 = vmul.f32 %v8849_v53, %v8072_v12  ;;  %v3812_v19 = vmul.f32 %v3757_v18, %v8135_v59 }
 0x44e   : > { %6964 = vmatprep.subr.bf16.mxu1 %v6963_v1 }
 0x44f   : > { %v6453_v6 = vpop.f32.mrb[136].mxu0 }
 0x450   : > { %6417 = vmatmul.mubr.f32.gmra.mrb[38].mxu1 %v3469_v38  ;;  %v3767_v55 = vpop.f32.mrb[137].mxu0  ;;  %v3815_v12 = vmul.f32 %v6453_v6, %v8171_v28  ;;  %v5106_v28 = vld [vmem:[%s9076_s6 + $0x20] sm:$0xff] }
 0x451   : > { %6966 = vmatpush3.bf16.msra.mxu1 %v6963_v1  ;;  %6419 = vmatprep.mubr.f32.mxu1 %v3470_v11  ;;  %v3814_v48 = vmul.f32 %v3767_v55, %v8165_v63 }
 0x452   : > { %6968 = vmatprep.subr.bf16.mxu1 %v6967_v0 }
 0x453   : > { %v6456_v16 = vpop.f32.mrb[138].mxu0 }
 0x454   : > { %6420 = vmatmul.mubr.f32.gmra.mrb[40].mxu1 %v3471_v21  ;;  %v3777_v46 = vpop.f32.mrb[139].mxu0  ;;  %v3817_v49 = vmul.f32 %v6456_v16, %v8201_v57 }
 0x455   : > { %6970 = vmatpush3.bf16.msra.mxu1 %v6967_v0  ;;  %6422 = vmatprep.mubr.f32.mxu1 %v3472_v37  ;;  %v3816_v52 = vmul.f32 %v3777_v46, %v8195_v3  ;;  %v5107_v3 = vld [vmem:[%s9076_s6 + $0x28] sm:$0xff] }
 0x456   : > { %6972 = vmatprep.subr.bf16.mxu1 %v6971_v14  ;;  %v6991_v57 = vpack.c.bf16 %v5107_v3, %v5106_v28 }
 0x457   : > { %v6459_v23 = vpop.f32.mrb[140].mxu0 }
 0x458   : > { %6423 = vmatmul.mubr.f32.gmra.mrb[42].mxu1 %v3473_v24  ;;  %v3787_v50 = vpop.f32.mrb[141].mxu0  ;;  %v3819_v59 = vmul.f32 %v6459_v23, %v8231_v43  ;;  %6992 = vmatprep.subr.bf16.mxu0 %v6991_v57 }
 0x459   : > { %6974 = vmatpush3.bf16.msra.mxu1 %v6971_v14  ;;  %6425 = vmatprep.mubr.f32.mxu1 %v3474_v5  ;;  %v3818_v13 = vmul.f32 %v3787_v50, %v8225_v7  ;;  %v5088_v7 = vld [vmem:[%s9075_s5] ss:$0 sm:$0xff]  ;;  %v4467_v50 = vld [vmem:[%s9078_s8 + $0x10] sm:$0xff] }
 0x45a   : > { %6976 = vmatprep.subr.bf16.mxu1 %v6975_v33 }
 0x45b   : > { %v6462_v61 = vpop.f32.mrb[142].mxu0 }
 0x45c   : > { %6426 = vmatmul.mubr.f32.gmra.mrb[44].mxu1 %v3475_v42  ;;  %v3797_v60 = vpop.f32.mrb[143].mxu0  ;;  %v3821_v63 = vmul.f32 %v6462_v61, %v8257_v29  ;;  %v5109_v29 = vld [vmem:[%s9076_s6 + $0x38] sm:$0xff]  ;;  %v6999_v42 = vpack.c.bf16 %v4466_v17, %v4465_v31  ;;  %v5089_v61 = vld [vmem:[%s9077_s7] ss:$0 sm:$0xff] }
 0x45d   : > { %6978 = vmatpush3.bf16.msra.mxu1 %v6975_v33  ;;  %6428 = vmatprep.mubr.f32.mxu1 %v3476_v9  ;;  %v3820_v26 = vmul.f32 %v3797_v60, %v8252_v39  ;;  %v5108_v39 = vld [vmem:[%s9076_s6 + $0x30] sm:$0xff] }
 0x45e   : > { %6980 = vmatprep.subr.bf16.mxu1 %v6979_v44  ;;  %v6995_v2 = vpack.c.bf16 %v5109_v29, %v5108_v39 }
 0x460   : > { %6429 = vmatmul.mubr.f32.gmra.mrb[46].mxu1 %v3477_v27 }
 0x461   : > { %6982 = vmatpush3.bf16.msra.mxu1 %v6979_v44  ;;  %6495 = vmatprep.mubr.f32.mxu1 %v3806_v34  ;;  %v4468_v44 = vld [vmem:[%s9078_s8 + $0x18] sm:$0xff] }
 0x462   : > { %v7003_v9 = vpack.c.bf16 %v4468_v44, %v4467_v50  ;;  %7000 = vmatprep.subr.bf16.mxu1 %v6999_v42 }
 0x464   : > { %6496 = vmatmul.mubr.f32.vlgmr.msra.gmra.mrb[32].mxu1 %v3807_v4 }
 0x465   : > { %6498 = vmatprep.mubr.f32.mxu1 %v3808_v62  ;;  %7002 = vmatpush3.bf16.msra.mxu1 %v6999_v42 }
 0x466   : > { %7004 = vmatprep.subr.bf16.mxu1 %v7003_v9 }
 0x468   : > { %6499 = vmatmul.mubr.f32.gmra.mrb[34].mxu1 %v3809_v54 }
 0x469   : > { %6501 = vmatprep.mubr.f32.mxu1 %v3810_v51  ;;  %7006 = vmatpush3.bf16.msra.mxu1 %v7003_v9 }
 0x46c   : > { %6502 = vmatmul.mubr.f32.gmra.mrb[36].mxu1 %v3811_v8 }
 0x46d   : > { %6504 = vmatprep.mubr.f32.mxu1 %v3812_v19 }
 0x470   : > { %6505 = vmatmul.mubr.f32.gmra.mrb[38].mxu1 %v3813_v40 }
 0x471   : > { %6507 = vmatprep.mubr.f32.mxu1 %v3814_v48 }
 0x474   : > { %6508 = vmatmul.mubr.f32.gmra.mrb[40].mxu1 %v3815_v12 }
 0x475   : > { %6510 = vmatprep.mubr.f32.mxu1 %v3816_v52 }
 0x478   : > { %6511 = vmatmul.mubr.f32.gmra.mrb[42].mxu1 %v3817_v49 }
 0x479   : > { %6513 = vmatprep.mubr.f32.mxu1 %v3818_v13 }
 0x47c   : > { %6514 = vmatmul.mubr.f32.gmra.mrb[44].mxu1 %v3819_v59 }
 0x47d   : > { %6516 = vmatprep.mubr.f32.mxu1 %v3820_v26 }
 0x480   : > { %6517 = vmatmul.mubr.f32.gmra.mrb[46].mxu1 %v3821_v63 }
 0x537   : > { %v6497_v43 = vpop.f32.mrb[32].mxu1 }
 0x538   : > { %v3905_v53 = vpop.f32.mrb[33].mxu1  ;;  %v4008_v45 = vadd.f32 %v6497_v43, %v5088_v7 }
 0x539   : > { %v4007_v20 = vadd.f32 %v5088_v7, %v3905_v53 }
 0x53b   : > { %v6500_v36 = vpop.f32.mrb[34].mxu1  ;;  %6527 = vmatprep.mubr.msk.f32.mxu0 %vm1200_vm1, %v4007_v20 }
 0x53c   : > { %v3915_v25 = vpop.f32.mrb[35].mxu1  ;;  %6528 = vmatmul.mubr.msk.f32.vlgmr.msra.gmra.mrb[144].mxu0 %vm1200_vm1, %v4008_v45  ;;  %v4010_v35 = vadd.f32 %v6500_v36, %v5088_v7 }
 0x53d   : > { %v4009_v30 = vadd.f32 %v5088_v7, %v3915_v25  ;;  %6994 = vmatpush3.bf16.msra.mxu0 %v6991_v57 }
 0x53e   : > { %6996 = vmatprep.subr.bf16.mxu0 %v6995_v2 }
 0x53f   : > { %v6503_v1 = vpop.f32.mrb[36].mxu1  ;;  %6530 = vmatprep.mubr.msk.f32.mxu0 %vm1200_vm1, %v4009_v30 }
 0x540   : > { %v3925_v41 = vpop.f32.mrb[37].mxu1  ;;  %6531 = vmatmul.mubr.msk.f32.gmra.mrb[146].mxu0 %vm1200_vm1, %v4010_v35  ;;  %v4012_v56 = vadd.f32 %v6503_v1, %v5088_v7 }
 0x541   : > { %v4011_v58 = vadd.f32 %v5088_v7, %v3925_v41  ;;  %6998 = vmatpush3.bf16.msra.mxu0 %v6995_v2 }
 0x543   : > { %v6506_v32 = vpop.f32.mrb[38].mxu1  ;;  %6533 = vmatprep.mubr.msk.f32.mxu0 %vm1200_vm1, %v4011_v58 }
 0x544   : > { %v3935_v18 = vpop.f32.mrb[39].mxu1  ;;  %6534 = vmatmul.mubr.msk.f32.gmra.mrb[148].mxu0 %vm1200_vm1, %v4012_v56  ;;  %v4014_v0 = vadd.f32 %v6506_v32, %v5088_v7 }
 0x545   : > { %v4013_v38 = vadd.f32 %v5088_v7, %v3935_v18 }
 0x547   : > { %v6509_v11 = vpop.f32.mrb[40].mxu1  ;;  %6536 = vmatprep.mubr.msk.f32.mxu0 %vm1200_vm1, %v4013_v38 }
 0x548   : > { %v3945_v6 = vpop.f32.mrb[41].mxu1  ;;  %6537 = vmatmul.mubr.msk.f32.gmra.mrb[150].mxu0 %vm1200_vm1, %v4014_v0  ;;  %v4016_v47 = vadd.f32 %v6509_v11, %v5088_v7 }
 0x549   : > { %v4015_v15 = vadd.f32 %v5088_v7, %v3945_v6 }
 0x54b   : > { %v6512_v55 = vpop.f32.mrb[42].mxu1  ;;  %6539 = vmatprep.mubr.msk.f32.mxu0 %vm1200_vm1, %v4015_v15 }
 0x54c   : > { %v3955_v21 = vpop.f32.mrb[43].mxu1  ;;  %6540 = vmatmul.mubr.msk.f32.gmra.mrb[152].mxu0 %vm1200_vm1, %v4016_v47  ;;  %v4018_v37 = vadd.f32 %v6512_v55, %v5088_v7 }
 0x54d   : > { %v4017_v14 = vadd.f32 %v5088_v7, %v3955_v21 }
 0x54f   : > { %v6515_v16 = vpop.f32.mrb[44].mxu1  ;;  %6542 = vmatprep.mubr.msk.f32.mxu0 %vm1200_vm1, %v4017_v14 }
 0x550   : > { %v3965_v10 = vpop.f32.mrb[45].mxu1  ;;  %6543 = vmatmul.mubr.msk.f32.gmra.mrb[154].mxu0 %vm1200_vm1, %v4018_v37  ;;  %v4020_v46 = vadd.f32 %v6515_v16, %v5088_v7  ;;  %v5111_v37 = vld [vmem:[%s9077_s7 + $0x1] ss:$0 sm:$0xff] }
 0x551   : > { %v4019_v22 = vadd.f32 %v5088_v7, %v3965_v10 }
 0x553   : > { %v6518_v24 = vpop.f32.mrb[46].mxu1  ;;  %6545 = vmatprep.mubr.msk.f32.mxu0 %vm1200_vm1, %v4019_v22 }
 0x554   : > { %v3975_v33 = vpop.f32.mrb[47].mxu1  ;;  %6546 = vmatmul.mubr.msk.f32.gmra.mrb[156].mxu0 %vm1200_vm1, %v4020_v46  ;;  %v4022_v23 = vadd.f32 %v6518_v24, %v5088_v7 }
 0x555   : > { %v4021_v5 = vadd.f32 %v5088_v7, %v3975_v33 }
 0x557   : > { %6548 = vmatprep.mubr.msk.f32.mxu0 %vm1200_vm1, %v4021_v5 }
 0x558   : > { %6549 = vmatmul.mubr.msk.f32.gmra.mrb[158].mxu0 %vm1200_vm1, %v4022_v23 }
 0x60f   : > { %v6529_v60 = vpop.f32.mrb[144].mxu0 }
 0x610   : > { %v4154_v27 = vadd.f32 %v6529_v60, %v5089_v61  ;;  %v4148_v34 = vpop.f32.mrb[145].mxu0 }
 0x611   : > { %v4149_v4 = vadd.f32 %v5089_v61, %v4148_v34 }
 0x612   : > { %v4228_v51 = vmax.f32 %v4154_v27, 0.0 }
 0x613   : > { %v4227_v62 = vmax.f32 %v4149_v4, 0.0  ;;  %v6532_v54 = vpop.f32.mrb[146].mxu0 }
 0x614   : > { %v4164_v8 = vadd.f32 %v6532_v54, %v5089_v61  ;;  %v4158_v19 = vpop.f32.mrb[147].mxu0 }
 0x615   : > { %v4159_v40 = vadd.f32 %v5089_v61, %v4158_v19  ;;  %6559 = vmatprep.mubr.msk.f32.mxu0 %vm1200_vm1, %v4227_v62 }
 0x616   : > { %6560 = vmatmul.mubr.msk.f32.vlgmr.msra.gmra.mrb[160].mxu0 %vm1200_vm1, %v4228_v51  ;;  %v4230_v52 = vmax.f32 %v4164_v8, 0.0 }
 0x617   : > { %v4229_v48 = vmax.f32 %v4159_v40, 0.0  ;;  %v6535_v12 = vpop.f32.mrb[148].mxu0 }
 0x618   : > { %v4174_v49 = vadd.f32 %v6535_v12, %v5089_v61  ;;  %v4168_v13 = vpop.f32.mrb[149].mxu0 }
 0x619   : > { %v4169_v59 = vadd.f32 %v5089_v61, %v4168_v13  ;;  %6562 = vmatprep.mubr.msk.f32.mxu0 %vm1200_vm1, %v4229_v48 }
 0x61a   : > { %6563 = vmatmul.mubr.msk.f32.gmra.mrb[162].mxu0 %vm1200_vm1, %v4230_v52  ;;  %v4232_v28 = vmax.f32 %v4174_v49, 0.0 }
 0x61b   : > { %v4231_v26 = vmax.f32 %v4169_v59, 0.0  ;;  %v6538_v63 = vpop.f32.mrb[150].mxu0 }
 0x61c   : > { %v4184_v3 = vadd.f32 %v6538_v63, %v5089_v61  ;;  %v4178_v57 = vpop.f32.mrb[151].mxu0 }
 0x61d   : > { %v4179_v7 = vadd.f32 %v5089_v61, %v4178_v57  ;;  %6565 = vmatprep.mubr.msk.f32.mxu0 %vm1200_vm1, %v4231_v26 }
 0x61e   : > { %6566 = vmatmul.mubr.msk.f32.gmra.mrb[164].mxu0 %vm1200_vm1, %v4232_v28  ;;  %v4234_v29 = vmax.f32 %v4184_v3, 0.0 }
 0x61f   : > { %v4233_v43 = vmax.f32 %v4179_v7, 0.0  ;;  %v6541_v39 = vpop.f32.mrb[152].mxu0 }
 0x620   : > { %v4194_v53 = vadd.f32 %v6541_v39, %v5089_v61  ;;  %v4188_v20 = vpop.f32.mrb[153].mxu0 }
 0x621   : > { %v4189_v45 = vadd.f32 %v5089_v61, %v4188_v20  ;;  %6568 = vmatprep.mubr.msk.f32.mxu0 %vm1200_vm1, %v4233_v43 }
 0x622   : > { %6569 = vmatmul.mubr.msk.f32.gmra.mrb[166].mxu0 %vm1200_vm1, %v4234_v29  ;;  %v4236_v25 = vmax.f32 %v4194_v53, 0.0 }
 0x623   : > { %v4235_v2 = vmax.f32 %v4189_v45, 0.0  ;;  %v6544_v36 = vpop.f32.mrb[154].mxu0 }
 0x624   : > { %v4204_v30 = vadd.f32 %v6544_v36, %v5089_v61  ;;  %v4198_v35 = vpop.f32.mrb[155].mxu0 }
 0x625   : > { %v4199_v1 = vadd.f32 %v5089_v61, %v4198_v35  ;;  %6571 = vmatprep.mubr.msk.f32.mxu0 %vm1200_vm1, %v4235_v2 }
 0x626   : > { %6572 = vmatmul.mubr.msk.f32.gmra.mrb[168].mxu0 %vm1200_vm1, %v4236_v25  ;;  %v4238_v56 = vmax.f32 %v4204_v30, 0.0 }
 0x627   : > { %v4237_v41 = vmax.f32 %v4199_v1, 0.0  ;;  %v6547_v58 = vpop.f32.mrb[156].mxu0  ;;  %v5128_v1 = vld [vmem:[%s9079_s9] ss:$0 sm:$0xff] }
 0x628   : > { %v4214_v32 = vadd.f32 %v6547_v58, %v5089_v61  ;;  %v4208_v18 = vpop.f32.mrb[157].mxu0 }
 0x629   : > { %v4209_v38 = vadd.f32 %v5089_v61, %v4208_v18  ;;  %6574 = vmatprep.mubr.msk.f32.mxu0 %vm1200_vm1, %v4237_v41 }
 0x62a   : > { %6575 = vmatmul.mubr.msk.f32.gmra.mrb[170].mxu0 %vm1200_vm1, %v4238_v56  ;;  %v4240_v6 = vmax.f32 %v4214_v32, 0.0 }
 0x62b   : > { %v4239_v0 = vmax.f32 %v4209_v38, 0.0  ;;  %v6550_v11 = vpop.f32.mrb[158].mxu0 }
 0x62c   : > { %v4224_v15 = vadd.f32 %v6550_v11, %v5089_v61  ;;  %v4218_v47 = vpop.f32.mrb[159].mxu0 }
 0x62d   : > { %v4219_v55 = vadd.f32 %v5089_v61, %v4218_v47  ;;  %6577 = vmatprep.mubr.msk.f32.mxu0 %vm1200_vm1, %v4239_v0 }
 0x62e   : > { %6578 = vmatmul.mubr.msk.f32.gmra.mrb[172].mxu0 %vm1200_vm1, %v4240_v6  ;;  %v4242_v14 = vmax.f32 %v4224_v15, 0.0 }
 0x62f   : > { %v4241_v21 = vmax.f32 %v4219_v55, 0.0 }
 0x631   : > { %6580 = vmatprep.mubr.msk.f32.mxu0 %vm1200_vm1, %v4241_v21 }
 0x632   : > { %6581 = vmatmul.mubr.msk.f32.gmra.mrb[174].mxu0 %vm1200_vm1, %v4242_v14 }
 0x6e9   : > { %v6561_v16 = vpop.f32.mrb[160].mxu0 }
 0x6ea   : > { %v4376_v10 = vadd.f32 %v6561_v16, %v5111_v37  ;;  %v4370_v22 = vpop.f32.mrb[161].mxu0 }
 0x6eb   : > { %v4371_v46 = vadd.f32 %v5111_v37, %v4370_v22 }
 0x6ec   : > { %v4450_v5 = vmax.f32 %v4376_v10, 0.0 }
 0x6ed   : > { %v4449_v24 = vmax.f32 %v4371_v46, 0.0  ;;  %v6564_v33 = vpop.f32.mrb[162].mxu0 }
 0x6ee   : > { %v4386_v23 = vadd.f32 %v6564_v33, %v5111_v37  ;;  %v4380_v31 = vpop.f32.mrb[163].mxu0 }
 0x6ef   : > { %v4381_v17 = vadd.f32 %v5111_v37, %v4380_v31  ;;  %6591 = vmatprep.mubr.msk.f32.mxu1 %vm1200_vm1, %v4449_v24 }
 0x6f0   : > { %6592 = vmatmul.mubr.msk.f32.vlgmr.msra.gmra.mrb[48].mxu1 %vm1200_vm1, %v4450_v5  ;;  %v4452_v44 = vmax.f32 %v4386_v23, 0.0 }
 0x6f1   : > { %v4451_v50 = vmax.f32 %v4381_v17, 0.0  ;;  %v6567_v42 = vpop.f32.mrb[164].mxu0 }
 0x6f2   : > { %v4396_v9 = vadd.f32 %v6567_v42, %v5111_v37  ;;  %v4390_v61 = vpop.f32.mrb[165].mxu0 }
 0x6f3   : > { %v4391_v60 = vadd.f32 %v5111_v37, %v4390_v61  ;;  %6594 = vmatprep.mubr.msk.f32.mxu1 %vm1200_vm1, %v4451_v50 }
 0x6f4   : > { %6595 = vmatmul.mubr.msk.f32.gmra.mrb[50].mxu1 %vm1200_vm1, %v4452_v44  ;;  %v4454_v4 = vmax.f32 %v4396_v9, 0.0 }
 0x6f5   : > { %v4453_v27 = vmax.f32 %v4391_v60, 0.0  ;;  %v6570_v34 = vpop.f32.mrb[166].mxu0 }
 0x6f6   : > { %v4406_v62 = vadd.f32 %v6570_v34, %v5111_v37  ;;  %v4400_v54 = vpop.f32.mrb[167].mxu0 }
 0x6f7   : > { %v4401_v51 = vadd.f32 %v5111_v37, %v4400_v54  ;;  %6597 = vmatprep.mubr.msk.f32.mxu1 %vm1200_vm1, %v4453_v27 }
 0x6f8   : > { %6598 = vmatmul.mubr.msk.f32.gmra.mrb[52].mxu1 %vm1200_vm1, %v4454_v4  ;;  %v4456_v40 = vmax.f32 %v4406_v62, 0.0 }
 0x6f9   : > { %v4455_v8 = vmax.f32 %v4401_v51, 0.0  ;;  %v6573_v19 = vpop.f32.mrb[168].mxu0 }
 0x6fa   : > { %v4416_v48 = vadd.f32 %v6573_v19, %v5111_v37  ;;  %v4410_v12 = vpop.f32.mrb[169].mxu0 }
 0x6fb   : > { %v4411_v52 = vadd.f32 %v5111_v37, %v4410_v12  ;;  %6600 = vmatprep.mubr.msk.f32.mxu1 %vm1200_vm1, %v4455_v8 }
 0x6fc   : > { %6601 = vmatmul.mubr.msk.f32.gmra.mrb[54].mxu1 %vm1200_vm1, %v4456_v40  ;;  %v4458_v59 = vmax.f32 %v4416_v48, 0.0 }
 0x6fd   : > { %v4457_v49 = vmax.f32 %v4411_v52, 0.0  ;;  %v6576_v13 = vpop.f32.mrb[170].mxu0 }
 0x6fe   : > { %v4426_v26 = vadd.f32 %v6576_v13, %v5111_v37  ;;  %v4420_v63 = vpop.f32.mrb[171].mxu0 }
 0x6ff   : > { %v4421_v28 = vadd.f32 %v5111_v37, %v4420_v63  ;;  %6603 = vmatprep.mubr.msk.f32.mxu1 %vm1200_vm1, %v4457_v49 }
 0x700   : > { %6604 = vmatmul.mubr.msk.f32.gmra.mrb[56].mxu1 %vm1200_vm1, %v4458_v59  ;;  %v4460_v7 = vmax.f32 %v4426_v26, 0.0 }
 0x701   : > { %v4459_v3 = vmax.f32 %v4421_v28, 0.0  ;;  %v6579_v57 = vpop.f32.mrb[172].mxu0 }
 0x702   : > { %v4436_v43 = vadd.f32 %v6579_v57, %v5111_v37  ;;  %v4430_v39 = vpop.f32.mrb[173].mxu0 }
 0x703   : > { %v4431_v29 = vadd.f32 %v5111_v37, %v4430_v39  ;;  %6606 = vmatprep.mubr.msk.f32.mxu1 %vm1200_vm1, %v4459_v3 }
 0x704   : > { %6607 = vmatmul.mubr.msk.f32.gmra.mrb[58].mxu1 %vm1200_vm1, %v4460_v7  ;;  %v4462_v45 = vmax.f32 %v4436_v43, 0.0 }
 0x705   : > { %v4461_v53 = vmax.f32 %v4431_v29, 0.0  ;;  %v6582_v20 = vpop.f32.mrb[174].mxu0 }
 0x706   : > { %v4446_v2 = vadd.f32 %v6582_v20, %v5111_v37  ;;  %v4440_v36 = vpop.f32.mrb[175].mxu0 }
 0x707   : > { %v4441_v25 = vadd.f32 %v5111_v37, %v4440_v36  ;;  %6609 = vmatprep.mubr.msk.f32.mxu1 %vm1200_vm1, %v4461_v53 }
 0x708   : > { %6610 = vmatmul.mubr.msk.f32.gmra.mrb[60].mxu1 %vm1200_vm1, %v4462_v45  ;;  %v4464_v35 = vmax.f32 %v4446_v2, 0.0 }
 0x709   : > { %v4463_v30 = vmax.f32 %v4441_v25, 0.0 }
 0x70b   : > { %6612 = vmatprep.mubr.msk.f32.mxu1 %vm1200_vm1, %v4463_v30 }
 0x70c   : > { %6613 = vmatmul.mubr.msk.f32.gmra.mrb[62].mxu1 %vm1200_vm1, %v4464_v35 }
 0x7c3   : > { %v6593_v41 = vpop.f32.mrb[48].mxu1 }
 0x7c4   : > { %v4596_v58 = vadd.f32 %v6593_v41, %v5128_v1  ;;  %v4590_v56 = vpop.f32.mrb[49].mxu1 }
 0x7c5   : > { %v4591_v32 = vadd.f32 %v5128_v1, %v4590_v56 }
 0x7c6   : > { %4671 = vst.msk [vmem:[%s9033_s25 + $0x8] sm:$0xff] %vm4669_vm3, %v4596_v58 }
 0x7c7   : > { %4670 = vst.msk [vmem:[%s9033_s25] sm:$0xff] %vm4669_vm3, %v4591_v32  ;;  %v6596_v18 = vpop.f32.mrb[50].mxu1 }
 0x7c8   : > { %v4606_v38 = vadd.f32 %v6596_v18, %v5128_v1  ;;  %v4600_v0 = vpop.f32.mrb[51].mxu1 }
 0x7c9   : > { %v4601_v11 = vadd.f32 %v5128_v1, %v4600_v0 }
 0x7ca   : > { %4673 = vst.msk [vmem:[%s9033_s25 + $0x18] sm:$0xff] %vm4669_vm3, %v4606_v38 }
 0x7cb   : > { %4672 = vst.msk [vmem:[%s9033_s25 + $0x10] sm:$0xff] %vm4669_vm3, %v4601_v11  ;;  %v6599_v6 = vpop.f32.mrb[52].mxu1 }
 0x7cc   : > { %v4616_v15 = vadd.f32 %v6599_v6, %v5128_v1  ;;  %v4610_v47 = vpop.f32.mrb[53].mxu1 }
 0x7cd   : > { %v4611_v55 = vadd.f32 %v5128_v1, %v4610_v47 }
 0x7ce   : > { %4675 = vst.msk [vmem:[%s9033_s25 + $0x28] sm:$0xff] %vm4669_vm3, %v4616_v15 }
 0x7cf   : > { %4674 = vst.msk [vmem:[%s9033_s25 + $0x20] sm:$0xff] %vm4669_vm3, %v4611_v55  ;;  %v6602_v21 = vpop.f32.mrb[54].mxu1 }
 0x7d0   : > { %v4626_v14 = vadd.f32 %v6602_v21, %v5128_v1  ;;  %v4620_v37 = vpop.f32.mrb[55].mxu1 }
 0x7d1   : > { %v4621_v16 = vadd.f32 %v5128_v1, %v4620_v37 }
 0x7d2   : > { %4677 = vst.msk [vmem:[%s9033_s25 + $0x38] sm:$0xff] %vm4669_vm3, %v4626_v14 }
 0x7d3   : > { %4676 = vst.msk [vmem:[%s9033_s25 + $0x30] sm:$0xff] %vm4669_vm3, %v4621_v16  ;;  %v6605_v10 = vpop.f32.mrb[56].mxu1 }
 0x7d4   : > { %v4636_v22 = vadd.f32 %v6605_v10, %v5128_v1  ;;  %v4630_v46 = vpop.f32.mrb[57].mxu1 }
 0x7d5   : > { %v4631_v24 = vadd.f32 %v5128_v1, %v4630_v46 }
 0x7d6   : > { %4679 = vst.msk [vmem:[%s9033_s25 + $0x48] sm:$0xff] %vm4669_vm3, %v4636_v22 }
 0x7d7   : > { %4678 = vst.msk [vmem:[%s9033_s25 + $0x40] sm:$0xff] %vm4669_vm3, %v4631_v24  ;;  %v6608_v33 = vpop.f32.mrb[58].mxu1 }
 0x7d8   : > { %v4646_v5 = vadd.f32 %v6608_v33, %v5128_v1  ;;  %v4640_v23 = vpop.f32.mrb[59].mxu1 }
 0x7d9   : > { %v4641_v31 = vadd.f32 %v5128_v1, %v4640_v23 }
 0x7da   : > { %4681 = vst.msk [vmem:[%s9033_s25 + $0x58] sm:$0xff] %vm4669_vm3, %v4646_v5 }
 0x7db   : > { %4680 = vst.msk [vmem:[%s9033_s25 + $0x50] sm:$0xff] %vm4669_vm3, %v4641_v31  ;;  %v6611_v17 = vpop.f32.mrb[60].mxu1 }
 0x7dc   : > { %v4656_v50 = vadd.f32 %v6611_v17, %v5128_v1  ;;  %v4650_v42 = vpop.f32.mrb[61].mxu1 }
 0x7dd   : > { %v4651_v44 = vadd.f32 %v5128_v1, %v4650_v42 }
 0x7de   : > { %4683 = vst.msk [vmem:[%s9033_s25 + $0x68] sm:$0xff] %vm4669_vm3, %v4656_v50 }
 0x7df   : > { %4682 = vst.msk [vmem:[%s9033_s25 + $0x60] sm:$0xff] %vm4669_vm3, %v4651_v44  ;;  %v6614_v9 = vpop.f32.mrb[62].mxu1 }
 0x7e0   : > { %v4666_v61 = vadd.f32 %v6614_v9, %v5128_v1  ;;  %v4660_v60 = vpop.f32.mrb[63].mxu1 }
 0x7e1   : > { %v4661_v27 = vadd.f32 %v5128_v1, %v4660_v60 }
 0x7e2   : > { %4685 = vst.msk [vmem:[%s9033_s25 + $0x78] sm:$0xff] %vm4669_vm3, %v4666_v61 }
 0x7e3   : > { %4684 = vst.msk [vmem:[%s9033_s25 + $0x70] sm:$0xff] %vm4669_vm3, %v4661_v27 }
 0x7e4 PF: > { %s20_s13 = sadd.s32 1, %s7136_s13  }
 0x7e5   : > { %p17_p4 = scmp.ge.s32.totalorder %s20_s13, 4  }
 0x7e7   :  { %19 = sbr.rel (!%p17_p4) target bundleno = 1 (0x1), region = 110 }

</bundles_post_ra>
